<compile_context>
chip_gen: v7x
topology: tpu7x:2x2x1
jax: 0.10.0
libtpu: 0.0.40
codegen_flags: <defaults>
</compile_context>

<pallas_src>
import functools
import math

import jax
import jax.numpy as jnp
from jax.experimental import pallas as pl
from jax.experimental.pallas import tpu as pltpu

_SLAB_DTYPE = jnp.bfloat16  # im2col slab / line buffer / matmul operand dtype

# pltpu.CompilerParams on current JAX; fall back for older releases.
_CompilerParams = getattr(pltpu, "CompilerParams", None) or getattr(
    pltpu, "TPUCompilerParams")


def _round_up(x, m):
    return ((x + m - 1) // m) * m


# ----------------------------------------------------------------------------
# Fused DEBlockTrain kernel (Bt batch elements per grid step)
# ----------------------------------------------------------------------------
def _deblock_kernel(x_ref, w1_ref, b1_ref, w2_ref, b2_ref, o_ref,
                    line_ref, col_ref, *, img_w, bt):
    # x_ref   : (bt, C, HW)         f32 input block (lane-dense flat spatial)
    # w*_ref  : (3, C, 3*C)         bf16 weights, ky band major, cols (kx, ci)
    # b*_ref  : (C, 1)              f32 biases
    # o_ref   : (bt, C, HW)         f32 output block
    # line_ref: (bt, C, HW+2*pad)   bf16 zero-haloed line buffers (scratch)
    # col_ref : (3, 3*C, bt*HW)     bf16 im2col slab, one ky band per index
    C = x_ref.shape[1]
    HW = x_ref.shape[2]
    pad = (line_ref.shape[2] - HW) // 2

    # Zero the halos every grid step (interior is rewritten per conv, halo
    # stays zero for both convs).  Scratch is per-core on megacore parts, so
    # this must NOT be gated on program_id.
    halo = jnp.zeros((C, pad), _SLAB_DTYPE)
    for b in range(bt):
        line_ref[b, :, pl.ds(0, pad)] = halo
        line_ref[b, :, pl.ds(pad + HW, pad)] = halo

    # Wrap masks, hoisted + pre-broadcast ONCE per grid step (JAX does not CSE
    # broadcast_in_dim): multiplicative 0/1 masks that kill the columns of the
    # kx=0 / kx=2 taps that would otherwise wrap across an image row.
    col_in_row = jax.lax.broadcasted_iota(jnp.int32, (C, HW), 1) % img_w
    keep_left = jnp.where(col_in_row != 0, 1.0, 0.0).astype(_SLAB_DTYPE)
    keep_right = jnp.where(col_in_row != img_w - 1, 1.0, 0.0).astype(_SLAB_DTYPE)

    def fill_line(b, src_f32):
        line_ref[b, :, pl.ds(pad, HW)] = src_f32.astype(_SLAB_DTYPE)

    def conv3x3(w_ref, b_ref):
        # 3x3 "same" conv over all `bt` images currently staged in line_ref.
        # Taps are contiguous lane slices of the zero-haloed line buffer; each
        # ky band (3 taps) is written to its col_ref band and its bf16
        # (C,3C)@(3C,bt*HW) MXU partial is issued immediately, overlapping the
        # construction of the next band.  Accumulation / bias stay in f32.
        acc = None
        for dy in range(3):
            for dx in range(3):
                off = (dy - 1) * img_w + (dx - 1)
                for b in range(bt):
                    tap = line_ref[b, :, pl.ds(pad + off, HW)]
                    if dx == 0:
                        tap = tap * keep_left
                    elif dx == 2:
                        tap = tap * keep_right
                    col_ref[dy, pl.ds(dx * C, C), pl.ds(b * HW, HW)] = tap
            part = jnp.dot(w_ref[dy], col_ref[dy],
                           preferred_element_type=jnp.float32)
            acc = part if acc is None else acc + part
        return acc + b_ref[...]                      # (C, bt*HW) f32

    # ---- conv1 = folded DEConv -------------------------------------------
    for b in range(bt):
        fill_line(b, x_ref[b])
    de = conv3x3(w1_ref, b1_ref)

    # ---- ReLU + first residual (f32); stage conv2 input -------------------
    for b in range(bt):
        res_b = jnp.maximum(de[:, b * HW:(b + 1) * HW], 0.0) + x_ref[b]
        fill_line(b, res_b)
    out = conv3x3(w2_ref, b2_ref)

    # ---- second residual (w.r.t. the block input) + store -----------------
    for b in range(bt):
        o_ref[b] = out[:, b * HW:(b + 1) * HW] + x_ref[b]


# ----------------------------------------------------------------------------
# Wrapper
# ----------------------------------------------------------------------------
def _oihw_to_bands(w_oihw):
    # (O, I, ky, kx) -> (ky, O, kx, I) -> (3, O, 3*I), bf16.
    # Band-dy rows of the im2col slab are ordered (kx, ci); weight columns of
    # each band must match that ordering.
    o, i = w_oihw.shape[0], w_oihw.shape[1]
    w = jnp.transpose(w_oihw, (2, 0, 3, 1)).reshape(3, o, 3 * i)
    return w.astype(_SLAB_DTYPE)


def _pick_batch_tile(n, c, hw, pad):
    # Largest divisor of the batch keeping the per-step VMEM footprint
    # (double-buffered f32 IO blocks + bf16 line/col scratch) comfortably
    # under the scoped limit on every TPU generation.
    per_b = (4 * c * hw * 4                      # in + out, double-buffered
             + c * (hw + 2 * pad) * 2            # bf16 line buffer
             + 9 * c * hw * 2)                   # bf16 im2col slab
    cap = max(1, min(8, (24 * 1024 * 1024) // max(per_b, 1)))
    for d in range(min(n, cap), 0, -1):
        if n % d == 0:
            return d
    return 1


def _vmem_limit_bytes(needed):
    # Generation-aware scoped-VMEM budget: grant what the kernel needs (plus
    # double-buffer headroom) but stay inside v7x's 64 MiB physical VMEM; on
    # v5e/v6e (128 MiB) raise the ceiling when the runtime exposes chip info.
    ceiling = 48 * 1024 * 1024
    get_info = getattr(pltpu, "get_tpu_info", None)
    if get_info is not None:
        try:
            ceiling = max(ceiling, int(get_info().vmem_capacity_bytes) * 3 // 4)
        except Exception:
            pass
    return int(min(max(32 * 1024 * 1024, needed * 2), ceiling))


def deblock_forward(params, x_nchw, *, batch_tile=None):
    """DEBlockTrain forward. x_nchw: (N, C, H, W) float32 -> (N, C, H, W)."""
    N, C, H, W = x_nchw.shape
    HW = H * W
    # Lane-dense layout requirements of this kernel.
    assert C % 8 == 0 and HW % 128 == 0, "C must be a multiple of 8, H*W of 128"
    # Halo must cover the largest tap offset W+1 (fixes the old W<128 limit),
    # rounded up to 128 so the interior line-buffer store stays lane-aligned.
    pad = _round_up(W + 1, 128)

    if batch_tile is None:
        batch_tile = _pick_batch_tile(N, C, HW, pad)
    assert N % batch_tile == 0, "batch_tile must divide N"
    bt = batch_tile
    # TODO(synk): for images where bt*9*C*HW bf16 no longer fits the VMEM
    # budget, tile H with a 2-row halo, grid over (N//bt, H_tiles) and mark
    # both grid axes "parallel" (keeps the fused HBM-free structure on v7x).

    x_flat = x_nchw.reshape(N, C, HW).astype(jnp.float32)
    w1b = _oihw_to_bands(params["w1"])
    w2b = _oihw_to_bands(params["w2"])
    b1 = params["b1"].reshape(C, 1).astype(jnp.float32)
    b2 = params["b2"].reshape(C, 1).astype(jnp.float32)

    needed = (4 * bt * C * HW * 4                          # double-buffered IO
              + 2 * (3 * C * 3 * C * 2 + C * 4) * 2        # weights + biases
              + bt * C * (HW + 2 * pad) * 2                # line buffer
              + 3 * 3 * C * bt * HW * 2)                   # im2col slab

    kernel = functools.partial(_deblock_kernel, img_w=W, bt=bt)
    out = pl.pallas_call(
        kernel,
        out_shape=jax.ShapeDtypeStruct((N, C, HW), jnp.float32),
        grid=(N // bt,),
        in_specs=[
            pl.BlockSpec((bt, C, HW), lambda n: (n, 0, 0)),
            pl.BlockSpec((3, C, 3 * C), lambda n: (0, 0, 0)),
            pl.BlockSpec((C, 1), lambda n: (0, 0)),
            pl.BlockSpec((3, C, 3 * C), lambda n: (0, 0, 0)),
            pl.BlockSpec((C, 1), lambda n: (0, 0)),
        ],
        out_specs=pl.BlockSpec((bt, C, HW), lambda n: (n, 0, 0)),
        scratch_shapes=[
            pltpu.VMEM((bt, C, HW + 2 * pad), _SLAB_DTYPE),  # haloed lines
            pltpu.VMEM((3, 3 * C, bt * HW), _SLAB_DTYPE),    # im2col bands
        ],
        compiler_params=_CompilerParams(
            dimension_semantics=("parallel",),               # megacore on v7x
            vmem_limit_bytes=_vmem_limit_bytes(needed)),
    )(x_flat, w1b, b1, w2b, b2)
    return out.reshape(N, C, H, W)


# ----------------------------------------------------------------------------
# Parameter construction (mirrors DEBlockTrain(default_conv, dim, 3))
# ----------------------------------------------------------------------------
def _conv2d_init(key, cin, cout, ksize):
    # nn.Conv2d default init: kaiming_uniform(a=sqrt(5)) -> bound 1/sqrt(fan_in)
    fan_in = cin * ksize * ksize
    bound = 1.0 / math.sqrt(fan_in)
    kw, kb = jax.random.split(key)
    w = jax.random.uniform(kw, (cout, cin, ksize, ksize), jnp.float32, -bound, bound)
    b = jax.random.uniform(kb, (cout,), jnp.float32, -bound, bound)
    return w, b


def init_deblock_params(key, dim):
    """DEBlockTrain params with DEConv folded into one effective 3x3 conv."""
    k = jax.random.split(key, 4)
    w11, b11 = _conv2d_init(k[0], dim, dim, 3)            # conv1_1 (Conv2d_cd)
    # conv1_2 (Conv2d_hd) wraps a Conv1d(dim, dim, 3)
    fan_in = dim * 3
    bound = 1.0 / math.sqrt(fan_in)
    k2w, k2b = jax.random.split(k[1])
    w12 = jax.random.uniform(k2w, (dim, dim, 3), jnp.float32, -bound, bound)
    b12 = jax.random.uniform(k2b, (dim,), jnp.float32, -bound, bound)
    # conv1_3 (Conv2d_vd) / conv1_4 (Conv2d_ad) parameters exist in the module
    # but do not contribute to DEConv.forward (w = w1 + w2 + w5) -> omitted.
    w15, b15 = _conv2d_init(k[2], dim, dim, 3)            # conv1_5 (plain)
    w2, b2 = _conv2d_init(k[3], dim, dim, 3)              # DEBlockTrain.conv2

    # Conv2d_cd.get_weight(): center tap -> w[4] - sum_k w[k]  (theta = 1).
    wf = w11.reshape(dim, dim, 9)
    w_cd = wf.at[:, :, 4].set(wf[:, :, 4] - wf.sum(axis=2))
    # Conv2d_hd.get_weight(): +left column (kx=0), -right column (kx=2).
    w_hd = jnp.zeros((dim, dim, 9), jnp.float32)
    w_hd = w_hd.at[:, :, jnp.array([0, 3, 6])].set(w12)
    w_hd = w_hd.at[:, :, jnp.array([2, 5, 8])].set(-w12)
    w_de = (w_cd + w_hd).reshape(dim, dim, 3, 3) + w15
    b_de = b11 + b12 + b15
    return {"w1": w_de, "b1": b_de, "w2": w2, "b2": b2}


# ----------------------------------------------------------------------------
# Pure-XLA f32 reference (for in-script verification)
# ----------------------------------------------------------------------------
def _conv3x3_ref(x, w, b):
    y = jax.lax.conv_general_dilated(
        x, w, window_strides=(1, 1), padding=((1, 1), (1, 1)),
        dimension_numbers=("NCHW", "OIHW", "NCHW"),
        precision=jax.lax.Precision.HIGHEST)
    return y + b[None, :, None, None]


def deblock_ref(params, x):
    res = jnp.maximum(_conv3x3_ref(x, params["w1"], params["b1"]), 0.0) + x
    return _conv3x3_ref(res, params["w2"], params["b2"]) + x


# ----------------------------------------------------------------------------
if __name__ == "__main__":
    N, dim, H, W = 4, 48, 16, 16          # DEBlockTrain(default_conv, dim=48, 3)
    key = jax.random.PRNGKey(0)
    kp, kx = jax.random.split(key)
    params = init_deblock_params(kp, dim)
    x = jax.random.normal(kx, (N, dim, H, W), dtype=jnp.float32)

    # batch_tile=2 -> grid=(2,): exercises both the batched matmul path and
    # multi-step grid iteration.
    fwd = jax.jit(functools.partial(deblock_forward, params, batch_tile=2))
    out = jax.block_until_ready(fwd(x))

    assert out.shape == (N, dim, H, W)
    assert bool(jnp.all(jnp.isfinite(out)))

    ref = deblock_ref(params, x)
    err = float(jnp.max(jnp.abs(out - ref)))
    # bf16 matmul operands with f32 accumulation (K = 432): expect ~1e-2 error.
    assert err < 1e-1, f"Pallas output mismatch vs XLA reference (max abs err {err})"
    print("KERNEL_OK")
</pallas_src>

<mosaic_0001>
module attributes {stable_mosaic.version = 11 : i64} {
  func.func @_deblock_kernel(%arg0: i32, %arg1: memref<2x48x256xf32, #tpu.memory_space<vmem>>, %arg2: memref<3x48x144xbf16, #tpu.memory_space<vmem>>, %arg3: memref<48x1xf32, #tpu.memory_space<vmem>>, %arg4: memref<3x48x144xbf16, #tpu.memory_space<vmem>>, %arg5: memref<48x1xf32, #tpu.memory_space<vmem>>, %arg6: memref<2x48x256xf32, #tpu.memory_space<vmem>>, %arg7: memref<2x48x512xbf16, #tpu.memory_space<vmem>>, %arg8: memref<3x144x512xbf16, #tpu.memory_space<vmem>>) attributes {dimension_semantics = [#tpu.dimension_semantics<parallel>], iteration_bounds = array<i64: 2>, scalar_prefetch = 0 : i64, scratch_operands = 2 : i64, tpu.core_type = #tpu.core_type<tc>, window_params = [{transform_indices = @transform_0, window_bounds = array<i64: 2, 48, 256>}, {pipeline_mode = #tpu.pipeline_mode<synchronous>, transform_indices = @transform_1, window_bounds = array<i64: 3, 48, 144>}, {pipeline_mode = #tpu.pipeline_mode<synchronous>, transform_indices = @transform_2, window_bounds = array<i64: 48, 1>}, {pipeline_mode = #tpu.pipeline_mode<synchronous>, transform_indices = @transform_3, window_bounds = array<i64: 3, 48, 144>}, {pipeline_mode = #tpu.pipeline_mode<synchronous>, transform_indices = @transform_4, window_bounds = array<i64: 48, 1>}, {transform_indices = @transform_5, window_bounds = array<i64: 2, 48, 256>}]} {
    %cst = arith.constant 0.000000e+00 : bf16
    %0 = vector.broadcast %cst : bf16 to vector<48x128xbf16>
    %c0 = arith.constant 0 : index
    %c0_0 = arith.constant 0 : index
    %c0_1 = arith.constant 0 : index
    %1 = vector.load %arg7[%c0, %c0_0, %c0_1] : memref<2x48x512xbf16, #tpu.memory_space<vmem>>, vector<1x48x128xbf16>
    %2 = vector.shape_cast %1 : vector<1x48x128xbf16> to vector<48x128xbf16>
    %3 = vector.shape_cast %0 : vector<48x128xbf16> to vector<1x48x128xbf16>
    tpu.vector_store %arg7[%c0, %c0_0, %c0_1], %3 {strides = array<i32>} : memref<2x48x512xbf16, #tpu.memory_space<vmem>>, vector<1x48x128xbf16>,
    %c0_2 = arith.constant 0 : index
    %c0_3 = arith.constant 0 : index
    %c384 = arith.constant 384 : index
    %4 = vector.load %arg7[%c0_2, %c0_3, %c384] : memref<2x48x512xbf16, #tpu.memory_space<vmem>>, vector<1x48x128xbf16>
    %5 = vector.shape_cast %4 : vector<1x48x128xbf16> to vector<48x128xbf16>
    %6 = vector.shape_cast %0 : vector<48x128xbf16> to vector<1x48x128xbf16>
    tpu.vector_store %arg7[%c0_2, %c0_3, %c384], %6 {strides = array<i32>} : memref<2x48x512xbf16, #tpu.memory_space<vmem>>, vector<1x48x128xbf16>,
    %c1 = arith.constant 1 : index
    %c0_4 = arith.constant 0 : index
    %c0_5 = arith.constant 0 : index
    %7 = vector.load %arg7[%c1, %c0_4, %c0_5] : memref<2x48x512xbf16, #tpu.memory_space<vmem>>, vector<1x48x128xbf16>
    %8 = vector.shape_cast %7 : vector<1x48x128xbf16> to vector<48x128xbf16>
    %9 = vector.shape_cast %0 : vector<48x128xbf16> to vector<1x48x128xbf16>
    tpu.vector_store %arg7[%c1, %c0_4, %c0_5], %9 {strides = array<i32>} : memref<2x48x512xbf16, #tpu.memory_space<vmem>>, vector<1x48x128xbf16>,
    %c1_6 = arith.constant 1 : index
    %c0_7 = arith.constant 0 : index
    %c384_8 = arith.constant 384 : index
    %10 = vector.load %arg7[%c1_6, %c0_7, %c384_8] : memref<2x48x512xbf16, #tpu.memory_space<vmem>>, vector<1x48x128xbf16>
    %11 = vector.shape_cast %10 : vector<1x48x128xbf16> to vector<48x128xbf16>
    %12 = vector.shape_cast %0 : vector<48x128xbf16> to vector<1x48x128xbf16>
    tpu.vector_store %arg7[%c1_6, %c0_7, %c384_8], %12 {strides = array<i32>} : memref<2x48x512xbf16, #tpu.memory_space<vmem>>, vector<1x48x128xbf16>,
    %13 = tpu.iota {dimensions = array<i32: 1>} : vector<48x256xi32>
    %c16_i32 = arith.constant 16 : i32
    %c0_i32 = arith.constant 0 : i32
    %14 = arith.cmpi eq, %c16_i32, %c0_i32 : i32
    %c1_i32 = arith.constant 1 : i32
    %15 = arith.select %14, %c1_i32, %c16_i32 : i32
    %16 = vector.broadcast %15 : i32 to vector<48x256xi32>
    %17 = arith.remsi %13, %16 : vector<48x256xi32>
    %c0_i32_9 = arith.constant 0 : i32
    %18 = vector.broadcast %c0_i32_9 : i32 to vector<48x256xi32>
    %19 = arith.cmpi ne, %17, %18 : vector<48x256xi32>
    %c0_i32_10 = arith.constant 0 : i32
    %20 = vector.broadcast %c0_i32_10 : i32 to vector<48x256xi32>
    %21 = arith.cmpi slt, %17, %20 : vector<48x256xi32>
    %c0_i32_11 = arith.constant 0 : i32
    %22 = arith.cmpi slt, %15, %c0_i32_11 : i32
    %23 = vector.broadcast %22 : i1 to vector<48x256xi1>
    %24 = vector.broadcast %23 : vector<48x256xi1> to vector<48x256xi1>
    %25 = arith.xori %21, %24 : vector<48x256xi1>
    %26 = arith.andi %25, %19 : vector<48x256xi1>
    %27 = vector.broadcast %15 : i32 to vector<48x256xi32>
    %28 = arith.addi %17, %27 : vector<48x256xi32>
    %29 = arith.select %26, %28, %17 : vector<48x256xi1>, vector<48x256xi32>
    %c0_i32_12 = arith.constant 0 : i32
    %30 = vector.broadcast %c0_i32_12 : i32 to vector<48x256xi32>
    %31 = arith.cmpi ne, %29, %30 : vector<48x256xi32>
    %cst_13 = arith.constant 1.000000e+00 : f32
    %cst_14 = arith.constant 0.000000e+00 : f32
    %32 = vector.broadcast %cst_13 : f32 to vector<48x256xf32>
    %33 = vector.broadcast %cst_14 : f32 to vector<48x256xf32>
    %34 = arith.select %31, %32, %33 : vector<48x256xi1>, vector<48x256xf32>
    %35 = arith.truncf %34 : vector<48x256xf32> to vector<48x256xbf16>
    %c15_i32 = arith.constant 15 : i32
    %36 = vector.broadcast %c15_i32 : i32 to vector<48x256xi32>
    %37 = arith.cmpi ne, %29, %36 : vector<48x256xi32>
    %cst_15 = arith.constant 1.000000e+00 : f32
    %cst_16 = arith.constant 0.000000e+00 : f32
    %38 = vector.broadcast %cst_15 : f32 to vector<48x256xf32>
    %39 = vector.broadcast %cst_16 : f32 to vector<48x256xf32>
    %40 = arith.select %37, %38, %39 : vector<48x256xi1>, vector<48x256xf32>
    %41 = arith.truncf %40 : vector<48x256xf32> to vector<48x256xbf16>
    %c0_17 = arith.constant 0 : index
    %c0_18 = arith.constant 0 : index
    %c0_19 = arith.constant 0 : index
    %42 = vector.load %arg1[%c0_17, %c0_18, %c0_19] : memref<2x48x256xf32, #tpu.memory_space<vmem>>, vector<1x48x256xf32>
    %43 = vector.shape_cast %42 : vector<1x48x256xf32> to vector<48x256xf32>
    %44 = arith.truncf %43 : vector<48x256xf32> to vector<48x256xbf16>
    %c0_20 = arith.constant 0 : index
    %c0_21 = arith.constant 0 : index
    %c128 = arith.constant 128 : index
    %45 = vector.load %arg7[%c0_20, %c0_21, %c128] : memref<2x48x512xbf16, #tpu.memory_space<vmem>>, vector<1x48x256xbf16>
    %46 = vector.shape_cast %45 : vector<1x48x256xbf16> to vector<48x256xbf16>
    %47 = vector.shape_cast %44 : vector<48x256xbf16> to vector<1x48x256xbf16>
    tpu.vector_store %arg7[%c0_20, %c0_21, %c128], %47 {strides = array<i32>} : memref<2x48x512xbf16, #tpu.memory_space<vmem>>, vector<1x48x256xbf16>,
    %c1_22 = arith.constant 1 : index
    %c0_23 = arith.constant 0 : index
    %c0_24 = arith.constant 0 : index
    %48 = vector.load %arg1[%c1_22, %c0_23, %c0_24] : memref<2x48x256xf32, #tpu.memory_space<vmem>>, vector<1x48x256xf32>
    %49 = vector.shape_cast %48 : vector<1x48x256xf32> to vector<48x256xf32>
    %50 = arith.truncf %49 : vector<48x256xf32> to vector<48x256xbf16>
    %c1_25 = arith.constant 1 : index
    %c0_26 = arith.constant 0 : index
    %c128_27 = arith.constant 128 : index
    %51 = vector.load %arg7[%c1_25, %c0_26, %c128_27] : memref<2x48x512xbf16, #tpu.memory_space<vmem>>, vector<1x48x256xbf16>
    %52 = vector.shape_cast %51 : vector<1x48x256xbf16> to vector<48x256xbf16>
    %53 = vector.shape_cast %50 : vector<48x256xbf16> to vector<1x48x256xbf16>
    tpu.vector_store %arg7[%c1_25, %c0_26, %c128_27], %53 {strides = array<i32>} : memref<2x48x512xbf16, #tpu.memory_space<vmem>>, vector<1x48x256xbf16>,
    %c0_28 = arith.constant 0 : index
    %c0_29 = arith.constant 0 : index
    %c111 = arith.constant 111 : index
    %54 = vector.load %arg7[%c0_28, %c0_29, %c111] : memref<2x48x512xbf16, #tpu.memory_space<vmem>>, vector<1x48x256xbf16>
    %55 = vector.shape_cast %54 : vector<1x48x256xbf16> to vector<48x256xbf16>
    %56 = arith.mulf %55, %35 : vector<48x256xbf16>
    %c0_30 = arith.constant 0 : index
    %c0_31 = arith.constant 0 : index
    %c0_32 = arith.constant 0 : index
    %57 = vector.load %arg8[%c0_30, %c0_31, %c0_32] : memref<3x144x512xbf16, #tpu.memory_space<vmem>>, vector<1x48x256xbf16>
    %58 = vector.shape_cast %57 : vector<1x48x256xbf16> to vector<48x256xbf16>
    %59 = vector.shape_cast %56 : vector<48x256xbf16> to vector<1x48x256xbf16>
    tpu.vector_store %arg8[%c0_30, %c0_31, %c0_32], %59 {strides = array<i32>} : memref<3x144x512xbf16, #tpu.memory_space<vmem>>, vector<1x48x256xbf16>,
    %c1_33 = arith.constant 1 : index
    %c0_34 = arith.constant 0 : index
    %c111_35 = arith.constant 111 : index
    %60 = vector.load %arg7[%c1_33, %c0_34, %c111_35] : memref<2x48x512xbf16, #tpu.memory_space<vmem>>, vector<1x48x256xbf16>
    %61 = vector.shape_cast %60 : vector<1x48x256xbf16> to vector<48x256xbf16>
    %62 = arith.mulf %61, %35 : vector<48x256xbf16>
    %c0_36 = arith.constant 0 : index
    %c0_37 = arith.constant 0 : index
    %c256 = arith.constant 256 : index
    %63 = vector.load %arg8[%c0_36, %c0_37, %c256] : memref<3x144x512xbf16, #tpu.memory_space<vmem>>, vector<1x48x256xbf16>
    %64 = vector.shape_cast %63 : vector<1x48x256xbf16> to vector<48x256xbf16>
    %65 = vector.shape_cast %62 : vector<48x256xbf16> to vector<1x48x256xbf16>
    tpu.vector_store %arg8[%c0_36, %c0_37, %c256], %65 {strides = array<i32>} : memref<3x144x512xbf16, #tpu.memory_space<vmem>>, vector<1x48x256xbf16>,
    %c0_38 = arith.constant 0 : index
    %c0_39 = arith.constant 0 : index
    %c112 = arith.constant 112 : index
    %66 = vector.load %arg7[%c0_38, %c0_39, %c112] : memref<2x48x512xbf16, #tpu.memory_space<vmem>>, vector<1x48x256xbf16>
    %67 = vector.shape_cast %66 : vector<1x48x256xbf16> to vector<48x256xbf16>
    %c0_40 = arith.constant 0 : index
    %c48 = arith.constant 48 : index
    %c0_41 = arith.constant 0 : index
    %68 = vector.load %arg8[%c0_40, %c48, %c0_41] : memref<3x144x512xbf16, #tpu.memory_space<vmem>>, vector<1x48x256xbf16>
    %69 = vector.shape_cast %68 : vector<1x48x256xbf16> to vector<48x256xbf16>
    %70 = vector.shape_cast %67 : vector<48x256xbf16> to vector<1x48x256xbf16>
    tpu.vector_store %arg8[%c0_40, %c48, %c0_41], %70 {strides = array<i32>} : memref<3x144x512xbf16, #tpu.memory_space<vmem>>, vector<1x48x256xbf16>,
    %c1_42 = arith.constant 1 : index
    %c0_43 = arith.constant 0 : index
    %c112_44 = arith.constant 112 : index
    %71 = vector.load %arg7[%c1_42, %c0_43, %c112_44] : memref<2x48x512xbf16, #tpu.memory_space<vmem>>, vector<1x48x256xbf16>
    %72 = vector.shape_cast %71 : vector<1x48x256xbf16> to vector<48x256xbf16>
    %c0_45 = arith.constant 0 : index
    %c48_46 = arith.constant 48 : index
    %c256_47 = arith.constant 256 : index
    %73 = vector.load %arg8[%c0_45, %c48_46, %c256_47] : memref<3x144x512xbf16, #tpu.memory_space<vmem>>, vector<1x48x256xbf16>
    %74 = vector.shape_cast %73 : vector<1x48x256xbf16> to vector<48x256xbf16>
    %75 = vector.shape_cast %72 : vector<48x256xbf16> to vector<1x48x256xbf16>
    tpu.vector_store %arg8[%c0_45, %c48_46, %c256_47], %75 {strides = array<i32>} : memref<3x144x512xbf16, #tpu.memory_space<vmem>>, vector<1x48x256xbf16>,
    %c0_48 = arith.constant 0 : index
    %c0_49 = arith.constant 0 : index
    %c113 = arith.constant 113 : index
    %76 = vector.load %arg7[%c0_48, %c0_49, %c113] : memref<2x48x512xbf16, #tpu.memory_space<vmem>>, vector<1x48x256xbf16>
    %77 = vector.shape_cast %76 : vector<1x48x256xbf16> to vector<48x256xbf16>
    %78 = arith.mulf %77, %41 : vector<48x256xbf16>
    %c0_50 = arith.constant 0 : index
    %c96 = arith.constant 96 : index
    %c0_51 = arith.constant 0 : index
    %79 = vector.load %arg8[%c0_50, %c96, %c0_51] : memref<3x144x512xbf16, #tpu.memory_space<vmem>>, vector<1x48x256xbf16>
    %80 = vector.shape_cast %79 : vector<1x48x256xbf16> to vector<48x256xbf16>
    %81 = vector.shape_cast %78 : vector<48x256xbf16> to vector<1x48x256xbf16>
    tpu.vector_store %arg8[%c0_50, %c96, %c0_51], %81 {strides = array<i32>} : memref<3x144x512xbf16, #tpu.memory_space<vmem>>, vector<1x48x256xbf16>,
    %c1_52 = arith.constant 1 : index
    %c0_53 = arith.constant 0 : index
    %c113_54 = arith.constant 113 : index
    %82 = vector.load %arg7[%c1_52, %c0_53, %c113_54] : memref<2x48x512xbf16, #tpu.memory_space<vmem>>, vector<1x48x256xbf16>
    %83 = vector.shape_cast %82 : vector<1x48x256xbf16> to vector<48x256xbf16>
    %84 = arith.mulf %83, %41 : vector<48x256xbf16>
    %c0_55 = arith.constant 0 : index
    %c96_56 = arith.constant 96 : index
    %c256_57 = arith.constant 256 : index
    %85 = vector.load %arg8[%c0_55, %c96_56, %c256_57] : memref<3x144x512xbf16, #tpu.memory_space<vmem>>, vector<1x48x256xbf16>
    %86 = vector.shape_cast %85 : vector<1x48x256xbf16> to vector<48x256xbf16>
    %87 = vector.shape_cast %84 : vector<48x256xbf16> to vector<1x48x256xbf16>
    tpu.vector_store %arg8[%c0_55, %c96_56, %c256_57], %87 {strides = array<i32>} : memref<3x144x512xbf16, #tpu.memory_space<vmem>>, vector<1x48x256xbf16>,
    %c0_58 = arith.constant 0 : index
    %c0_59 = arith.constant 0 : index
    %c0_60 = arith.constant 0 : index
    %88 = vector.load %arg2[%c0_58, %c0_59, %c0_60] : memref<3x48x144xbf16, #tpu.memory_space<vmem>>, vector<1x48x144xbf16>
    %89 = vector.shape_cast %88 : vector<1x48x144xbf16> to vector<48x144xbf16>
    %c0_61 = arith.constant 0 : index
    %c0_62 = arith.constant 0 : index
    %c0_63 = arith.constant 0 : index
    %90 = vector.load %arg8[%c0_61, %c0_62, %c0_63] : memref<3x144x512xbf16, #tpu.memory_space<vmem>>, vector<1x144x512xbf16>
    %91 = vector.shape_cast %90 : vector<1x144x512xbf16> to vector<144x512xbf16>
    %cst_64 = arith.constant dense<0.000000e+00> : vector<48x512xf32>
    %92 = tpu.matmul %89, %91, %cst_64 {dimension_numbers = #tpu.dot_dimension_numbers<[1], [0], [0], [1], [0, 0, 1, 1], [], []>} : vector<48x144xbf16>, vector<144x512xbf16>, vector<48x512xf32> -> vector<48x512xf32>
    %c0_65 = arith.constant 0 : index
    %c0_66 = arith.constant 0 : index
    %c127 = arith.constant 127 : index
    %93 = vector.load %arg7[%c0_65, %c0_66, %c127] : memref<2x48x512xbf16, #tpu.memory_space<vmem>>, vector<1x48x256xbf16>
    %94 = vector.shape_cast %93 : vector<1x48x256xbf16> to vector<48x256xbf16>
    %95 = arith.mulf %94, %35 : vector<48x256xbf16>
    %c1_67 = arith.constant 1 : index
    %c0_68 = arith.constant 0 : index
    %c0_69 = arith.constant 0 : index
    %96 = vector.load %arg8[%c1_67, %c0_68, %c0_69] : memref<3x144x512xbf16, #tpu.memory_space<vmem>>, vector<1x48x256xbf16>
    %97 = vector.shape_cast %96 : vector<1x48x256xbf16> to vector<48x256xbf16>
    %98 = vector.shape_cast %95 : vector<48x256xbf16> to vector<1x48x256xbf16>
    tpu.vector_store %arg8[%c1_67, %c0_68, %c0_69], %98 {strides = array<i32>} : memref<3x144x512xbf16, #tpu.memory_space<vmem>>, vector<1x48x256xbf16>,
    %c1_70 = arith.constant 1 : index
    %c0_71 = arith.constant 0 : index
    %c127_72 = arith.constant 127 : index
    %99 = vector.load %arg7[%c1_70, %c0_71, %c127_72] : memref<2x48x512xbf16, #tpu.memory_space<vmem>>, vector<1x48x256xbf16>
    %100 = vector.shape_cast %99 : vector<1x48x256xbf16> to vector<48x256xbf16>
    %101 = arith.mulf %100, %35 : vector<48x256xbf16>
    %c1_73 = arith.constant 1 : index
    %c0_74 = arith.constant 0 : index
    %c256_75 = arith.constant 256 : index
    %102 = vector.load %arg8[%c1_73, %c0_74, %c256_75] : memref<3x144x512xbf16, #tpu.memory_space<vmem>>, vector<1x48x256xbf16>
    %103 = vector.shape_cast %102 : vector<1x48x256xbf16> to vector<48x256xbf16>
    %104 = vector.shape_cast %101 : vector<48x256xbf16> to vector<1x48x256xbf16>
    tpu.vector_store %arg8[%c1_73, %c0_74, %c256_75], %104 {strides = array<i32>} : memref<3x144x512xbf16, #tpu.memory_space<vmem>>, vector<1x48x256xbf16>,
    %c0_76 = arith.constant 0 : index
    %c0_77 = arith.constant 0 : index
    %c128_78 = arith.constant 128 : index
    %105 = vector.load %arg7[%c0_76, %c0_77, %c128_78] : memref<2x48x512xbf16, #tpu.memory_space<vmem>>, vector<1x48x256xbf16>
    %106 = vector.shape_cast %105 : vector<1x48x256xbf16> to vector<48x256xbf16>
    %c1_79 = arith.constant 1 : index
    %c48_80 = arith.constant 48 : index
    %c0_81 = arith.constant 0 : index
    %107 = vector.load %arg8[%c1_79, %c48_80, %c0_81] : memref<3x144x512xbf16, #tpu.memory_space<vmem>>, vector<1x48x256xbf16>
    %108 = vector.shape_cast %107 : vector<1x48x256xbf16> to vector<48x256xbf16>
    %109 = vector.shape_cast %106 : vector<48x256xbf16> to vector<1x48x256xbf16>
    tpu.vector_store %arg8[%c1_79, %c48_80, %c0_81], %109 {strides = array<i32>} : memref<3x144x512xbf16, #tpu.memory_space<vmem>>, vector<1x48x256xbf16>,
    %c1_82 = arith.constant 1 : index
    %c0_83 = arith.constant 0 : index
    %c128_84 = arith.constant 128 : index
    %110 = vector.load %arg7[%c1_82, %c0_83, %c128_84] : memref<2x48x512xbf16, #tpu.memory_space<vmem>>, vector<1x48x256xbf16>
    %111 = vector.shape_cast %110 : vector<1x48x256xbf16> to vector<48x256xbf16>
    %c1_85 = arith.constant 1 : index
    %c48_86 = arith.constant 48 : index
    %c256_87 = arith.constant 256 : index
    %112 = vector.load %arg8[%c1_85, %c48_86, %c256_87] : memref<3x144x512xbf16, #tpu.memory_space<vmem>>, vector<1x48x256xbf16>
    %113 = vector.shape_cast %112 : vector<1x48x256xbf16> to vector<48x256xbf16>
    %114 = vector.shape_cast %111 : vector<48x256xbf16> to vector<1x48x256xbf16>
    tpu.vector_store %arg8[%c1_85, %c48_86, %c256_87], %114 {strides = array<i32>} : memref<3x144x512xbf16, #tpu.memory_space<vmem>>, vector<1x48x256xbf16>,
    %c0_88 = arith.constant 0 : index
    %c0_89 = arith.constant 0 : index
    %c129 = arith.constant 129 : index
    %115 = vector.load %arg7[%c0_88, %c0_89, %c129] : memref<2x48x512xbf16, #tpu.memory_space<vmem>>, vector<1x48x256xbf16>
    %116 = vector.shape_cast %115 : vector<1x48x256xbf16> to vector<48x256xbf16>
    %117 = arith.mulf %116, %41 : vector<48x256xbf16>
    %c1_90 = arith.constant 1 : index
    %c96_91 = arith.constant 96 : index
    %c0_92 = arith.constant 0 : index
    %118 = vector.load %arg8[%c1_90, %c96_91, %c0_92] : memref<3x144x512xbf16, #tpu.memory_space<vmem>>, vector<1x48x256xbf16>
    %119 = vector.shape_cast %118 : vector<1x48x256xbf16> to vector<48x256xbf16>
    %120 = vector.shape_cast %117 : vector<48x256xbf16> to vector<1x48x256xbf16>
    tpu.vector_store %arg8[%c1_90, %c96_91, %c0_92], %120 {strides = array<i32>} : memref<3x144x512xbf16, #tpu.memory_space<vmem>>, vector<1x48x256xbf16>,
    %c1_93 = arith.constant 1 : index
    %c0_94 = arith.constant 0 : index
    %c129_95 = arith.constant 129 : index
    %121 = vector.load %arg7[%c1_93, %c0_94, %c129_95] : memref<2x48x512xbf16, #tpu.memory_space<vmem>>, vector<1x48x256xbf16>
    %122 = vector.shape_cast %121 : vector<1x48x256xbf16> to vector<48x256xbf16>
    %123 = arith.mulf %122, %41 : vector<48x256xbf16>
    %c1_96 = arith.constant 1 : index
    %c96_97 = arith.constant 96 : index
    %c256_98 = arith.constant 256 : index
    %124 = vector.load %arg8[%c1_96, %c96_97, %c256_98] : memref<3x144x512xbf16, #tpu.memory_space<vmem>>, vector<1x48x256xbf16>
    %125 = vector.shape_cast %124 : vector<1x48x256xbf16> to vector<48x256xbf16>
    %126 = vector.shape_cast %123 : vector<48x256xbf16> to vector<1x48x256xbf16>
    tpu.vector_store %arg8[%c1_96, %c96_97, %c256_98], %126 {strides = array<i32>} : memref<3x144x512xbf16, #tpu.memory_space<vmem>>, vector<1x48x256xbf16>,
    %c1_99 = arith.constant 1 : index
    %c0_100 = arith.constant 0 : index
    %c0_101 = arith.constant 0 : index
    %127 = vector.load %arg2[%c1_99, %c0_100, %c0_101] : memref<3x48x144xbf16, #tpu.memory_space<vmem>>, vector<1x48x144xbf16>
    %128 = vector.shape_cast %127 : vector<1x48x144xbf16> to vector<48x144xbf16>
    %c1_102 = arith.constant 1 : index
    %c0_103 = arith.constant 0 : index
    %c0_104 = arith.constant 0 : index
    %129 = vector.load %arg8[%c1_102, %c0_103, %c0_104] : memref<3x144x512xbf16, #tpu.memory_space<vmem>>, vector<1x144x512xbf16>
    %130 = vector.shape_cast %129 : vector<1x144x512xbf16> to vector<144x512xbf16>
    %cst_105 = arith.constant dense<0.000000e+00> : vector<48x512xf32>
    %131 = tpu.matmul %128, %130, %cst_105 {dimension_numbers = #tpu.dot_dimension_numbers<[1], [0], [0], [1], [0, 0, 1, 1], [], []>} : vector<48x144xbf16>, vector<144x512xbf16>, vector<48x512xf32> -> vector<48x512xf32>
    %132 = arith.addf %92, %131 : vector<48x512xf32>
    %c0_106 = arith.constant 0 : index
    %c0_107 = arith.constant 0 : index
    %c143 = arith.constant 143 : index
    %133 = vector.load %arg7[%c0_106, %c0_107, %c143] : memref<2x48x512xbf16, #tpu.memory_space<vmem>>, vector<1x48x256xbf16>
    %134 = vector.shape_cast %133 : vector<1x48x256xbf16> to vector<48x256xbf16>
    %135 = arith.mulf %134, %35 : vector<48x256xbf16>
    %c2 = arith.constant 2 : index
    %c0_108 = arith.constant 0 : index
    %c0_109 = arith.constant 0 : index
    %136 = vector.load %arg8[%c2, %c0_108, %c0_109] : memref<3x144x512xbf16, #tpu.memory_space<vmem>>, vector<1x48x256xbf16>
    %137 = vector.shape_cast %136 : vector<1x48x256xbf16> to vector<48x256xbf16>
    %138 = vector.shape_cast %135 : vector<48x256xbf16> to vector<1x48x256xbf16>
    tpu.vector_store %arg8[%c2, %c0_108, %c0_109], %138 {strides = array<i32>} : memref<3x144x512xbf16, #tpu.memory_space<vmem>>, vector<1x48x256xbf16>,
    %c1_110 = arith.constant 1 : index
    %c0_111 = arith.constant 0 : index
    %c143_112 = arith.constant 143 : index
    %139 = vector.load %arg7[%c1_110, %c0_111, %c143_112] : memref<2x48x512xbf16, #tpu.memory_space<vmem>>, vector<1x48x256xbf16>
    %140 = vector.shape_cast %139 : vector<1x48x256xbf16> to vector<48x256xbf16>
    %141 = arith.mulf %140, %35 : vector<48x256xbf16>
    %c2_113 = arith.constant 2 : index
    %c0_114 = arith.constant 0 : index
    %c256_115 = arith.constant 256 : index
    %142 = vector.load %arg8[%c2_113, %c0_114, %c256_115] : memref<3x144x512xbf16, #tpu.memory_space<vmem>>, vector<1x48x256xbf16>
    %143 = vector.shape_cast %142 : vector<1x48x256xbf16> to vector<48x256xbf16>
    %144 = vector.shape_cast %141 : vector<48x256xbf16> to vector<1x48x256xbf16>
    tpu.vector_store %arg8[%c2_113, %c0_114, %c256_115], %144 {strides = array<i32>} : memref<3x144x512xbf16, #tpu.memory_space<vmem>>, vector<1x48x256xbf16>,
    %c0_116 = arith.constant 0 : index
    %c0_117 = arith.constant 0 : index
    %c144 = arith.constant 144 : index
    %145 = vector.load %arg7[%c0_116, %c0_117, %c144] : memref<2x48x512xbf16, #tpu.memory_space<vmem>>, vector<1x48x256xbf16>
    %146 = vector.shape_cast %145 : vector<1x48x256xbf16> to vector<48x256xbf16>
    %c2_118 = arith.constant 2 : index
    %c48_119 = arith.constant 48 : index
    %c0_120 = arith.constant 0 : index
    %147 = vector.load %arg8[%c2_118, %c48_119, %c0_120] : memref<3x144x512xbf16, #tpu.memory_space<vmem>>, vector<1x48x256xbf16>
    %148 = vector.shape_cast %147 : vector<1x48x256xbf16> to vector<48x256xbf16>
    %149 = vector.shape_cast %146 : vector<48x256xbf16> to vector<1x48x256xbf16>
    tpu.vector_store %arg8[%c2_118, %c48_119, %c0_120], %149 {strides = array<i32>} : memref<3x144x512xbf16, #tpu.memory_space<vmem>>, vector<1x48x256xbf16>,
    %c1_121 = arith.constant 1 : index
    %c0_122 = arith.constant 0 : index
    %c144_123 = arith.constant 144 : index
    %150 = vector.load %arg7[%c1_121, %c0_122, %c144_123] : memref<2x48x512xbf16, #tpu.memory_space<vmem>>, vector<1x48x256xbf16>
    %151 = vector.shape_cast %150 : vector<1x48x256xbf16> to vector<48x256xbf16>
    %c2_124 = arith.constant 2 : index
    %c48_125 = arith.constant 48 : index
    %c256_126 = arith.constant 256 : index
    %152 = vector.load %arg8[%c2_124, %c48_125, %c256_126] : memref<3x144x512xbf16, #tpu.memory_space<vmem>>, vector<1x48x256xbf16>
    %153 = vector.shape_cast %152 : vector<1x48x256xbf16> to vector<48x256xbf16>
    %154 = vector.shape_cast %151 : vector<48x256xbf16> to vector<1x48x256xbf16>
    tpu.vector_store %arg8[%c2_124, %c48_125, %c256_126], %154 {strides = array<i32>} : memref<3x144x512xbf16, #tpu.memory_space<vmem>>, vector<1x48x256xbf16>,
    %c0_127 = arith.constant 0 : index
    %c0_128 = arith.constant 0 : index
    %c145 = arith.constant 145 : index
    %155 = vector.load %arg7[%c0_127, %c0_128, %c145] : memref<2x48x512xbf16, #tpu.memory_space<vmem>>, vector<1x48x256xbf16>
    %156 = vector.shape_cast %155 : vector<1x48x256xbf16> to vector<48x256xbf16>
    %157 = arith.mulf %156, %41 : vector<48x256xbf16>
    %c2_129 = arith.constant 2 : index
    %c96_130 = arith.constant 96 : index
    %c0_131 = arith.constant 0 : index
    %158 = vector.load %arg8[%c2_129, %c96_130, %c0_131] : memref<3x144x512xbf16, #tpu.memory_space<vmem>>, vector<1x48x256xbf16>
    %159 = vector.shape_cast %158 : vector<1x48x256xbf16> to vector<48x256xbf16>
    %160 = vector.shape_cast %157 : vector<48x256xbf16> to vector<1x48x256xbf16>
    tpu.vector_store %arg8[%c2_129, %c96_130, %c0_131], %160 {strides = array<i32>} : memref<3x144x512xbf16, #tpu.memory_space<vmem>>, vector<1x48x256xbf16>,
    %c1_132 = arith.constant 1 : index
    %c0_133 = arith.constant 0 : index
    %c145_134 = arith.constant 145 : index
    %161 = vector.load %arg7[%c1_132, %c0_133, %c145_134] : memref<2x48x512xbf16, #tpu.memory_space<vmem>>, vector<1x48x256xbf16>
    %162 = vector.shape_cast %161 : vector<1x48x256xbf16> to vector<48x256xbf16>
    %163 = arith.mulf %162, %41 : vector<48x256xbf16>
    %c2_135 = arith.constant 2 : index
    %c96_136 = arith.constant 96 : index
    %c256_137 = arith.constant 256 : index
    %164 = vector.load %arg8[%c2_135, %c96_136, %c256_137] : memref<3x144x512xbf16, #tpu.memory_space<vmem>>, vector<1x48x256xbf16>
    %165 = vector.shape_cast %164 : vector<1x48x256xbf16> to vector<48x256xbf16>
    %166 = vector.shape_cast %163 : vector<48x256xbf16> to vector<1x48x256xbf16>
    tpu.vector_store %arg8[%c2_135, %c96_136, %c256_137], %166 {strides = array<i32>} : memref<3x144x512xbf16, #tpu.memory_space<vmem>>, vector<1x48x256xbf16>,
    %c2_138 = arith.constant 2 : index
    %c0_139 = arith.constant 0 : index
    %c0_140 = arith.constant 0 : index
    %167 = vector.load %arg2[%c2_138, %c0_139, %c0_140] : memref<3x48x144xbf16, #tpu.memory_space<vmem>>, vector<1x48x144xbf16>
    %168 = vector.shape_cast %167 : vector<1x48x144xbf16> to vector<48x144xbf16>
    %c2_141 = arith.constant 2 : index
    %c0_142 = arith.constant 0 : index
    %c0_143 = arith.constant 0 : index
    %169 = vector.load %arg8[%c2_141, %c0_142, %c0_143] : memref<3x144x512xbf16, #tpu.memory_space<vmem>>, vector<1x144x512xbf16>
    %170 = vector.shape_cast %169 : vector<1x144x512xbf16> to vector<144x512xbf16>
    %cst_144 = arith.constant dense<0.000000e+00> : vector<48x512xf32>
    %171 = tpu.matmul %168, %170, %cst_144 {dimension_numbers = #tpu.dot_dimension_numbers<[1], [0], [0], [1], [0, 0, 1, 1], [], []>} : vector<48x144xbf16>, vector<144x512xbf16>, vector<48x512xf32> -> vector<48x512xf32>
    %172 = arith.addf %132, %171 : vector<48x512xf32>
    %c0_145 = arith.constant 0 : index
    %c0_146 = arith.constant 0 : index
    %173 = vector.load %arg3[%c0_145, %c0_146] : memref<48x1xf32, #tpu.memory_space<vmem>>, vector<48x1xf32>
    %174 = vector.broadcast %173 : vector<48x1xf32> to vector<48x512xf32>
    %175 = arith.addf %172, %174 : vector<48x512xf32>
    %176 = vector.extract_strided_slice %175 {offsets = [0, 0], sizes = [48, 256], strides = [1, 1]} : vector<48x512xf32> to vector<48x256xf32>
    %cst_147 = arith.constant 0.000000e+00 : f32
    %177 = vector.broadcast %cst_147 : f32 to vector<48x256xf32>
    %178 = arith.maximumf %176, %177 : vector<48x256xf32>
    %c0_148 = arith.constant 0 : index
    %c0_149 = arith.constant 0 : index
    %c0_150 = arith.constant 0 : index
    %179 = vector.load %arg1[%c0_148, %c0_149, %c0_150] : memref<2x48x256xf32, #tpu.memory_space<vmem>>, vector<1x48x256xf32>
    %180 = vector.shape_cast %179 : vector<1x48x256xf32> to vector<48x256xf32>
    %181 = arith.addf %178, %180 : vector<48x256xf32>
    %182 = arith.truncf %181 : vector<48x256xf32> to vector<48x256xbf16>
    %c0_151 = arith.constant 0 : index
    %c0_152 = arith.constant 0 : index
    %c128_153 = arith.constant 128 : index
    %183 = vector.load %arg7[%c0_151, %c0_152, %c128_153] : memref<2x48x512xbf16, #tpu.memory_space<vmem>>, vector<1x48x256xbf16>
    %184 = vector.shape_cast %183 : vector<1x48x256xbf16> to vector<48x256xbf16>
    %185 = vector.shape_cast %182 : vector<48x256xbf16> to vector<1x48x256xbf16>
    tpu.vector_store %arg7[%c0_151, %c0_152, %c128_153], %185 {strides = array<i32>} : memref<2x48x512xbf16, #tpu.memory_space<vmem>>, vector<1x48x256xbf16>,
    %186 = vector.extract_strided_slice %175 {offsets = [0, 256], sizes = [48, 256], strides = [1, 1]} : vector<48x512xf32> to vector<48x256xf32>
    %cst_154 = arith.constant 0.000000e+00 : f32
    %187 = vector.broadcast %cst_154 : f32 to vector<48x256xf32>
    %188 = arith.maximumf %186, %187 : vector<48x256xf32>
    %c1_155 = arith.constant 1 : index
    %c0_156 = arith.constant 0 : index
    %c0_157 = arith.constant 0 : index
    %189 = vector.load %arg1[%c1_155, %c0_156, %c0_157] : memref<2x48x256xf32, #tpu.memory_space<vmem>>, vector<1x48x256xf32>
    %190 = vector.shape_cast %189 : vector<1x48x256xf32> to vector<48x256xf32>
    %191 = arith.addf %188, %190 : vector<48x256xf32>
    %192 = arith.truncf %191 : vector<48x256xf32> to vector<48x256xbf16>
    %c1_158 = arith.constant 1 : index
    %c0_159 = arith.constant 0 : index
    %c128_160 = arith.constant 128 : index
    %193 = vector.load %arg7[%c1_158, %c0_159, %c128_160] : memref<2x48x512xbf16, #tpu.memory_space<vmem>>, vector<1x48x256xbf16>
    %194 = vector.shape_cast %193 : vector<1x48x256xbf16> to vector<48x256xbf16>
    %195 = vector.shape_cast %192 : vector<48x256xbf16> to vector<1x48x256xbf16>
    tpu.vector_store %arg7[%c1_158, %c0_159, %c128_160], %195 {strides = array<i32>} : memref<2x48x512xbf16, #tpu.memory_space<vmem>>, vector<1x48x256xbf16>,
    %c0_161 = arith.constant 0 : index
    %c0_162 = arith.constant 0 : index
    %c111_163 = arith.constant 111 : index
    %196 = vector.load %arg7[%c0_161, %c0_162, %c111_163] : memref<2x48x512xbf16, #tpu.memory_space<vmem>>, vector<1x48x256xbf16>
    %197 = vector.shape_cast %196 : vector<1x48x256xbf16> to vector<48x256xbf16>
    %198 = arith.mulf %197, %35 : vector<48x256xbf16>
    %c0_164 = arith.constant 0 : index
    %c0_165 = arith.constant 0 : index
    %c0_166 = arith.constant 0 : index
    %199 = vector.load %arg8[%c0_164, %c0_165, %c0_166] : memref<3x144x512xbf16, #tpu.memory_space<vmem>>, vector<1x48x256xbf16>
    %200 = vector.shape_cast %199 : vector<1x48x256xbf16> to vector<48x256xbf16>
    %201 = vector.shape_cast %198 : vector<48x256xbf16> to vector<1x48x256xbf16>
    tpu.vector_store %arg8[%c0_164, %c0_165, %c0_166], %201 {strides = array<i32>} : memref<3x144x512xbf16, #tpu.memory_space<vmem>>, vector<1x48x256xbf16>,
    %c1_167 = arith.constant 1 : index
    %c0_168 = arith.constant 0 : index
    %c111_169 = arith.constant 111 : index
    %202 = vector.load %arg7[%c1_167, %c0_168, %c111_169] : memref<2x48x512xbf16, #tpu.memory_space<vmem>>, vector<1x48x256xbf16>
    %203 = vector.shape_cast %202 : vector<1x48x256xbf16> to vector<48x256xbf16>
    %204 = arith.mulf %203, %35 : vector<48x256xbf16>
    %c0_170 = arith.constant 0 : index
    %c0_171 = arith.constant 0 : index
    %c256_172 = arith.constant 256 : index
    %205 = vector.load %arg8[%c0_170, %c0_171, %c256_172] : memref<3x144x512xbf16, #tpu.memory_space<vmem>>, vector<1x48x256xbf16>
    %206 = vector.shape_cast %205 : vector<1x48x256xbf16> to vector<48x256xbf16>
    %207 = vector.shape_cast %204 : vector<48x256xbf16> to vector<1x48x256xbf16>
    tpu.vector_store %arg8[%c0_170, %c0_171, %c256_172], %207 {strides = array<i32>} : memref<3x144x512xbf16, #tpu.memory_space<vmem>>, vector<1x48x256xbf16>,
    %c0_173 = arith.constant 0 : index
    %c0_174 = arith.constant 0 : index
    %c112_175 = arith.constant 112 : index
    %208 = vector.load %arg7[%c0_173, %c0_174, %c112_175] : memref<2x48x512xbf16, #tpu.memory_space<vmem>>, vector<1x48x256xbf16>
    %209 = vector.shape_cast %208 : vector<1x48x256xbf16> to vector<48x256xbf16>
    %c0_176 = arith.constant 0 : index
    %c48_177 = arith.constant 48 : index
    %c0_178 = arith.constant 0 : index
    %210 = vector.load %arg8[%c0_176, %c48_177, %c0_178] : memref<3x144x512xbf16, #tpu.memory_space<vmem>>, vector<1x48x256xbf16>
    %211 = vector.shape_cast %210 : vector<1x48x256xbf16> to vector<48x256xbf16>
    %212 = vector.shape_cast %209 : vector<48x256xbf16> to vector<1x48x256xbf16>
    tpu.vector_store %arg8[%c0_176, %c48_177, %c0_178], %212 {strides = array<i32>} : memref<3x144x512xbf16, #tpu.memory_space<vmem>>, vector<1x48x256xbf16>,
    %c1_179 = arith.constant 1 : index
    %c0_180 = arith.constant 0 : index
    %c112_181 = arith.constant 112 : index
    %213 = vector.load %arg7[%c1_179, %c0_180, %c112_181] : memref<2x48x512xbf16, #tpu.memory_space<vmem>>, vector<1x48x256xbf16>
    %214 = vector.shape_cast %213 : vector<1x48x256xbf16> to vector<48x256xbf16>
    %c0_182 = arith.constant 0 : index
    %c48_183 = arith.constant 48 : index
    %c256_184 = arith.constant 256 : index
    %215 = vector.load %arg8[%c0_182, %c48_183, %c256_184] : memref<3x144x512xbf16, #tpu.memory_space<vmem>>, vector<1x48x256xbf16>
    %216 = vector.shape_cast %215 : vector<1x48x256xbf16> to vector<48x256xbf16>
    %217 = vector.shape_cast %214 : vector<48x256xbf16> to vector<1x48x256xbf16>
    tpu.vector_store %arg8[%c0_182, %c48_183, %c256_184], %217 {strides = array<i32>} : memref<3x144x512xbf16, #tpu.memory_space<vmem>>, vector<1x48x256xbf16>,
    %c0_185 = arith.constant 0 : index
    %c0_186 = arith.constant 0 : index
    %c113_187 = arith.constant 113 : index
    %218 = vector.load %arg7[%c0_185, %c0_186, %c113_187] : memref<2x48x512xbf16, #tpu.memory_space<vmem>>, vector<1x48x256xbf16>
    %219 = vector.shape_cast %218 : vector<1x48x256xbf16> to vector<48x256xbf16>
    %220 = arith.mulf %219, %41 : vector<48x256xbf16>
    %c0_188 = arith.constant 0 : index
    %c96_189 = arith.constant 96 : index
    %c0_190 = arith.constant 0 : index
    %221 = vector.load %arg8[%c0_188, %c96_189, %c0_190] : memref<3x144x512xbf16, #tpu.memory_space<vmem>>, vector<1x48x256xbf16>
    %222 = vector.shape_cast %221 : vector<1x48x256xbf16> to vector<48x256xbf16>
    %223 = vector.shape_cast %220 : vector<48x256xbf16> to vector<1x48x256xbf16>
    tpu.vector_store %arg8[%c0_188, %c96_189, %c0_190], %223 {strides = array<i32>} : memref<3x144x512xbf16, #tpu.memory_space<vmem>>, vector<1x48x256xbf16>,
    %c1_191 = arith.constant 1 : index
    %c0_192 = arith.constant 0 : index
    %c113_193 = arith.constant 113 : index
    %224 = vector.load %arg7[%c1_191, %c0_192, %c113_193] : memref<2x48x512xbf16, #tpu.memory_space<vmem>>, vector<1x48x256xbf16>
    %225 = vector.shape_cast %224 : vector<1x48x256xbf16> to vector<48x256xbf16>
    %226 = arith.mulf %225, %41 : vector<48x256xbf16>
    %c0_194 = arith.constant 0 : index
    %c96_195 = arith.constant 96 : index
    %c256_196 = arith.constant 256 : index
    %227 = vector.load %arg8[%c0_194, %c96_195, %c256_196] : memref<3x144x512xbf16, #tpu.memory_space<vmem>>, vector<1x48x256xbf16>
    %228 = vector.shape_cast %227 : vector<1x48x256xbf16> to vector<48x256xbf16>
    %229 = vector.shape_cast %226 : vector<48x256xbf16> to vector<1x48x256xbf16>
    tpu.vector_store %arg8[%c0_194, %c96_195, %c256_196], %229 {strides = array<i32>} : memref<3x144x512xbf16, #tpu.memory_space<vmem>>, vector<1x48x256xbf16>,
    %c0_197 = arith.constant 0 : index
    %c0_198 = arith.constant 0 : index
    %c0_199 = arith.constant 0 : index
    %230 = vector.load %arg4[%c0_197, %c0_198, %c0_199] : memref<3x48x144xbf16, #tpu.memory_space<vmem>>, vector<1x48x144xbf16>
    %231 = vector.shape_cast %230 : vector<1x48x144xbf16> to vector<48x144xbf16>
    %c0_200 = arith.constant 0 : index
    %c0_201 = arith.constant 0 : index
    %c0_202 = arith.constant 0 : index
    %232 = vector.load %arg8[%c0_200, %c0_201, %c0_202] : memref<3x144x512xbf16, #tpu.memory_space<vmem>>, vector<1x144x512xbf16>
    %233 = vector.shape_cast %232 : vector<1x144x512xbf16> to vector<144x512xbf16>
    %cst_203 = arith.constant dense<0.000000e+00> : vector<48x512xf32>
    %234 = tpu.matmul %231, %233, %cst_203 {dimension_numbers = #tpu.dot_dimension_numbers<[1], [0], [0], [1], [0, 0, 1, 1], [], []>} : vector<48x144xbf16>, vector<144x512xbf16>, vector<48x512xf32> -> vector<48x512xf32>
    %c0_204 = arith.constant 0 : index
    %c0_205 = arith.constant 0 : index
    %c127_206 = arith.constant 127 : index
    %235 = vector.load %arg7[%c0_204, %c0_205, %c127_206] : memref<2x48x512xbf16, #tpu.memory_space<vmem>>, vector<1x48x256xbf16>
    %236 = vector.shape_cast %235 : vector<1x48x256xbf16> to vector<48x256xbf16>
    %237 = arith.mulf %236, %35 : vector<48x256xbf16>
    %c1_207 = arith.constant 1 : index
    %c0_208 = arith.constant 0 : index
    %c0_209 = arith.constant 0 : index
    %238 = vector.load %arg8[%c1_207, %c0_208, %c0_209] : memref<3x144x512xbf16, #tpu.memory_space<vmem>>, vector<1x48x256xbf16>
    %239 = vector.shape_cast %238 : vector<1x48x256xbf16> to vector<48x256xbf16>
    %240 = vector.shape_cast %237 : vector<48x256xbf16> to vector<1x48x256xbf16>
    tpu.vector_store %arg8[%c1_207, %c0_208, %c0_209], %240 {strides = array<i32>} : memref<3x144x512xbf16, #tpu.memory_space<vmem>>, vector<1x48x256xbf16>,
    %c1_210 = arith.constant 1 : index
    %c0_211 = arith.constant 0 : index
    %c127_212 = arith.constant 127 : index
    %241 = vector.load %arg7[%c1_210, %c0_211, %c127_212] : memref<2x48x512xbf16, #tpu.memory_space<vmem>>, vector<1x48x256xbf16>
    %242 = vector.shape_cast %241 : vector<1x48x256xbf16> to vector<48x256xbf16>
    %243 = arith.mulf %242, %35 : vector<48x256xbf16>
    %c1_213 = arith.constant 1 : index
    %c0_214 = arith.constant 0 : index
    %c256_215 = arith.constant 256 : index
    %244 = vector.load %arg8[%c1_213, %c0_214, %c256_215] : memref<3x144x512xbf16, #tpu.memory_space<vmem>>, vector<1x48x256xbf16>
    %245 = vector.shape_cast %244 : vector<1x48x256xbf16> to vector<48x256xbf16>
    %246 = vector.shape_cast %243 : vector<48x256xbf16> to vector<1x48x256xbf16>
    tpu.vector_store %arg8[%c1_213, %c0_214, %c256_215], %246 {strides = array<i32>} : memref<3x144x512xbf16, #tpu.memory_space<vmem>>, vector<1x48x256xbf16>,
    %c0_216 = arith.constant 0 : index
    %c0_217 = arith.constant 0 : index
    %c128_218 = arith.constant 128 : index
    %247 = vector.load %arg7[%c0_216, %c0_217, %c128_218] : memref<2x48x512xbf16, #tpu.memory_space<vmem>>, vector<1x48x256xbf16>
    %248 = vector.shape_cast %247 : vector<1x48x256xbf16> to vector<48x256xbf16>
    %c1_219 = arith.constant 1 : index
    %c48_220 = arith.constant 48 : index
    %c0_221 = arith.constant 0 : index
    %249 = vector.load %arg8[%c1_219, %c48_220, %c0_221] : memref<3x144x512xbf16, #tpu.memory_space<vmem>>, vector<1x48x256xbf16>
    %250 = vector.shape_cast %249 : vector<1x48x256xbf16> to vector<48x256xbf16>
    %251 = vector.shape_cast %248 : vector<48x256xbf16> to vector<1x48x256xbf16>
    tpu.vector_store %arg8[%c1_219, %c48_220, %c0_221], %251 {strides = array<i32>} : memref<3x144x512xbf16, #tpu.memory_space<vmem>>, vector<1x48x256xbf16>,
    %c1_222 = arith.constant 1 : index
    %c0_223 = arith.constant 0 : index
    %c128_224 = arith.constant 128 : index
    %252 = vector.load %arg7[%c1_222, %c0_223, %c128_224] : memref<2x48x512xbf16, #tpu.memory_space<vmem>>, vector<1x48x256xbf16>
    %253 = vector.shape_cast %252 : vector<1x48x256xbf16> to vector<48x256xbf16>
    %c1_225 = arith.constant 1 : index
    %c48_226 = arith.constant 48 : index
    %c256_227 = arith.constant 256 : index
    %254 = vector.load %arg8[%c1_225, %c48_226, %c256_227] : memref<3x144x512xbf16, #tpu.memory_space<vmem>>, vector<1x48x256xbf16>
    %255 = vector.shape_cast %254 : vector<1x48x256xbf16> to vector<48x256xbf16>
    %256 = vector.shape_cast %253 : vector<48x256xbf16> to vector<1x48x256xbf16>
    tpu.vector_store %arg8[%c1_225, %c48_226, %c256_227], %256 {strides = array<i32>} : memref<3x144x512xbf16, #tpu.memory_space<vmem>>, vector<1x48x256xbf16>,
    %c0_228 = arith.constant 0 : index
    %c0_229 = arith.constant 0 : index
    %c129_230 = arith.constant 129 : index
    %257 = vector.load %arg7[%c0_228, %c0_229, %c129_230] : memref<2x48x512xbf16, #tpu.memory_space<vmem>>, vector<1x48x256xbf16>
    %258 = vector.shape_cast %257 : vector<1x48x256xbf16> to vector<48x256xbf16>
    %259 = arith.mulf %258, %41 : vector<48x256xbf16>
    %c1_231 = arith.constant 1 : index
    %c96_232 = arith.constant 96 : index
    %c0_233 = arith.constant 0 : index
    %260 = vector.load %arg8[%c1_231, %c96_232, %c0_233] : memref<3x144x512xbf16, #tpu.memory_space<vmem>>, vector<1x48x256xbf16>
    %261 = vector.shape_cast %260 : vector<1x48x256xbf16> to vector<48x256xbf16>
    %262 = vector.shape_cast %259 : vector<48x256xbf16> to vector<1x48x256xbf16>
    tpu.vector_store %arg8[%c1_231, %c96_232, %c0_233], %262 {strides = array<i32>} : memref<3x144x512xbf16, #tpu.memory_space<vmem>>, vector<1x48x256xbf16>,
    %c1_234 = arith.constant 1 : index
    %c0_235 = arith.constant 0 : index
    %c129_236 = arith.constant 129 : index
    %263 = vector.load %arg7[%c1_234, %c0_235, %c129_236] : memref<2x48x512xbf16, #tpu.memory_space<vmem>>, vector<1x48x256xbf16>
    %264 = vector.shape_cast %263 : vector<1x48x256xbf16> to vector<48x256xbf16>
    %265 = arith.mulf %264, %41 : vector<48x256xbf16>
    %c1_237 = arith.constant 1 : index
    %c96_238 = arith.constant 96 : index
    %c256_239 = arith.constant 256 : index
    %266 = vector.load %arg8[%c1_237, %c96_238, %c256_239] : memref<3x144x512xbf16, #tpu.memory_space<vmem>>, vector<1x48x256xbf16>
    %267 = vector.shape_cast %266 : vector<1x48x256xbf16> to vector<48x256xbf16>
    %268 = vector.shape_cast %265 : vector<48x256xbf16> to vector<1x48x256xbf16>
    tpu.vector_store %arg8[%c1_237, %c96_238, %c256_239], %268 {strides = array<i32>} : memref<3x144x512xbf16, #tpu.memory_space<vmem>>, vector<1x48x256xbf16>,
    %c1_240 = arith.constant 1 : index
    %c0_241 = arith.constant 0 : index
    %c0_242 = arith.constant 0 : index
    %269 = vector.load %arg4[%c1_240, %c0_241, %c0_242] : memref<3x48x144xbf16, #tpu.memory_space<vmem>>, vector<1x48x144xbf16>
    %270 = vector.shape_cast %269 : vector<1x48x144xbf16> to vector<48x144xbf16>
    %c1_243 = arith.constant 1 : index
    %c0_244 = arith.constant 0 : index
    %c0_245 = arith.constant 0 : index
    %271 = vector.load %arg8[%c1_243, %c0_244, %c0_245] : memref<3x144x512xbf16, #tpu.memory_space<vmem>>, vector<1x144x512xbf16>
    %272 = vector.shape_cast %271 : vector<1x144x512xbf16> to vector<144x512xbf16>
    %cst_246 = arith.constant dense<0.000000e+00> : vector<48x512xf32>
    %273 = tpu.matmul %270, %272, %cst_246 {dimension_numbers = #tpu.dot_dimension_numbers<[1], [0], [0], [1], [0, 0, 1, 1], [], []>} : vector<48x144xbf16>, vector<144x512xbf16>, vector<48x512xf32> -> vector<48x512xf32>
    %274 = arith.addf %234, %273 : vector<48x512xf32>
    %c0_247 = arith.constant 0 : index
    %c0_248 = arith.constant 0 : index
    %c143_249 = arith.constant 143 : index
    %275 = vector.load %arg7[%c0_247, %c0_248, %c143_249] : memref<2x48x512xbf16, #tpu.memory_space<vmem>>, vector<1x48x256xbf16>
    %276 = vector.shape_cast %275 : vector<1x48x256xbf16> to vector<48x256xbf16>
    %277 = arith.mulf %276, %35 : vector<48x256xbf16>
    %c2_250 = arith.constant 2 : index
    %c0_251 = arith.constant 0 : index
    %c0_252 = arith.constant 0 : index
    %278 = vector.load %arg8[%c2_250, %c0_251, %c0_252] : memref<3x144x512xbf16, #tpu.memory_space<vmem>>, vector<1x48x256xbf16>
    %279 = vector.shape_cast %278 : vector<1x48x256xbf16> to vector<48x256xbf16>
    %280 = vector.shape_cast %277 : vector<48x256xbf16> to vector<1x48x256xbf16>
    tpu.vector_store %arg8[%c2_250, %c0_251, %c0_252], %280 {strides = array<i32>} : memref<3x144x512xbf16, #tpu.memory_space<vmem>>, vector<1x48x256xbf16>,
    %c1_253 = arith.constant 1 : index
    %c0_254 = arith.constant 0 : index
    %c143_255 = arith.constant 143 : index
    %281 = vector.load %arg7[%c1_253, %c0_254, %c143_255] : memref<2x48x512xbf16, #tpu.memory_space<vmem>>, vector<1x48x256xbf16>
    %282 = vector.shape_cast %281 : vector<1x48x256xbf16> to vector<48x256xbf16>
    %283 = arith.mulf %282, %35 : vector<48x256xbf16>
    %c2_256 = arith.constant 2 : index
    %c0_257 = arith.constant 0 : index
    %c256_258 = arith.constant 256 : index
    %284 = vector.load %arg8[%c2_256, %c0_257, %c256_258] : memref<3x144x512xbf16, #tpu.memory_space<vmem>>, vector<1x48x256xbf16>
    %285 = vector.shape_cast %284 : vector<1x48x256xbf16> to vector<48x256xbf16>
    %286 = vector.shape_cast %283 : vector<48x256xbf16> to vector<1x48x256xbf16>
    tpu.vector_store %arg8[%c2_256, %c0_257, %c256_258], %286 {strides = array<i32>} : memref<3x144x512xbf16, #tpu.memory_space<vmem>>, vector<1x48x256xbf16>,
    %c0_259 = arith.constant 0 : index
    %c0_260 = arith.constant 0 : index
    %c144_261 = arith.constant 144 : index
    %287 = vector.load %arg7[%c0_259, %c0_260, %c144_261] : memref<2x48x512xbf16, #tpu.memory_space<vmem>>, vector<1x48x256xbf16>
    %288 = vector.shape_cast %287 : vector<1x48x256xbf16> to vector<48x256xbf16>
    %c2_262 = arith.constant 2 : index
    %c48_263 = arith.constant 48 : index
    %c0_264 = arith.constant 0 : index
    %289 = vector.load %arg8[%c2_262, %c48_263, %c0_264] : memref<3x144x512xbf16, #tpu.memory_space<vmem>>, vector<1x48x256xbf16>
    %290 = vector.shape_cast %289 : vector<1x48x256xbf16> to vector<48x256xbf16>
    %291 = vector.shape_cast %288 : vector<48x256xbf16> to vector<1x48x256xbf16>
    tpu.vector_store %arg8[%c2_262, %c48_263, %c0_264], %291 {strides = array<i32>} : memref<3x144x512xbf16, #tpu.memory_space<vmem>>, vector<1x48x256xbf16>,
    %c1_265 = arith.constant 1 : index
    %c0_266 = arith.constant 0 : index
    %c144_267 = arith.constant 144 : index
    %292 = vector.load %arg7[%c1_265, %c0_266, %c144_267] : memref<2x48x512xbf16, #tpu.memory_space<vmem>>, vector<1x48x256xbf16>
    %293 = vector.shape_cast %292 : vector<1x48x256xbf16> to vector<48x256xbf16>
    %c2_268 = arith.constant 2 : index
    %c48_269 = arith.constant 48 : index
    %c256_270 = arith.constant 256 : index
    %294 = vector.load %arg8[%c2_268, %c48_269, %c256_270] : memref<3x144x512xbf16, #tpu.memory_space<vmem>>, vector<1x48x256xbf16>
    %295 = vector.shape_cast %294 : vector<1x48x256xbf16> to vector<48x256xbf16>
    %296 = vector.shape_cast %293 : vector<48x256xbf16> to vector<1x48x256xbf16>
    tpu.vector_store %arg8[%c2_268, %c48_269, %c256_270], %296 {strides = array<i32>} : memref<3x144x512xbf16, #tpu.memory_space<vmem>>, vector<1x48x256xbf16>,
    %c0_271 = arith.constant 0 : index
    %c0_272 = arith.constant 0 : index
    %c145_273 = arith.constant 145 : index
    %297 = vector.load %arg7[%c0_271, %c0_272, %c145_273] : memref<2x48x512xbf16, #tpu.memory_space<vmem>>, vector<1x48x256xbf16>
    %298 = vector.shape_cast %297 : vector<1x48x256xbf16> to vector<48x256xbf16>
    %299 = arith.mulf %298, %41 : vector<48x256xbf16>
    %c2_274 = arith.constant 2 : index
    %c96_275 = arith.constant 96 : index
    %c0_276 = arith.constant 0 : index
    %300 = vector.load %arg8[%c2_274, %c96_275, %c0_276] : memref<3x144x512xbf16, #tpu.memory_space<vmem>>, vector<1x48x256xbf16>
    %301 = vector.shape_cast %300 : vector<1x48x256xbf16> to vector<48x256xbf16>
    %302 = vector.shape_cast %299 : vector<48x256xbf16> to vector<1x48x256xbf16>
    tpu.vector_store %arg8[%c2_274, %c96_275, %c0_276], %302 {strides = array<i32>} : memref<3x144x512xbf16, #tpu.memory_space<vmem>>, vector<1x48x256xbf16>,
    %c1_277 = arith.constant 1 : index
    %c0_278 = arith.constant 0 : index
    %c145_279 = arith.constant 145 : index
    %303 = vector.load %arg7[%c1_277, %c0_278, %c145_279] : memref<2x48x512xbf16, #tpu.memory_space<vmem>>, vector<1x48x256xbf16>
    %304 = vector.shape_cast %303 : vector<1x48x256xbf16> to vector<48x256xbf16>
    %305 = arith.mulf %304, %41 : vector<48x256xbf16>
    %c2_280 = arith.constant 2 : index
    %c96_281 = arith.constant 96 : index
    %c256_282 = arith.constant 256 : index
    %306 = vector.load %arg8[%c2_280, %c96_281, %c256_282] : memref<3x144x512xbf16, #tpu.memory_space<vmem>>, vector<1x48x256xbf16>
    %307 = vector.shape_cast %306 : vector<1x48x256xbf16> to vector<48x256xbf16>
    %308 = vector.shape_cast %305 : vector<48x256xbf16> to vector<1x48x256xbf16>
    tpu.vector_store %arg8[%c2_280, %c96_281, %c256_282], %308 {strides = array<i32>} : memref<3x144x512xbf16, #tpu.memory_space<vmem>>, vector<1x48x256xbf16>,
    %c2_283 = arith.constant 2 : index
    %c0_284 = arith.constant 0 : index
    %c0_285 = arith.constant 0 : index
    %309 = vector.load %arg4[%c2_283, %c0_284, %c0_285] : memref<3x48x144xbf16, #tpu.memory_space<vmem>>, vector<1x48x144xbf16>
    %310 = vector.shape_cast %309 : vector<1x48x144xbf16> to vector<48x144xbf16>
    %c2_286 = arith.constant 2 : index
    %c0_287 = arith.constant 0 : index
    %c0_288 = arith.constant 0 : index
    %311 = vector.load %arg8[%c2_286, %c0_287, %c0_288] : memref<3x144x512xbf16, #tpu.memory_space<vmem>>, vector<1x144x512xbf16>
    %312 = vector.shape_cast %311 : vector<1x144x512xbf16> to vector<144x512xbf16>
    %cst_289 = arith.constant dense<0.000000e+00> : vector<48x512xf32>
    %313 = tpu.matmul %310, %312, %cst_289 {dimension_numbers = #tpu.dot_dimension_numbers<[1], [0], [0], [1], [0, 0, 1, 1], [], []>} : vector<48x144xbf16>, vector<144x512xbf16>, vector<48x512xf32> -> vector<48x512xf32>
    %314 = arith.addf %274, %313 : vector<48x512xf32>
    %c0_290 = arith.constant 0 : index
    %c0_291 = arith.constant 0 : index
    %315 = vector.load %arg5[%c0_290, %c0_291] : memref<48x1xf32, #tpu.memory_space<vmem>>, vector<48x1xf32>
    %316 = vector.broadcast %315 : vector<48x1xf32> to vector<48x512xf32>
    %317 = arith.addf %314, %316 : vector<48x512xf32>
    %318 = vector.extract_strided_slice %317 {offsets = [0, 0], sizes = [48, 256], strides = [1, 1]} : vector<48x512xf32> to vector<48x256xf32>
    %c0_292 = arith.constant 0 : index
    %c0_293 = arith.constant 0 : index
    %c0_294 = arith.constant 0 : index
    %319 = vector.load %arg1[%c0_292, %c0_293, %c0_294] : memref<2x48x256xf32, #tpu.memory_space<vmem>>, vector<1x48x256xf32>
    %320 = vector.shape_cast %319 : vector<1x48x256xf32> to vector<48x256xf32>
    %321 = arith.addf %318, %320 : vector<48x256xf32>
    %c0_295 = arith.constant 0 : index
    %c0_296 = arith.constant 0 : index
    %c0_297 = arith.constant 0 : index
    %322 = vector.load %arg6[%c0_295, %c0_296, %c0_297] : memref<2x48x256xf32, #tpu.memory_space<vmem>>, vector<1x48x256xf32>
    %323 = vector.shape_cast %322 : vector<1x48x256xf32> to vector<48x256xf32>
    %324 = vector.shape_cast %321 : vector<48x256xf32> to vector<1x48x256xf32>
    tpu.vector_store %arg6[%c0_295, %c0_296, %c0_297], %324 {strides = array<i32>} : memref<2x48x256xf32, #tpu.memory_space<vmem>>, vector<1x48x256xf32>,
    %325 = vector.extract_strided_slice %317 {offsets = [0, 256], sizes = [48, 256], strides = [1, 1]} : vector<48x512xf32> to vector<48x256xf32>
    %c1_298 = arith.constant 1 : index
    %c0_299 = arith.constant 0 : index
    %c0_300 = arith.constant 0 : index
    %326 = vector.load %arg1[%c1_298, %c0_299, %c0_300] : memref<2x48x256xf32, #tpu.memory_space<vmem>>, vector<1x48x256xf32>
    %327 = vector.shape_cast %326 : vector<1x48x256xf32> to vector<48x256xf32>
    %328 = arith.addf %325, %327 : vector<48x256xf32>
    %c1_301 = arith.constant 1 : index
    %c0_302 = arith.constant 0 : index
    %c0_303 = arith.constant 0 : index
    %329 = vector.load %arg6[%c1_301, %c0_302, %c0_303] : memref<2x48x256xf32, #tpu.memory_space<vmem>>, vector<1x48x256xf32>
    %330 = vector.shape_cast %329 : vector<1x48x256xf32> to vector<48x256xf32>
    %331 = vector.shape_cast %328 : vector<48x256xf32> to vector<1x48x256xf32>
    tpu.vector_store %arg6[%c1_301, %c0_302, %c0_303], %331 {strides = array<i32>} : memref<2x48x256xf32, #tpu.memory_space<vmem>>, vector<1x48x256xf32>,
    return
  }
  func.func @transform_0(%arg0: i32) -> (i32, i32, i32) {
    %c0_i32 = arith.constant 0 : i32
    %c0_i32_0 = arith.constant 0 : i32
    %c0_i32_1 = arith.constant 0 : i32
    return %arg0, %c0_i32, %c0_i32_0 : i32, i32, i32
  }
  func.func @transform_1(%arg0: i32) -> (i32, i32, i32) {
    %c0_i32 = arith.constant 0 : i32
    %c0_i32_0 = arith.constant 0 : i32
    %c0_i32_1 = arith.constant 0 : i32
    %c0_i32_2 = arith.constant 0 : i32
    return %c0_i32, %c0_i32_0, %c0_i32_1 : i32, i32, i32
  }
  func.func @transform_2(%arg0: i32) -> (i32, i32) {
    %c0_i32 = arith.constant 0 : i32
    %c0_i32_0 = arith.constant 0 : i32
    %c0_i32_1 = arith.constant 0 : i32
    return %c0_i32, %c0_i32_0 : i32, i32
  }
  func.func @transform_3(%arg0: i32) -> (i32, i32, i32) {
    %c0_i32 = arith.constant 0 : i32
    %c0_i32_0 = arith.constant 0 : i32
    %c0_i32_1 = arith.constant 0 : i32
    %c0_i32_2 = arith.constant 0 : i32
    return %c0_i32, %c0_i32_0, %c0_i32_1 : i32, i32, i32
  }
  func.func @transform_4(%arg0: i32) -> (i32, i32) {
    %c0_i32 = arith.constant 0 : i32
    %c0_i32_0 = arith.constant 0 : i32
    %c0_i32_1 = arith.constant 0 : i32
    return %c0_i32, %c0_i32_0 : i32, i32
  }
  func.func @transform_5(%arg0: i32) -> (i32, i32, i32) {
    %c0_i32 = arith.constant 0 : i32
    %c0_i32_0 = arith.constant 0 : i32
    %c0_i32_1 = arith.constant 0 : i32
    return %arg0, %c0_i32, %c0_i32_0 : i32, i32, i32
  }
}

</mosaic_0001>

<bundles_post_ra>
// kernel: deblock_forward.1
= control target key start
LH: loop header
LB: loop body
LE: loop exit
PB: predicated region body
PF: predicated region fallthrough
CT: control target
= control target key end

     0   :  { %s4447_s18 = smov 0   ;;  %s6259_s0 = inlined_call_operand.vmem [shape: f32[4,48,256], index: 0, kind: input, shape index: {}]   ;;  %s6260_s1 = inlined_call_operand.vmem [shape: bf16[3,48,144], index: 1, kind: input, shape index: {}]   ;;  %s6261_s2 = inlined_call_operand.vmem [shape: f32[48,1], index: 2, kind: input, shape index: {}]   ;;  %s6262_s3 = inlined_call_operand.vmem [shape: bf16[3,48,144], index: 3, kind: input, shape index: {}]   ;;  %s6263_s4 = inlined_call_operand.vmem [shape: f32[48,1], index: 4, kind: input, shape index: {}]   ;;  %s6264_s5 = inlined_call_operand.vmem [shape: f32[4,48,256], index: 5, kind: output, shape index: {}]  }
   0x1 LB: > { %s4013_s19 = sadd.s32 4294967295, %s4405_s18   ;;  %p4017_p0 = scmp.ge.s32.totalorder %s4405_s18, 1  ;;  %s4405_s18 = sphi %s4447_s18, %s15_s18  }
   0x2   : > { %p189_p1 = scmp.lt.s32.totalorder %s4405_s18, 3 }
   0x4   : > { %p190_p2 = pnand %p4017_p0, %p189_p1 }
   0x6   : > { %193 = sbr.rel (%p190_p2) target bundleno = 1326 (0x52e), region = 40 }
   0xd   : > { %v247_v0 = vlaneseq  ;;  %v4407_v5 = vmov 0.0   ;;  %s4408_s20 = smov 127   ;;  %s4409_s21 = smov 1   ;;  %v6265_v14 = vmov 0   ;;  %vm775_vm4 = vcmask 1039360  }
   0xe   : > { %s4410_s22 = smov 111   ;;  %s4411_s23 = smov 113   ;;  %4314 = vset.pattern.permute.xlu1 %v6265_v14  ;;  %4313 = vset.pattern.permute.xlu0 %v6265_v14  ;;  %vm816_vm5 = vcmask 7168   ;;  %vm350_vm6 = vcmask 908288   ;;  %vm509_vm7 = vcmask 130048   ;;  %vm597_vm8 = vcmask 924672  }
   0xf   : > { %v248_v1 = vand.u32 127, %v247_v0  ;;  %s4412_s24 = smov 15   ;;  %s4413_s25 = smov 17   ;;  %vm638_vm9 = vcmask 121856   ;;  %vm391_vm10 = vcmask 138240   ;;  %vm1596_vm11 = vcmask 916480  }
  0x10   : > { %s4018_s26 = sshll.u32 %s4013_s19, 1  ;;  %s4415_s8 = smov 16  }
  0x11   : > { %v254_v2 = vand.u32 15, %v248_v1  ;;  %v249_v3 = vadd.s32 128, %v248_v1  ;;  %p220_p3 = scmp.lt.s32.totalorder %s4018_s26, 3  ;;  %s4416_s9 = smov 112  }
  0x13   : > { %vm274_vm0 = vcmp.ne.s32.totalorder %v254_v2, 0  ;;  %vm280_vm1 = vcmp.ne.s32.totalorder %v254_v2, 15  ;;  %v261_v4 = vand.u32 15, %v249_v3  ;;  %s6379_s26 = smov (!%p220_p3, %s4018_s26), 3 }
  0x14   : > { %v276_v6 = vsel %vm274_vm0, 1.0, %v4407_v5  ;;  %v282_v7 = vsel %vm280_vm1, 1.0, %v4407_v5  ;;  %s4264_s27 = smul.u32 96, %s6379_s26 }
  0x15   : > { %v278_v8 = vpack.c.bf16 %v276_v6, %v276_v6  ;;  %v284_v9 = vpack.c.bf16 %v282_v7, %v282_v7  ;;  %vm281_vm2 = vcmp.ne.s32.totalorder %v261_v4, 15  ;;  %vm275_vm3 = vcmp.ne.s32.totalorder %v261_v4, 0 }
  0x16   : > { %v283_v10 = vsel %vm281_vm2, 1.0, %v4407_v5  ;;  %v277_v12 = vsel %vm275_vm3, 1.0, %v4407_v5  ;;  %s4481_s30 = scalar_lea.vmem %s6259_s0, %s4264_s27  ;;  %s6208_s19 = scalar_lea.vmem %s6264_s5, %s4264_s27 }
  0x17   : > { %771 = vrot.lane.b32.xlu0 %v278_v8, %s4408_s20  ;;  %932 = vrot.lane.b32.xlu1 %v284_v9, %s4409_s21  ;;  %v285_v11 = vpack.c.bf16 %v283_v10, %v283_v10  ;;  %v279_v13 = vpack.c.bf16 %v277_v12, %v277_v12  ;;  %v4022_v17 = vld [vmem:[%s4481_s30 + $0x60] sm:$0xff]  ;;  %v4024_v18 = vld [vmem:[%s4481_s30 + $0x70] sm:$0xff] }
  0x18   : > { %v286_v19 = vld [vmem:[%s4481_s30] sm:$0xff]  ;;  %v288_v20 = vld [vmem:[%s4481_s30 + $0x10] sm:$0xff]  ;;  %v4498_v21 = vpack.c.bf16 %v4024_v18, %v4022_v17  ;;  %v287_v45 = vld [vmem:[%s4481_s30 + $0x8] sm:$0xff] }
  0x19   : > { %v4500_v22 = vpack.c.bf16 %v288_v20, %v286_v19  ;;  %v4026_v23 = vld [vmem:[%s4481_s30 + $0x80] sm:$0xff]  ;;  %v4028_v25 = vld [vmem:[%s4481_s30 + $0x90] sm:$0xff]  ;;  %v289_v46 = vld [vmem:[%s4481_s30 + $0x18] sm:$0xff] }
  0x1a   : > { %v290_v26 = vld [vmem:[%s4481_s30 + $0x20] sm:$0xff]  ;;  %v292_v27 = vld [vmem:[%s4481_s30 + $0x30] sm:$0xff]  ;;  %v4516_v30 = vpack.c.bf16 %v4028_v25, %v4026_v23  ;;  %v4023_v47 = vld [vmem:[%s4481_s30 + $0x68] sm:$0xff]  ;;  %v4561_v49 = vpack.c.bf16 %v289_v46, %v287_v45 }
  0x1b   : > { %346 = vrot.lane.b32.xlu0 %v278_v8, %s4410_s22  ;;  %934 = vrot.lane.b32.xlu1 %v285_v11, %s4409_s21  ;;  %v4518_v31 = vpack.c.bf16 %v292_v27, %v290_v26  ;;  %v4030_v32 = vld [vmem:[%s4481_s30 + $0xa0] sm:$0xff]  ;;  %v4032_v33 = vld [vmem:[%s4481_s30 + $0xb0] sm:$0xff] }
  0x1c   : > { %v294_v34 = vld [vmem:[%s4481_s30 + $0x40] sm:$0xff]  ;;  %v296_v35 = vld [vmem:[%s4481_s30 + $0x50] sm:$0xff]  ;;  %v4530_v38 = vpack.c.bf16 %v4032_v33, %v4030_v32  ;;  %v4025_v48 = vld [vmem:[%s4481_s30 + $0x78] sm:$0xff] }
  0x1d   : > { %v4532_v39 = vpack.c.bf16 %v296_v35, %v294_v34  ;;  %v4563_v50 = vpack.c.bf16 %v4025_v48, %v4023_v47  ;;  %v291_v54 = vld [vmem:[%s4481_s30 + $0x28] sm:$0xff]  ;;  %v293_v55 = vld [vmem:[%s4481_s30 + $0x38] sm:$0xff] }
  0x1e   : > { %v4027_v56 = vld [vmem:[%s4481_s30 + $0x88] sm:$0xff]  ;;  %v4029_v57 = vld [vmem:[%s4481_s30 + $0x98] sm:$0xff]  ;;  %v4581_v58 = vpack.c.bf16 %v293_v55, %v291_v54 }
  0x1f   : > { %593 = vrot.lane.b32.xlu0 %v284_v9, %s4411_s23  ;;  %348 = vrot.lane.b32.xlu1 %v279_v13, %s4410_s22  ;;  %v4583_v59 = vpack.c.bf16 %v4029_v57, %v4027_v56  ;;  %v295_v60 = vld [vmem:[%s4481_s30 + $0x48] sm:$0xff]  ;;  %v297_v61 = vld [vmem:[%s4481_s30 + $0x58] sm:$0xff] }
  0x20   : > { %v4031_v62 = vld [vmem:[%s4481_s30 + $0xa8] sm:$0xff]  ;;  %v4033_v63 = vld [vmem:[%s4481_s30 + $0xb8] sm:$0xff]  ;;  %v4595_v2 = vpack.c.bf16 %v297_v61, %v295_v60 }
  0x21   : > { %v4597_v3 = vpack.c.bf16 %v4033_v63, %v4031_v62 }
  0x23   : > { %773 = vrot.lane.b32.xlu0 %v279_v13, %s4408_s20  ;;  %595 = vrot.lane.b32.xlu1 %v285_v11, %s4411_s23 }
  0x27   : > { %1436 = vrot.lane.b32.xlu1 %v279_v13, %s4412_s24  ;;  %1434 = vrot.lane.b32.xlu0 %v278_v8, %s4412_s24 }
  0x2b   : > { %1680 = vrot.lane.b32.xlu1 %v285_v11, %s4413_s25  ;;  %1678 = vrot.lane.b32.xlu0 %v284_v9, %s4413_s25 }
  0x89   : > { %v4474_v15 = vpop.permute.xlu0 %771  ;;  %v4503_v24 = vpop.permute.xlu1 %932 }
  0x8a   : > { %v4484_v16 = vmul.bf16 0, %v4474_v15  ;;  %6299 = vst [vmem:[#allocation4_spill] sm:$0xff] %v4503_v24  ;;  %v1003_v28 = vmul.bf16 %v4503_v24, %v4498_v21  ;;  %v940_v29 = vmul.bf16 %v4503_v24, %v4500_v22  ;;  %v1006_v36 = vmul.bf16 %v4503_v24, %v4516_v30 }
  0x8b   : > { %v943_v37 = vmul.bf16 %v4503_v24, %v4518_v31  ;;  %v1009_v40 = vmul.bf16 %v4503_v24, %v4530_v38  ;;  %v946_v41 = vmul.bf16 %v4503_v24, %v4532_v39 }
  0x8c   : > { %863 = vrot.lane.b32.xlu1 %v4484_v16, %s4409_s21  ;;  %798 = vrot.lane.b32.xlu0 %v4484_v16, %s4409_s21 }
  0x8d   : > { %v4540_v42 = vpop.permute.xlu0 %346  ;;  %v935_v6 = vpop.permute.xlu1 %934 }
  0x8e   : > { %v4543_v43 = vmul.bf16 0, %v4540_v42  ;;  %v4603_v7 = vmul.bf16 0, %v935_v6  ;;  %v4662_v27 = vsel %vm816_vm5, %v4503_v24, %v935_v6 }
  0x8f   : > { %6304 = vst [vmem:[#allocation9_spill] sm:$0xff] %v4662_v27  ;;  %v1007_v32 = vmul.bf16 %v4662_v27, %v4583_v59  ;;  %v944_v33 = vmul.bf16 %v4662_v27, %v4581_v58  ;;  %v1010_v34 = vmul.bf16 %v4662_v27, %v4597_v3  ;;  %v947_v35 = vmul.bf16 %v4662_v27, %v4595_v2 }
  0x90   : > { %869 = vrot.lane.b32.xlu1 %v4484_v16, %s4409_s21  ;;  %804 = vrot.lane.b32.xlu0 %v4484_v16, %s4409_s21  ;;  %6300 = vst [vmem:[#allocation5_spill] sm:$0xff] %v4543_v43 }
  0x91   : > { %v4551_v44 = vpop.permute.xlu0 %593  ;;  %v4615_v8 = vpop.permute.xlu1 %348 }
  0x92   : > { %6302 = vst [vmem:[#allocation7_spill] sm:$0xff] %v4615_v8  ;;  %v357_v9 = vmul.bf16 %v4615_v8, %v4561_v49  ;;  %v421_v10 = vmul.bf16 %v4615_v8, %v4563_v50  ;;  %v360_v11 = vmul.bf16 %v4615_v8, %v4581_v58  ;;  %v424_v12 = vmul.bf16 %v4615_v8, %v4583_v59 }
  0x93   : > { %v363_v13 = vmul.bf16 %v4615_v8, %v4595_v2  ;;  %v427_v17 = vmul.bf16 %v4615_v8, %v4597_v3 }
  0x94   : > { %875 = vrot.lane.b32.xlu1 %v4484_v16, %s4409_s21  ;;  %810 = vrot.lane.b32.xlu0 %v4484_v16, %s4409_s21 }
  0x95   : > { %v4565_v51 = vpop.permute.xlu0 %773 }
  0x96   : > { %6301 = vst [vmem:[#allocation6_spill] sm:$0xff] %v4565_v51  ;;  %v782_v52 = vmul.bf16 %v4565_v51, %v4561_v49  ;;  %v847_v53 = vmul.bf16 %v4565_v51, %v4563_v50  ;;  %v785_v0 = vmul.bf16 %v4565_v51, %v4581_v58  ;;  %v850_v1 = vmul.bf16 %v4565_v51, %v4583_v59 }
  0x97   : > { %v788_v4 = vmul.bf16 %v4565_v51, %v4595_v2  ;;  %v853_v5 = vmul.bf16 %v4565_v51, %v4597_v3  ;;  %v4640_v18 = vsel %vm775_vm4, %v4474_v15, %v4565_v51 }
  0x98   : > { %1021 = vrot.lane.b32.xlu1 %v1003_v28, %s4408_s20  ;;  %958 = vrot.lane.b32.xlu0 %v940_v29, %s4408_s20  ;;  %6303 = vst [vmem:[#allocation8_spill] sm:$0xff] %v4640_v18  ;;  %v846_v19 = vmul.bf16 %v4640_v18, %v4498_v21  ;;  %v781_v20 = vmul.bf16 %v4640_v18, %v4500_v22 }
  0x99   : > { %v849_v23 = vmul.bf16 %v4640_v18, %v4516_v30  ;;  %v784_v15 = vmul.bf16 %v4640_v18, %v4518_v31  ;;  %v852_v25 = vmul.bf16 %v4640_v18, %v4530_v38  ;;  %v787_v26 = vmul.bf16 %v4640_v18, %v4532_v39 }
  0x9a   : > { %v1004_v28 = vmul.bf16 %v4662_v27, %v4563_v50  ;;  %v941_v29 = vmul.bf16 %v4662_v27, %v4561_v49 }
  0x9c   : > { %1027 = vrot.lane.b32.xlu1 %v1006_v36, %s4408_s20  ;;  %964 = vrot.lane.b32.xlu0 %v943_v37, %s4408_s20  ;;  %v4685_v36 = vsel %vm350_vm6, %v4540_v42, %v4615_v8  ;;  %v4700_v42 = vpop.permute.xlu1 %595 }
  0x9d   : > { %6305 = vst [vmem:[#allocation10_spill] sm:$0xff] %v4685_v36  ;;  %v420_v37 = vmul.bf16 %v4685_v36, %v4498_v21  ;;  %6306 = vst [vmem:[#allocation11_spill] sm:$0xff] %v4700_v42  ;;  %v423_v45 = vmul.bf16 %v4685_v36, %v4516_v30  ;;  %v359_v46 = vmul.bf16 %v4685_v36, %v4518_v31 }
  0x9e   : > { %v426_v47 = vmul.bf16 %v4685_v36, %v4530_v38  ;;  %v362_v48 = vmul.bf16 %v4685_v36, %v4532_v39  ;;  %v4769_v6 = vsel %vm597_vm8, %v4551_v44, %v4700_v42 }
  0x9f   : > { %6307 = vst [vmem:[#allocation12_spill] sm:$0xff] %v4769_v6 }
  0xa0   : > { %1033 = vrot.lane.b32.xlu1 %v1009_v40, %s4408_s20  ;;  %970 = vrot.lane.b32.xlu0 %v946_v41, %s4408_s20  ;;  %v356_v40 = vmul.bf16 %v4685_v36, %v4500_v22  ;;  %v4347_v41 = vld [vmem:[%s6260_s1 + $0x34] ss:$8 sps:$4 sm:$0xff]  }
  0xa1   : > { %4046 = vmatprep.mubr.msk.bf16.mxu0 %vm509_vm7, %v4347_v41  ;;  %4049 = vmatprep.mubr.msk.bf16.mxu1 %vm509_vm7, %v4347_v41 }
  0xa4   : > { %437 = vrot.lane.b32.xlu1 %v4543_v43, %s4413_s25  ;;  %373 = vrot.lane.b32.xlu0 %v4543_v43, %s4413_s25 }
  0xa8   : > { %443 = vrot.lane.b32.xlu1 %v4543_v43, %s4413_s25  ;;  %379 = vrot.lane.b32.xlu0 %v4543_v43, %s4413_s25 }
  0xac   : > { %449 = vrot.lane.b32.xlu1 %v4543_v43, %s4413_s25  ;;  %385 = vrot.lane.b32.xlu0 %v4543_v43, %s4413_s25 }
  0xb0   : > { %802 = vrot.lane.b32.xlu1 %v782_v52, %s4409_s21  ;;  %867 = vrot.lane.b32.xlu0 %v847_v53, %s4409_s21  ;;  %v4712_v52 = vpop.permute.xlu1 %1436  ;;  %v4714_v53 = vpop.permute.xlu0 %1434 }
  0xb1   : > { %v1506_v51 = vmul.bf16 %v4714_v53, %v4498_v21  ;;  %v1445_v24 = vmul.bf16 %v4714_v53, %v4518_v31 }
  0xb4   : > { %808 = vrot.lane.b32.xlu1 %v785_v0, %s4409_s21  ;;  %873 = vrot.lane.b32.xlu0 %v850_v1, %s4409_s21  ;;  %v4722_v54 = vpop.permute.xlu1 %1680  ;;  %v4724_v55 = vpop.permute.xlu0 %1678 }
  0xb8   : > { %814 = vrot.lane.b32.xlu1 %v788_v4, %s4409_s21  ;;  %879 = vrot.lane.b32.xlu0 %v853_v5, %s4409_s21 }
  0xbc   : > { %962 = vrot.lane.b32.xlu1 %v4603_v7, %s4408_s20  ;;  %1025 = vrot.lane.b32.xlu0 %v4603_v7, %s4408_s20 }
  0xc0   : > { %968 = vrot.lane.b32.xlu1 %v4603_v7, %s4408_s20  ;;  %1031 = vrot.lane.b32.xlu0 %v4603_v7, %s4408_s20 }
  0xc4   : > { %974 = vrot.lane.b32.xlu1 %v4603_v7, %s4408_s20  ;;  %1037 = vrot.lane.b32.xlu0 %v4603_v7, %s4408_s20 }
  0xc8   : > { %377 = vrot.lane.b32.xlu1 %v357_v9, %s4413_s25  ;;  %441 = vrot.lane.b32.xlu0 %v421_v10, %s4413_s25 }
  0xcc   : > { %383 = vrot.lane.b32.xlu1 %v360_v11, %s4413_s25  ;;  %447 = vrot.lane.b32.xlu0 %v424_v12, %s4413_s25  ;;  %v603_v11 = vmul.bf16 %v4769_v6, %v4500_v22  ;;  %v4785_v12 = vmul.bf16 0, %v4551_v44  ;;  %v668_v44 = vmul.bf16 %v4700_v42, %v4563_v50 }
  0xce   : > { %6308 = vst [vmem:[#allocation13_spill] sm:$0xff] %v4785_v12 }
  0xd0   : > { %389 = vrot.lane.b32.xlu1 %v363_v13, %s4413_s25  ;;  %453 = vrot.lane.b32.xlu0 %v427_v17, %s4413_s25 }
  0xd4   : > { %865 = vrot.lane.b32.xlu1 %v846_v19, %s4409_s21  ;;  %800 = vrot.lane.b32.xlu0 %v781_v20, %s4409_s21  ;;  %v604_v19 = vmul.bf16 %v4700_v42, %v4561_v49 }
  0xd8   : > { %871 = vrot.lane.b32.xlu1 %v849_v23, %s4409_s21  ;;  %806 = vrot.lane.b32.xlu0 %v784_v15, %s4409_s21  ;;  %v667_v15 = vmul.bf16 %v4769_v6, %v4498_v21 }
  0xdc   : > { %877 = vrot.lane.b32.xlu1 %v852_v25, %s4409_s21  ;;  %812 = vrot.lane.b32.xlu0 %v787_v26, %s4409_s21 }
  0xe0   : > { %1023 = vrot.lane.b32.xlu1 %v1004_v28, %s4408_s20  ;;  %960 = vrot.lane.b32.xlu0 %v941_v29, %s4408_s20  ;;  %v606_v28 = vmul.bf16 %v4769_v6, %v4518_v31 }
  0xe4   : > { %1029 = vrot.lane.b32.xlu1 %v1007_v32, %s4408_s20  ;;  %966 = vrot.lane.b32.xlu0 %v944_v33, %s4408_s20  ;;  %v607_v33 = vmul.bf16 %v4700_v42, %v4581_v58 }
  0xe8   : > { %1035 = vrot.lane.b32.xlu1 %v1010_v34, %s4408_s20  ;;  %972 = vrot.lane.b32.xlu0 %v947_v35, %s4408_s20 }
  0xec   : > { %439 = vrot.lane.b32.xlu1 %v420_v37, %s4413_s25  ;;  %375 = vrot.lane.b32.xlu0 %v356_v40, %s4413_s25  ;;  %v671_v37 = vmul.bf16 %v4700_v42, %v4583_v59  ;;  %v670_v40 = vmul.bf16 %v4769_v6, %v4516_v30 }
  0xf0   : > { %445 = vrot.lane.b32.xlu1 %v423_v45, %s4413_s25  ;;  %381 = vrot.lane.b32.xlu0 %v359_v46, %s4413_s25  ;;  %v609_v46 = vmul.bf16 %v4769_v6, %v4532_v39 }
  0xf4   : > { %451 = vrot.lane.b32.xlu1 %v426_v47, %s4413_s25  ;;  %387 = vrot.lane.b32.xlu0 %v362_v48, %s4413_s25 }
  0xf8   : > { %495 = vrot.lane.b32.xlu1 %v4561_v49, %s4415_s8  ;;  %493 = vrot.lane.b32.xlu0 %v4500_v22, %s4415_s8 }
  0xfc   : > { %548 = vrot.lane.b32.xlu1 %v4498_v21, %s4415_s8  ;;  %4284 = vrot.lane.b32.xlu0 %v6265_v14, %s4415_s8 }
  0xfe   : > { %v4730_v56 = vpop.permute.xlu1 %863  ;;  %v4732_v57 = vpop.permute.xlu0 %798 }
 0x100   : > { %499 = vrot.lane.b32.xlu1 %v4518_v31, %s4415_s8  ;;  %550 = vrot.lane.b32.xlu0 %v4563_v50, %s4415_s8 }
 0x102   : > { %v4738_v60 = vpop.permute.xlu1 %869  ;;  %v4740_v61 = vpop.permute.xlu0 %804 }
 0x104   : > { %4289 = vrot.lane.b32.xlu1 %v6265_v14, %s4415_s8  ;;  %501 = vrot.lane.b32.xlu0 %v4581_v58, %s4415_s8 }
 0x106   : > { %v4746_v62 = vpop.permute.xlu1 %875  ;;  %v4748_v63 = vpop.permute.xlu0 %810 }
 0x108   : > { %556 = vrot.lane.b32.xlu1 %v4583_v59, %s4415_s8  ;;  %554 = vrot.lane.b32.xlu0 %v4516_v30, %s4415_s8 }
 0x10a   : > { %v4754_v0 = vpop.permute.xlu1 %1021  ;;  %v4756_v1 = vpop.permute.xlu0 %958 }
 0x10c   : > { %507 = vrot.lane.b32.xlu1 %v4595_v2, %s4415_s8  ;;  %505 = vrot.lane.b32.xlu0 %v4532_v39, %s4415_s8 }
 0x10e   : > { %v4762_v4 = vpop.permute.xlu1 %1027  ;;  %v4764_v5 = vpop.permute.xlu0 %964 }
 0x110   : > { %560 = vrot.lane.b32.xlu1 %v4530_v38, %s4415_s8  ;;  %4294 = vrot.lane.b32.xlu0 %v6265_v14, %s4415_s8 }
 0x112   : > { %v4775_v9 = vpop.permute.xlu1 %1033  ;;  %v4777_v10 = vpop.permute.xlu0 %970 }
 0x114   : > { %622 = vrot.lane.b32.xlu1 %v603_v11, %s4412_s24  ;;  %562 = vrot.lane.b32.xlu0 %v4597_v3, %s4415_s8  ;;  %v610_v11 = vmul.bf16 %v4700_v42, %v4595_v2 }
 0x116   : > { %v4787_v13 = vpop.permute.xlu1 %437  ;;  %v4789_v17 = vpop.permute.xlu0 %373 }
 0x118   : > { %620 = vrot.lane.b32.xlu1 %v4785_v12, %s4412_s24  ;;  %624 = vrot.lane.b32.xlu0 %v604_v19, %s4412_s24 }
 0x11a   : > { %v4796_v20 = vpop.permute.xlu1 %443  ;;  %v4798_v23 = vpop.permute.xlu0 %379 }
 0x11c   : > { %688 = vrot.lane.b32.xlu1 %v668_v44, %s4412_s24  ;;  %686 = vrot.lane.b32.xlu0 %v667_v15, %s4412_s24  ;;  %v674_v15 = vmul.bf16 %v4700_v42, %v4597_v3 }
 0x11e   : > { %v4806_v25 = vpop.permute.xlu1 %449  ;;  %v4808_v26 = vpop.permute.xlu0 %385 }
 0x120   : > { %628 = vrot.lane.b32.xlu1 %v606_v28, %s4412_s24  ;;  %684 = vrot.lane.b32.xlu0 %v4785_v12, %s4412_s24  ;;  %v673_v28 = vmul.bf16 %v4769_v6, %v4530_v38 }
 0x122   : > { %v803_v29 = vpop.permute.xlu1 %802  ;;  %v868_v32 = vpop.permute.xlu0 %867 }
 0x124   : > { %626 = vrot.lane.b32.xlu1 %v4785_v12, %s4412_s24  ;;  %630 = vrot.lane.b32.xlu0 %v607_v33, %s4412_s24  ;;  %v4859_v33 = vsel %vm638_vm9, %v4714_v53, %v4712_v52 }
 0x126   : > { %v4820_v34 = vpop.permute.xlu1 %808  ;;  %v4822_v35 = vpop.permute.xlu0 %873 }
 0x128   : > { %694 = vrot.lane.b32.xlu1 %v671_v37, %s4412_s24  ;;  %692 = vrot.lane.b32.xlu0 %v670_v40, %s4412_s24 }
 0x12a   : > { %v4830_v41 = vpop.permute.xlu1 %814  ;;  %v4832_v45 = vpop.permute.xlu0 %879 }
 0x12c   : > { %634 = vrot.lane.b32.xlu1 %v609_v46, %s4412_s24  ;;  %690 = vrot.lane.b32.xlu0 %v4785_v12, %s4412_s24  ;;  %v1443_v46 = vmul.bf16 %v4859_v33, %v4561_v49 }
 0x12e   : > { %v4839_v47 = vpop.permute.xlu1 %962  ;;  %v4841_v48 = vpop.permute.xlu0 %1025 }
 0x130   : > { %632 = vrot.lane.b32.xlu1 %v4785_v12, %s4412_s24  ;;  %636 = vrot.lane.b32.xlu0 %v610_v11, %s4412_s24  ;;  %v4873_v11 = vmul.bf16 0, %v4712_v52  ;;  %v1507_v52 = vmul.bf16 %v4859_v33, %v4563_v50 }
 0x132   : > { %v4848_v19 = vpop.permute.xlu1 %968  ;;  %v4850_v44 = vpop.permute.xlu0 %1031 }
 0x134   : > { %700 = vrot.lane.b32.xlu1 %v674_v15, %s4412_s24  ;;  %698 = vrot.lane.b32.xlu0 %v673_v28, %s4412_s24  ;;  %v1442_v28 = vmul.bf16 %v4714_v53, %v4500_v22 }
 0x136   : > { %v4863_v37 = vpop.permute.xlu1 %974  ;;  %v4865_v40 = vpop.permute.xlu0 %1037 }
 0x138   : > { %1462 = vrot.lane.b32.xlu1 %v1443_v46, %s4411_s23  ;;  %696 = vrot.lane.b32.xlu0 %v4785_v12, %s4412_s24 }
 0x13a   : > { %v4875_v14 = vpop.permute.xlu1 %377  ;;  %v4877_v15 = vpop.permute.xlu0 %441 }
 0x13c   : > { %1460 = vrot.lane.b32.xlu1 %v1442_v28, %s4411_s23  ;;  %1464 = vrot.lane.b32.xlu0 %v4873_v11, %s4411_s23  ;;  %v1446_v28 = vmul.bf16 %v4859_v33, %v4581_v58 }
 0x13e   : > { %v4884_v42 = vpop.permute.xlu1 %383  ;;  %v4886_v46 = vpop.permute.xlu0 %447 }
 0x140   : > { %1528 = vrot.lane.b32.xlu1 %v4873_v11, %s4411_s23  ;;  %1526 = vrot.lane.b32.xlu0 %v1507_v52, %s4411_s23 }
 0x142   : > { %v4893_v8 = vpop.permute.xlu1 %389  ;;  %v4895_v27 = vpop.permute.xlu0 %453 }
 0x144   : > { %1468 = vrot.lane.b32.xlu1 %v1446_v28, %s4411_s23  ;;  %1524 = vrot.lane.b32.xlu0 %v1506_v51, %s4411_s23 }
 0x146   : > { %v866_v6 = vpop.permute.xlu1 %865  ;;  %v801_v36 = vpop.permute.xlu0 %800 }
 0x147   : > { %v818_v52 = vsel %vm816_vm5, %v801_v36, %v803_v29  ;;  %v882_v18 = vsel %vm816_vm5, %v866_v6, %v868_v32  ;;  %v817_v12 = vsel %vm816_vm5, %v4732_v57, %v801_v36  ;;  %v881_v43 = vsel %vm816_vm5, %v4730_v56, %v866_v6 }
 0x148   : > { %1137 = vmatprep.subr.bf16.mxu0 %v818_v52  ;;  %1200 = vmatprep.subr.bf16.mxu1 %v882_v18  ;;  %v1510_v29 = vmul.bf16 %v4859_v33, %v4583_v59  ;;  %v1449_v6 = vmul.bf16 %v4859_v33, %v4595_v2 }
 0x149   : > { %1466 = vrot.lane.b32.xlu1 %v1445_v24, %s4411_s23  ;;  %1470 = vrot.lane.b32.xlu0 %v4873_v11, %s4411_s23 }
 0x14a   : > { %1138 = vmatpush1.bf16.msra.mxu0 %v817_v12  ;;  %1201 = vmatpush1.bf16.msra.mxu1 %v881_v43  ;;  %v872_v51 = vpop.permute.xlu1 %871  ;;  %v807_v28 = vpop.permute.xlu0 %806 }
 0x14b   : > { %v820_v36 = vsel %vm816_vm5, %v807_v28, %v4820_v34  ;;  %v884_v56 = vsel %vm816_vm5, %v872_v51, %v4822_v35  ;;  %v819_v18 = vsel %vm816_vm5, %v4740_v61, %v807_v28  ;;  %v883_v24 = vsel %vm816_vm5, %v4738_v60, %v872_v51 }
 0x14c   : > { %1139 = vmatprep.subr.bf16.mxu0 %v820_v36  ;;  %1202 = vmatprep.subr.bf16.mxu1 %v884_v56  ;;  %v1509_v61 = vmul.bf16 %v4714_v53, %v4516_v30 }
 0x14d   : > { %1534 = vrot.lane.b32.xlu1 %v4873_v11, %s4411_s23  ;;  %1532 = vrot.lane.b32.xlu0 %v1510_v29, %s4411_s23  ;;  %v1512_v29 = vmul.bf16 %v4714_v53, %v4530_v38 }
 0x14e   : > { %1140 = vmatpush1.bf16.msra.mxu0 %v819_v18  ;;  %1203 = vmatpush1.bf16.msra.mxu1 %v883_v24  ;;  %v878_v43 = vpop.permute.xlu1 %877  ;;  %v813_v57 = vpop.permute.xlu0 %812 }
 0x14f   : > { %v822_v60 = vsel %vm816_vm5, %v813_v57, %v4830_v41  ;;  %v886_v12 = vsel %vm816_vm5, %v878_v43, %v4832_v45  ;;  %v821_v32 = vsel %vm816_vm5, %v4748_v63, %v813_v57  ;;  %v885_v34 = vsel %vm816_vm5, %v4746_v62, %v878_v43 }
 0x150   : > { %1141 = vmatprep.subr.bf16.mxu0 %v822_v60  ;;  %1204 = vmatprep.subr.bf16.mxu1 %v886_v12  ;;  %v1448_v63 = vmul.bf16 %v4714_v53, %v4532_v39  ;;  %v1513_v45 = vmul.bf16 %v4859_v33, %v4597_v3  ;;  %v6309_v43 = vmov 0  }
 0x151   : > { %1474 = vrot.lane.b32.xlu1 %v1449_v6, %s4411_s23  ;;  %1530 = vrot.lane.b32.xlu0 %v1509_v61, %s4411_s23 }
 0x152   : > { %1142 = vmatpush1.bf16.msra.mxu0 %v821_v32  ;;  %1205 = vmatpush1.bf16.msra.mxu1 %v885_v34  ;;  %v1024_v35 = vpop.permute.xlu1 %1023  ;;  %v961_v52 = vpop.permute.xlu0 %960 }
 0x153   : > { %1143 = vmatprep.subr.bf16.mxu0 %v4561_v49  ;;  %1206 = vmatprep.subr.bf16.mxu1 %v4563_v50  ;;  %v977_v56 = vsel %vm775_vm4, %v961_v52, %v4839_v47  ;;  %v1040_v18 = vsel %vm775_vm4, %v1024_v35, %v4841_v48  ;;  %v976_v57 = vsel %vm775_vm4, %v4756_v1, %v961_v52  ;;  %v4345_v52 = vld [vmem:[%s6260_s1 + $0x30] ss:$8 sps:$4 sm:$0xff]  }
 0x154   : > { %v1039_v6 = vsel %vm775_vm4, %v4754_v0, %v1024_v35 }
 0x155   : > { %1472 = vrot.lane.b32.xlu1 %v1448_v63, %s4411_s23  ;;  %1476 = vrot.lane.b32.xlu0 %v4873_v11, %s4411_s23  ;;  %v4348_v63 = vld [vmem:[%s6260_s1 + $0x44] ss:$8 sps:$4 sm:$0xff]  }
 0x156   : > { %1144 = vmatpush1.bf16.msra.mxu0 %v4500_v22  ;;  %1207 = vmatpush1.bf16.msra.mxu1 %v4498_v21  ;;  %v1030_v62 = vpop.permute.xlu1 %1029  ;;  %v967_v41 = vpop.permute.xlu0 %966 }
 0x157   : > { %1145 = vmatprep.subr.bf16.mxu0 %v4581_v58  ;;  %1208 = vmatprep.subr.bf16.mxu1 %v4583_v59  ;;  %v979_v48 = vsel %vm775_vm4, %v967_v41, %v4848_v19  ;;  %v1042_v61 = vsel %vm775_vm4, %v1030_v62, %v4850_v44  ;;  %v978_v0 = vsel %vm775_vm4, %v4764_v5, %v967_v41 }
 0x158   : > { %v1041_v1 = vsel %vm775_vm4, %v4762_v4, %v1030_v62 }
 0x159   : > { %1540 = vrot.lane.b32.xlu1 %v4873_v11, %s4411_s23  ;;  %1538 = vrot.lane.b32.xlu0 %v1513_v45, %s4411_s23 }
 0x15a   : > { %1146 = vmatpush1.bf16.msra.mxu0 %v4518_v31  ;;  %1209 = vmatpush1.bf16.msra.mxu1 %v4516_v30  ;;  %v1036_v51 = vpop.permute.xlu1 %1035  ;;  %v973_v28 = vpop.permute.xlu0 %972 }
 0x15b   : > { %1147 = vmatprep.subr.bf16.mxu0 %v4595_v2  ;;  %1210 = vmatprep.subr.bf16.mxu1 %v4597_v3  ;;  %v981_v44 = vsel %vm775_vm4, %v973_v28, %v4863_v37  ;;  %v1044_v12 = vsel %vm775_vm4, %v1036_v51, %v4865_v40  ;;  %v980_v4 = vsel %vm775_vm4, %v4777_v10, %v973_v28 }
 0x15c   : > { %v1043_v5 = vsel %vm775_vm4, %v4775_v9, %v1036_v51 }
 0x15d   : > { %1580 = vrot.lane.b32.xlu1 %v4561_v49, %s4416_s9  ;;  %1536 = vrot.lane.b32.xlu0 %v1512_v29, %s4411_s23 }
 0x15e   : > { %1148 = vmatpush1.bf16.msra.mxu0 %v4532_v39  ;;  %1211 = vmatpush1.bf16.msra.mxu1 %v4530_v38  ;;  %v440_v36 = vpop.permute.xlu1 %439  ;;  %v376_v24 = vpop.permute.xlu0 %375 }
 0x15f   : > { %1149 = vmatprep.subr.bf16.mxu0 %v977_v56  ;;  %1212 = vmatprep.subr.bf16.mxu1 %v1040_v18  ;;  %v393_v40 = vsel %vm391_vm10, %v376_v24, %v4875_v14  ;;  %v456_v34 = vsel %vm391_vm10, %v440_v36, %v4877_v15  ;;  %v392_v14 = vsel %vm391_vm10, %v4789_v17, %v376_v24 }
 0x160   : > { %v455_v9 = vsel %vm391_vm10, %v4787_v13, %v440_v36 }
 0x161   : > { %1578 = vrot.lane.b32.xlu1 %v4500_v22, %s4416_s9  ;;  %4299 = vrot.lane.b32.xlu0 %v6309_v43, %s4416_s9 }
 0x162   : > { %1150 = vmatpush1.bf16.msra.mxu0 %v976_v57  ;;  %1213 = vmatpush1.bf16.msra.mxu1 %v1039_v6  ;;  %v446_v47 = vpop.permute.xlu1 %445  ;;  %v382_v60 = vpop.permute.xlu0 %381 }
 0x163   : > { %1151 = vmatprep.subr.bf16.mxu0 %v979_v48  ;;  %1214 = vmatprep.subr.bf16.mxu1 %v1042_v61  ;;  %v395_v62 = vsel %vm391_vm10, %v382_v60, %v4884_v42  ;;  %v458_v41 = vsel %vm391_vm10, %v446_v47, %v4886_v46  ;;  %v394_v13 = vsel %vm391_vm10, %v4798_v23, %v382_v60  ;;  %v4350_v42 = vld [vmem:[%s6260_s1 + $0x40] ss:$8 sps:$4 sm:$0xff]   ;;  %v4353_v60 = vld [vmem:[%s6260_s1 + $0x50] ss:$8 sps:$4 sm:$0xff]  }
 0x164   : > { %v457_v17 = vsel %vm391_vm10, %v4796_v20, %v446_v47 }
 0x165   : > { %1633 = vrot.lane.b32.xlu1 %v4498_v21, %s4416_s9  ;;  %1635 = vrot.lane.b32.xlu0 %v4563_v50, %s4416_s9 }
 0x166   : > { %1152 = vmatpush1.bf16.msra.mxu0 %v978_v0  ;;  %1215 = vmatpush1.bf16.msra.mxu1 %v1041_v1  ;;  %v452_v19 = vpop.permute.xlu1 %451  ;;  %v388_v32 = vpop.permute.xlu0 %387  ;;  %v5073_v0 = vmul.bf16 0, %v4722_v54 }
 0x167   : > { %1153 = vmatprep.subr.bf16.mxu0 %v981_v44  ;;  %1216 = vmatprep.subr.bf16.mxu1 %v1044_v12  ;;  %v397_v46 = vsel %vm391_vm10, %v388_v32, %v4893_v8  ;;  %v460_v23 = vsel %vm391_vm10, %v452_v19, %v4895_v27  ;;  %v396_v29 = vsel %vm391_vm10, %v4808_v26, %v388_v32  ;;  %v4351_v27 = vld [vmem:[%s6260_s1 + $0x54] ss:$8 sps:$4 sm:$0xff]   ;;  %v4356_v32 = vld [vmem:[%s6260_s1 + $0x4] ss:$8 sps:$4 sm:$0xff]  }
 0x168   : > { %v459_v36 = vsel %vm391_vm10, %v4806_v25, %v452_v19  ;;  %v5059_v25 = vsel %vm391_vm10, %v4724_v55, %v4722_v54 }
 0x169   : > { %4304 = vrot.lane.b32.xlu1 %v6309_v43, %s4416_s9  ;;  %1586 = vrot.lane.b32.xlu0 %v4581_v58, %s4416_s9  ;;  %v1687_v19 = vmul.bf16 %v5059_v25, %v4561_v49  ;;  %v1750_v49 = vmul.bf16 %v5059_v25, %v4563_v50  ;;  %v1749_v50 = vmul.bf16 %v4724_v55, %v4498_v21 }
 0x16a   : > { %1154 = vmatpush1.bf16.msra.mxu0 %v980_v4  ;;  %1217 = vmatpush1.bf16.msra.mxu1 %v1043_v5  ;;  %v496_v37 = vpop.permute.xlu1 %495  ;;  %v494_v35 = vpop.permute.xlu0 %493 }
 0x16b   : > { %1299 = vmatprep.subr.bf16.mxu0 %v393_v40  ;;  %1362 = vmatprep.subr.bf16.mxu1 %v456_v34  ;;  %v511_v18 = vsel %vm509_vm7, %v494_v35, %v496_v37  ;;  %v1686_v37 = vmul.bf16 %v4724_v55, %v4500_v22 }
 0x16d   : > { %1641 = vrot.lane.b32.xlu1 %v4583_v59, %s4416_s9  ;;  %1584 = vrot.lane.b32.xlu0 %v4518_v31, %s4416_s9 }
 0x16e   : > { %1170 = vmatmul.mubr.bf16.vlgmr.msra.gmra.mrb[0].mxu0 %v4345_v52  ;;  %1233 = vmatmul.mubr.bf16.vlgmr.msra.gmra.mrb[0].mxu1 %v4345_v52  ;;  %v549_v10 = vpop.permute.xlu1 %548  ;;  %v4285_v15 = vpop.permute.xlu0 %4284 }
 0x16f   : > { %1300 = vmatpush1.bf16.msra.mxu0 %v392_v14  ;;  %1363 = vmatpush1.bf16.msra.mxu1 %v455_v9  ;;  %v4287_v20 = vunpack.i.h.bf16 %v4285_v15  ;;  %v4286_v28 = vunpack.i.l.bf16 %v4285_v15  ;;  %v1690_v15 = vmul.bf16 %v5059_v25, %v4581_v58  ;;  %v1689_v58 = vmul.bf16 %v4724_v55, %v4518_v31 }
 0x170   : > { %1301 = vmatprep.subr.bf16.mxu0 %v395_v62  ;;  %1364 = vmatprep.subr.bf16.mxu1 %v458_v41 }
 0x171   : > { %1592 = vrot.lane.b32.xlu1 %v4595_v2, %s4416_s9  ;;  %1639 = vrot.lane.b32.xlu0 %v4516_v30, %s4416_s9  ;;  %v510_v6 = vsel %vm509_vm7, %v4286_v28, %v494_v35  ;;  %v564_v47 = vsel %vm509_vm7, %v4287_v20, %v549_v10  ;;  %v1693_v28 = vmul.bf16 %v5059_v25, %v4595_v2 }
 0x172   : > { %v500_v45 = vpop.permute.xlu1 %499  ;;  %v551_v51 = vpop.permute.xlu0 %550  ;;  %4047 = vmatprep.mubr.msk.bf16.mxu0 %vm509_vm7, %v4348_v63  ;;  %4050 = vmatprep.mubr.msk.bf16.mxu1 %vm509_vm7, %v4348_v63 }
 0x173   : > { %1302 = vmatpush1.bf16.msra.mxu0 %v394_v13  ;;  %1365 = vmatpush1.bf16.msra.mxu1 %v457_v17  ;;  %v565_v24 = vsel %vm509_vm7, %v549_v10, %v551_v51  ;;  %v1753_v17 = vmul.bf16 %v5059_v25, %v4583_v59 }
 0x174   : > { %1303 = vmatprep.subr.bf16.mxu0 %v397_v46  ;;  %1366 = vmatprep.subr.bf16.mxu1 %v460_v23  ;;  %v1752_v46 = vmul.bf16 %v4724_v55, %v4516_v30 }
 0x175   : > { %1590 = vrot.lane.b32.xlu1 %v4532_v39, %s4416_s9  ;;  %4309 = vrot.lane.b32.xlu0 %v6309_v43, %s4416_s9 }
 0x176   : > { %v4290_v8 = vpop.permute.xlu1 %4289  ;;  %v502_v56 = vpop.permute.xlu0 %501  ;;  %1180 = vmatmul.mubr.bf16.gmra.mrb[4].mxu0 %v4350_v42  ;;  %1243 = vmatmul.mubr.bf16.gmra.mrb[4].mxu1 %v4350_v42 }
 0x177   : > { %1304 = vmatpush1.bf16.msra.mxu0 %v396_v29  ;;  %1367 = vmatpush1.bf16.msra.mxu1 %v459_v36  ;;  %v4292_v57 = vunpack.i.h.bf16 %v4290_v8  ;;  %v4291_v26 = vunpack.i.l.bf16 %v4290_v8  ;;  %v513_v1 = vsel %vm509_vm7, %v500_v45, %v502_v56  ;;  %v1756_v8 = vmul.bf16 %v5059_v25, %v4597_v3 }
 0x178   : > { %1305 = vmatprep.subr.bf16.mxu0 %v511_v18  ;;  %1368 = vmatprep.subr.bf16.mxu1 %v565_v24  ;;  %v1692_v56 = vmul.bf16 %v4724_v55, %v4532_v39  ;;  %v1755_v24 = vmul.bf16 %v4724_v55, %v4530_v38 }
 0x179   : > { %1645 = vrot.lane.b32.xlu1 %v4530_v38, %s4416_s9  ;;  %1647 = vrot.lane.b32.xlu0 %v4597_v3, %s4416_s9  ;;  %v512_v54 = vsel %vm509_vm7, %v4291_v26, %v500_v45  ;;  %v2033_v26 = vld [vmem:[%s6261_s2 + $0x8] sm:$0xff] }
 0x17a   : > { %v557_v48 = vpop.permute.xlu1 %556  ;;  %v555_v61 = vpop.permute.xlu0 %554  ;;  %4048 = vmatprep.mubr.msk.bf16.mxu0 %vm509_vm7, %v4351_v27  ;;  %4051 = vmatprep.mubr.msk.bf16.mxu1 %vm509_vm7, %v4351_v27 }
 0x17b   : > { %1306 = vmatpush1.bf16.msra.mxu0 %v510_v6  ;;  %1369 = vmatpush1.bf16.msra.mxu1 %v564_v47  ;;  %v567_v44 = vsel %vm509_vm7, %v555_v61, %v557_v48  ;;  %v566_v12 = vsel %vm509_vm7, %v4292_v57, %v555_v61  ;;  %v2032_v6 = vld [vmem:[%s6261_s2] sm:$0xff]  ;;  %v2034_v61 = vld [vmem:[%s6261_s2 + $0x10] sm:$0xff] }
 0x17c   : > { %1307 = vmatprep.subr.bf16.mxu0 %v513_v1  ;;  %1370 = vmatprep.subr.bf16.mxu1 %v567_v44 }
 0x17d   : > { %1708 = vrot.lane.b32.xlu1 %v5073_v0, %s4410_s22  ;;  %1706 = vrot.lane.b32.xlu0 %v1687_v19, %s4410_s22 }
 0x17e   : > { %v508_v4 = vpop.permute.xlu1 %507  ;;  %v506_v5 = vpop.permute.xlu0 %505  ;;  %1190 = vmatmul.mubr.bf16.gmra.mrb[8].mxu0 %v4353_v60  ;;  %1253 = vmatmul.mubr.bf16.gmra.mrb[8].mxu1 %v4353_v60  ;;  %v2035_v60 = vld [vmem:[%s6261_s2 + $0x18] sm:$0xff] }
 0x17f   : > { %1308 = vmatpush1.bf16.msra.mxu0 %v512_v54  ;;  %1371 = vmatpush1.bf16.msra.mxu1 %v566_v12  ;;  %v515_v40 = vsel %vm509_vm7, %v506_v5, %v508_v4  ;;  %v2037_v54 = vld [vmem:[%s6261_s2 + $0x28] sm:$0xff] }
 0x180   : > { %1309 = vmatprep.subr.bf16.mxu0 %v515_v40  ;;  %4058 = vmatprep.mubr.msk.bf16.mxu0 %vm509_vm7, %v4356_v32  ;;  %v4354_v4 = vld [vmem:[%s6260_s1] ss:$8 sps:$4 sm:$0xff]  }
 0x181   : > { %1769 = vrot.lane.b32.xlu1 %v1750_v49, %s4410_s22  ;;  %1704 = vrot.lane.b32.xlu0 %v1686_v37, %s4410_s22  ;;  %v4357_v49 = vld [vmem:[%s6260_s1 + $0x14] ss:$8 sps:$4 sm:$0xff]  }
 0x182   : > { %v561_v34 = vpop.permute.xlu1 %560  ;;  %v4295_v35 = vpop.permute.xlu0 %4294  ;;  %4061 = vmatprep.mubr.msk.bf16.mxu1 %vm509_vm7, %v4356_v32  ;;  %v2036_v32 = vld [vmem:[%s6261_s2 + $0x20] sm:$0xff] }
 0x183   : > { %v4296_v52 = vunpack.i.l.bf16 %v4295_v35  ;;  %v4297_v14 = vunpack.i.h.bf16 %v4295_v35 }
 0x185   : > { %1767 = vrot.lane.b32.xlu1 %v1749_v50, %s4410_s22  ;;  %1771 = vrot.lane.b32.xlu0 %v5073_v0, %s4410_s22  ;;  %v514_v22 = vsel %vm509_vm7, %v4296_v52, %v506_v5  ;;  %v568_v21 = vsel %vm509_vm7, %v4297_v14, %v561_v34 }
 0x186   : > { %v623_v9 = vpop.permute.xlu1 %622  ;;  %v563_v10 = vpop.permute.xlu0 %562  ;;  %1310 = vmatpush1.bf16.msra.mxu0 %v514_v22  ;;  %v4359_v22 = vld [vmem:[%s6260_s1 + $0x10] ss:$8 sps:$4 sm:$0xff]  }
 0x187   : > { %v569_v63 = vsel %vm509_vm7, %v561_v34, %v563_v10 }
 0x188   : > { %1372 = vmatprep.subr.bf16.mxu1 %v569_v63 }
 0x189   : > { %1714 = vrot.lane.b32.xlu1 %v5073_v0, %s4410_s22  ;;  %1712 = vrot.lane.b32.xlu0 %v1690_v15, %s4410_s22 }
 0x18a   : > { %1373 = vmatpush1.bf16.msra.mxu1 %v568_v21  ;;  %v621_v62 = vpop.permute.xlu1 %620  ;;  %v625_v41 = vpop.permute.xlu0 %624 }
 0x18b   : > { %v639_v13 = vsel %vm638_vm9, %v621_v62, %v623_v9  ;;  %v640_v45 = vsel %vm638_vm9, %v623_v9, %v625_v41  ;;  %v4360_v9 = vld [vmem:[%s6260_s1 + $0x24] ss:$8 sps:$4 sm:$0xff]  }
 0x18c   : > { %1311 = vmatprep.subr.bf16.mxu0 %v640_v45 }
 0x18d   : > { %1775 = vrot.lane.b32.xlu1 %v1753_v17, %s4410_s22  ;;  %1710 = vrot.lane.b32.xlu0 %v1689_v58, %s4410_s22  ;;  %v4365_v17 = vld [vmem:[%s6260_s1 + $0x64] ss:$8 sps:$4 sm:$0xff]  }
 0x18e   : > { %1312 = vmatpush1.bf16.msra.mxu0 %v639_v13  ;;  %v689_v51 = vpop.permute.xlu1 %688  ;;  %v687_v42 = vpop.permute.xlu0 %686  ;;  %v4362_v13 = vld [vmem:[%s6260_s1 + $0x20] ss:$8 sps:$4 sm:$0xff]  }
 0x18f   : > { %v703_v23 = vsel %vm638_vm9, %v687_v42, %v689_v51 }
 0x190   : > { %1374 = vmatprep.subr.bf16.mxu1 %v703_v23 }
 0x191   : > { %1773 = vrot.lane.b32.xlu1 %v1752_v46, %s4410_s22  ;;  %1777 = vrot.lane.b32.xlu0 %v5073_v0, %s4410_s22 }
 0x192   : > { %v629_v31 = vpop.permute.xlu1 %628  ;;  %v685_v59 = vpop.permute.xlu0 %684 }
 0x193   : > { %v702_v20 = vsel %vm638_vm9, %v685_v59, %v687_v42 }
 0x194   : > { %1375 = vmatpush1.bf16.msra.mxu1 %v702_v20 }
 0x195   : > { %1720 = vrot.lane.b32.xlu1 %v5073_v0, %s4410_s22  ;;  %1718 = vrot.lane.b32.xlu0 %v1693_v28, %s4410_s22  ;;  %v6310_v28 = vld [vmem:[#allocation5_spill] sm:$0xff] }
 0x196   : > { %v627_v30 = vpop.permute.xlu1 %626  ;;  %v631_v29 = vpop.permute.xlu0 %630 }
 0x197   : > { %v641_v36 = vsel %vm638_vm9, %v627_v30, %v629_v31  ;;  %v642_v27 = vsel %vm638_vm9, %v629_v31, %v631_v29 }
 0x198   : > { %1313 = vmatprep.subr.bf16.mxu0 %v642_v27 }
 0x199   : > { %1781 = vrot.lane.b32.xlu1 %v1756_v8, %s4410_s22  ;;  %1716 = vrot.lane.b32.xlu0 %v1692_v56, %s4410_s22 }
 0x19a   : > { %1314 = vmatpush1.bf16.msra.mxu0 %v641_v36  ;;  %v695_v2 = vpop.permute.xlu1 %694  ;;  %v693_v18 = vpop.permute.xlu0 %692 }
 0x19b   : > { %v705_v57 = vsel %vm638_vm9, %v693_v18, %v695_v2 }
 0x19c   : > { %1376 = vmatprep.subr.bf16.mxu1 %v705_v57 }
 0x19d   : > { %1779 = vrot.lane.b32.xlu1 %v1755_v24, %s4410_s22  ;;  %1783 = vrot.lane.b32.xlu0 %v5073_v0, %s4410_s22 }
 0x19e   : > { %v635_v39 = vpop.permute.xlu1 %634  ;;  %v691_v3 = vpop.permute.xlu0 %690 }
 0x19f   : > { %v704_v38 = vsel %vm638_vm9, %v691_v3, %v693_v18 }
 0x1a0   : > { %1377 = vmatpush1.bf16.msra.mxu1 %v704_v38 }
 0x1a1   : > { %2045 = vperm.xlu1 %4314, %v2033_v26   ;;  %2040 = vperm.xlu0 %4313, %v2032_v6   ;;  %v6311_v26 = vld [vmem:[#allocation13_spill] sm:$0xff] }
 0x1a2   : > { %v633_v47 = vpop.permute.xlu1 %632  ;;  %v637_v48 = vpop.permute.xlu0 %636 }
 0x1a3   : > { %v643_v1 = vsel %vm638_vm9, %v633_v47, %v635_v39  ;;  %v644_v19 = vsel %vm638_vm9, %v635_v39, %v637_v48 }
 0x1a4   : > { %1315 = vmatprep.subr.bf16.mxu0 %v644_v19 }
 0x1a5   : > { %2050 = vperm.xlu1 %4314, %v2034_v61   ;;  %2055 = vperm.xlu0 %4313, %v2035_v60  }
 0x1a6   : > { %1316 = vmatpush1.bf16.msra.mxu0 %v643_v1  ;;  %v701_v44 = vpop.permute.xlu1 %700  ;;  %v699_v12 = vpop.permute.xlu0 %698 }
 0x1a7   : > { %v707_v5 = vsel %vm638_vm9, %v699_v12, %v701_v44 }
 0x1a8   : > { %1378 = vmatprep.subr.bf16.mxu1 %v707_v5 }
 0x1a9   : > { %2060 = vperm.xlu1 %4314, %v2036_v32   ;;  %2065 = vperm.xlu0 %4313, %v2037_v54  }
 0x1aa   : > { %v1463_v37 = vpop.permute.xlu1 %1462  ;;  %v697_v40 = vpop.permute.xlu0 %696  ;;  %1332 = vmatmul.mubr.bf16.vlgmr.msra.gmra.mrb[0].mxu0 %v4354_v4 }
 0x1ab   : > { %v706_v34 = vsel %vm638_vm9, %v697_v40, %v699_v12  ;;  %4059 = vmatprep.mubr.msk.bf16.mxu0 %vm509_vm7, %v4357_v49 }
 0x1ac   : > { %1379 = vmatpush1.bf16.msra.mxu1 %v706_v34 }
 0x1ad   : > { %2617 = vrot.lane.b32.xlu1 %v4484_v16, %s4409_s21  ;;  %2680 = vrot.lane.b32.xlu0 %v4484_v16, %s4409_s21 }
 0x1ae   : > { %v1461_v35 = vpop.permute.xlu1 %1460  ;;  %v1465_v52 = vpop.permute.xlu0 %1464 }
 0x1af   : > { %v1478_v50 = vsel %vm597_vm8, %v1461_v35, %v1463_v37  ;;  %v1479_v14 = vsel %vm597_vm8, %v1463_v37, %v1465_v52  ;;  %1395 = vmatmul.mubr.bf16.vlgmr.msra.gmra.mrb[0].mxu1 %v4354_v4 }
 0x1b0   : > { %1882 = vmatprep.subr.bf16.mxu0 %v1479_v14  ;;  %4062 = vmatprep.mubr.msk.bf16.mxu1 %vm509_vm7, %v4357_v49 }
 0x1b1   : > { %2623 = vrot.lane.b32.xlu1 %v4484_v16, %s4409_s21  ;;  %2686 = vrot.lane.b32.xlu0 %v4484_v16, %s4409_s21 }
 0x1b2   : > { %1883 = vmatpush1.bf16.msra.mxu0 %v1478_v50  ;;  %v1529_v10 = vpop.permute.xlu1 %1528  ;;  %v1527_v15 = vpop.permute.xlu0 %1526 }
 0x1b3   : > { %v1543_v63 = vsel %vm597_vm8, %v1527_v15, %v1529_v10  ;;  %1342 = vmatmul.mubr.bf16.gmra.mrb[4].mxu0 %v4359_v22 }
 0x1b4   : > { %1945 = vmatprep.subr.bf16.mxu1 %v1543_v63  ;;  %4060 = vmatprep.mubr.msk.bf16.mxu0 %vm509_vm7, %v4360_v9 }
 0x1b5   : > { %2629 = vrot.lane.b32.xlu1 %v4484_v16, %s4409_s21  ;;  %2692 = vrot.lane.b32.xlu0 %v4484_v16, %s4409_s21 }
 0x1b6   : > { %v1469_v21 = vpop.permute.xlu1 %1468  ;;  %v1525_v62 = vpop.permute.xlu0 %1524 }
 0x1b7   : > { %v1542_v41 = vsel %vm597_vm8, %v1525_v62, %v1527_v15  ;;  %1405 = vmatmul.mubr.bf16.gmra.mrb[4].mxu1 %v4359_v22 }
 0x1b8   : > { %1946 = vmatpush1.bf16.msra.mxu1 %v1542_v41  ;;  %4063 = vmatprep.mubr.msk.bf16.mxu1 %vm509_vm7, %v4360_v9 }
 0x1b9   : > { %2834 = vrot.lane.b32.xlu1 %v4603_v7, %s4408_s20  ;;  %2771 = vrot.lane.b32.xlu0 %v4603_v7, %s4408_s20 }
 0x1bb   : > { %v1467_v16 = vpop.permute.xlu1 %1466  ;;  %v1471_v58 = vpop.permute.xlu0 %1470  ;;  %1352 = vmatmul.mubr.bf16.gmra.mrb[8].mxu0 %v4362_v13 }
 0x1bc   : > { %v1480_v45 = vsel %vm597_vm8, %v1467_v16, %v1469_v21  ;;  %v1481_v51 = vsel %vm597_vm8, %v1469_v21, %v1471_v58  ;;  %4076 = vmatprep.mubr.msk.bf16.mxu0 %vm509_vm7, %v4365_v17 }
 0x1bd   : > { %2840 = vrot.lane.b32.xlu1 %v4603_v7, %s4408_s20  ;;  %2777 = vrot.lane.b32.xlu0 %v4603_v7, %s4408_s20 }
 0x1be   : > { %1884 = vmatprep.subr.bf16.mxu0 %v1481_v51 }
 0x1bf   : > { %1885 = vmatpush1.bf16.msra.mxu0 %v1480_v45  ;;  %v1535_v42 = vpop.permute.xlu1 %1534  ;;  %v1533_v46 = vpop.permute.xlu0 %1532  ;;  %1415 = vmatmul.mubr.bf16.gmra.mrb[8].mxu1 %v4362_v13 }
 0x1c0   : > { %v1545_v23 = vsel %vm597_vm8, %v1533_v46, %v1535_v42  ;;  %4079 = vmatprep.mubr.msk.bf16.mxu1 %vm509_vm7, %v4365_v17 }
 0x1c1   : > { %2846 = vrot.lane.b32.xlu1 %v4603_v7, %s4408_s20  ;;  %2783 = vrot.lane.b32.xlu0 %v4603_v7, %s4408_s20 }
 0x1c2   : > { %1947 = vmatprep.subr.bf16.mxu1 %v1545_v23 }
 0x1c3   : > { %v1475_v31 = vpop.permute.xlu1 %1474  ;;  %v1531_v59 = vpop.permute.xlu0 %1530 }
 0x1c4   : > { %v1544_v20 = vsel %vm597_vm8, %v1531_v59, %v1533_v46 }
 0x1c5   : > { %2215 = vrot.lane.b32.xlu1 %v6310_v28, %s4413_s25  ;;  %2278 = vrot.lane.b32.xlu0 %v6310_v28, %s4413_s25 }
 0x1c6   : > { %1948 = vmatpush1.bf16.msra.mxu1 %v1544_v20 }
 0x1c7   : > { %v1473_v30 = vpop.permute.xlu1 %1472  ;;  %v1477_v29 = vpop.permute.xlu0 %1476 }
 0x1c8   : > { %v1482_v36 = vsel %vm597_vm8, %v1473_v30, %v1475_v31  ;;  %v1483_v8 = vsel %vm597_vm8, %v1475_v31, %v1477_v29 }
 0x1c9   : > { %2221 = vrot.lane.b32.xlu1 %v6310_v28, %s4413_s25  ;;  %2284 = vrot.lane.b32.xlu0 %v6310_v28, %s4413_s25 }
 0x1ca   : > { %1886 = vmatprep.subr.bf16.mxu0 %v1483_v8 }
 0x1cb   : > { %1887 = vmatpush1.bf16.msra.mxu0 %v1482_v36  ;;  %v1541_v7 = vpop.permute.xlu1 %1540  ;;  %v1539_v56 = vpop.permute.xlu0 %1538 }
 0x1cc   : > { %v1547_v27 = vsel %vm597_vm8, %v1539_v56, %v1541_v7 }
 0x1cd   : > { %2227 = vrot.lane.b32.xlu1 %v6310_v28, %s4413_s25  ;;  %2290 = vrot.lane.b32.xlu0 %v6310_v28, %s4413_s25 }
 0x1ce   : > { %1949 = vmatprep.subr.bf16.mxu1 %v1547_v27 }
 0x1cf   : > { %v1581_v2 = vpop.permute.xlu1 %1580  ;;  %v1537_v18 = vpop.permute.xlu0 %1536 }
 0x1d0   : > { %v1546_v24 = vsel %vm597_vm8, %v1537_v18, %v1539_v56 }
 0x1d1   : > { %4316 = vrot.lane.b32.xlu1 %v6309_v43, %s4415_s8  ;;  %4321 = vrot.lane.b32.xlu0 %v6309_v43, %s4415_s8 }
 0x1d2   : > { %1950 = vmatpush1.bf16.msra.mxu1 %v1546_v24 }
 0x1d3   : > { %v1579_v57 = vpop.permute.xlu1 %1578  ;;  %v4300_v39 = vpop.permute.xlu0 %4299 }
 0x1d4   : > { %v4301_v3 = vunpack.i.l.bf16 %v4300_v39  ;;  %v4302_v6 = vunpack.i.h.bf16 %v4300_v39  ;;  %v1597_v47 = vsel %vm1596_vm11, %v1579_v57, %v1581_v2 }
 0x1d5   : > { %4326 = vrot.lane.b32.xlu1 %v6309_v43, %s4415_s8  ;;  %2449 = vrot.lane.b32.xlu0 %v6311_v26, %s4412_s24 }
 0x1d6   : > { %v1598_v38 = vsel %vm1596_vm11, %v1581_v2, %v4301_v3  ;;  %v4363_v3 = vld [vmem:[%s6260_s1 + $0x60] ss:$8 sps:$4 sm:$0xff]  }
 0x1d7   : > { %v1634_v48 = vpop.permute.xlu1 %1633  ;;  %v1636_v61 = vpop.permute.xlu0 %1635  ;;  %1888 = vmatprep.subr.bf16.mxu0 %v1598_v38 }
 0x1d8   : > { %1889 = vmatpush1.bf16.msra.mxu0 %v1597_v47  ;;  %v1652_v60 = vsel %vm1596_vm11, %v1636_v61, %v4302_v6  ;;  %v1651_v1 = vsel %vm1596_vm11, %v1634_v48, %v1636_v61  ;;  %v4368_v61 = vld [vmem:[%s6260_s1 + $0x70] ss:$8 sps:$4 sm:$0xff]  }
 0x1d9   : > { %2512 = vrot.lane.b32.xlu1 %v6311_v26, %s4412_s24  ;;  %2455 = vrot.lane.b32.xlu0 %v6311_v26, %s4412_s24 }
 0x1da   : > { %1951 = vmatprep.subr.bf16.mxu1 %v1652_v60  ;;  %v4369_v60 = vld [vmem:[%s6260_s1 + $0x84] ss:$8 sps:$4 sm:$0xff]  }
 0x1db   : > { %1952 = vmatpush1.bf16.msra.mxu1 %v1651_v1  ;;  %v4305_v19 = vpop.permute.xlu1 %4304  ;;  %v1587_v44 = vpop.permute.xlu0 %1586  ;;  %v4371_v1 = vld [vmem:[%s6260_s1 + $0x80] ss:$8 sps:$4 sm:$0xff]  }
 0x1dc   : > { %v4307_v12 = vunpack.i.h.bf16 %v4305_v19  ;;  %v4306_v32 = vunpack.i.l.bf16 %v4305_v19 }
 0x1dd   : > { %2518 = vrot.lane.b32.xlu1 %v6311_v26, %s4412_s24  ;;  %2461 = vrot.lane.b32.xlu0 %v6311_v26, %s4412_s24 }
 0x1de   : > { %v1600_v54 = vsel %vm1596_vm11, %v1587_v44, %v4306_v32 }
 0x1df   : > { %v1642_v4 = vpop.permute.xlu1 %1641  ;;  %v1585_v5 = vpop.permute.xlu0 %1584  ;;  %1890 = vmatprep.subr.bf16.mxu0 %v1600_v54 }
 0x1e0   : > { %v1599_v49 = vsel %vm1596_vm11, %v1585_v5, %v1587_v44  ;;  %v1654_v37 = vsel %vm1596_vm11, %v1642_v4, %v4307_v12 }
 0x1e1   : > { %2524 = vrot.lane.b32.xlu1 %v6311_v26, %s4412_s24  ;;  %3327 = vrot.lane.b32.xlu0 %v4873_v11, %s4411_s23  ;;  %v4366_v26 = vld [vmem:[%s6260_s1 + $0x74] ss:$8 sps:$4 sm:$0xff]  }
 0x1e2   : > { %1891 = vmatpush1.bf16.msra.mxu0 %v1599_v49  ;;  %1953 = vmatprep.subr.bf16.mxu1 %v1654_v37 }
 0x1e3   : > { %v1593_v40 = vpop.permute.xlu1 %1592  ;;  %v1640_v34 = vpop.permute.xlu0 %1639 }
 0x1e4   : > { %v1653_v35 = vsel %vm1596_vm11, %v1640_v34, %v1642_v4  ;;  %v2104_v34 = vld [vmem:[%s4481_s30] sm:$0xff] }
 0x1e5   : > { %3264 = vrot.lane.b32.xlu1 %v4873_v11, %s4411_s23  ;;  %1954 = vmatpush1.bf16.msra.mxu1 %v1653_v35 }
 0x1e7   : > { %v1591_v52 = vpop.permute.xlu1 %1590  ;;  %v4310_v50 = vpop.permute.xlu0 %4309 }
 0x1e8   : > { %v4311_v14 = vunpack.i.l.bf16 %v4310_v50  ;;  %v4312_v22 = vunpack.i.h.bf16 %v4310_v50  ;;  %v1601_v10 = vsel %vm1596_vm11, %v1591_v52, %v1593_v40  ;;  %v2106_v52 = vld [vmem:[%s4481_s30 + $0x10] sm:$0xff] }
 0x1e9   : > { %3270 = vrot.lane.b32.xlu1 %v4873_v11, %s4411_s23 }
 0x1ea   : > { %v1602_v9 = vsel %vm1596_vm11, %v1593_v40, %v4311_v14  ;;  %v2105_v14 = vld [vmem:[%s4481_s30 + $0x8] sm:$0xff] }
 0x1eb   : > { %v1646_v15 = vpop.permute.xlu1 %1645  ;;  %v1648_v63 = vpop.permute.xlu0 %1647  ;;  %1892 = vmatprep.subr.bf16.mxu0 %v1602_v9  ;;  %v2107_v9 = vld [vmem:[%s4481_s30 + $0x18] sm:$0xff] }
 0x1ec   : > { %1893 = vmatpush1.bf16.msra.mxu0 %v1601_v10  ;;  %v1656_v21 = vsel %vm1596_vm11, %v1648_v63, %v4312_v22  ;;  %v1655_v62 = vsel %vm1596_vm11, %v1646_v15, %v1648_v63 }
 0x1ed   : > { %1955 = vmatprep.subr.bf16.mxu1 %v1656_v21 }
 0x1ee   : > { %1956 = vmatpush1.bf16.msra.mxu1 %v1655_v62 }
 0x1ef   : > { %v1709_v41 = vpop.permute.xlu1 %1708  ;;  %v1707_v13 = vpop.permute.xlu0 %1706 }
 0x1f0   : > { %v1723_v17 = vsel %vm350_vm6, %v1707_v13, %v1709_v41 }
 0x1f1   : > { %1894 = vmatprep.subr.bf16.mxu0 %v1723_v17 }
 0x1f3   : > { %v1770_v16 = vpop.permute.xlu1 %1769  ;;  %v1705_v58 = vpop.permute.xlu0 %1704 }
 0x1f4   : > { %v1722_v45 = vsel %vm350_vm6, %v1705_v58, %v1707_v13 }
 0x1f5   : > { %1895 = vmatpush1.bf16.msra.mxu0 %v1722_v45 }
 0x1f7   : > { %v1768_v51 = vpop.permute.xlu1 %1767  ;;  %v1772_v42 = vpop.permute.xlu0 %1771 }
 0x1f8   : > { %v1785_v46 = vsel %vm350_vm6, %v1768_v51, %v1770_v16  ;;  %v1786_v23 = vsel %vm350_vm6, %v1770_v16, %v1772_v42 }
 0x1f9   : > { %1957 = vmatprep.subr.bf16.mxu1 %v1786_v23 }
 0x1fa   : > { %1958 = vmatpush1.bf16.msra.mxu1 %v1785_v46 }
 0x1fb   : > { %v1715_v31 = vpop.permute.xlu1 %1714  ;;  %v1713_v59 = vpop.permute.xlu0 %1712 }
 0x1fc   : > { %v1725_v20 = vsel %vm350_vm6, %v1713_v59, %v1715_v31 }
 0x1fd   : > { %1896 = vmatprep.subr.bf16.mxu0 %v1725_v20 }
 0x1ff   : > { %v1776_v28 = vpop.permute.xlu1 %1775  ;;  %v1711_v30 = vpop.permute.xlu0 %1710 }
 0x200   : > { %v1724_v29 = vsel %vm350_vm6, %v1711_v30, %v1713_v59  ;;  %v4082_v59 = vld [vmem:[%s4481_s30 + $0x60] sm:$0xff] }
 0x201   : > { %1897 = vmatpush1.bf16.msra.mxu0 %v1724_v29 }
 0x203   : > { %v1774_v36 = vpop.permute.xlu1 %1773  ;;  %v1778_v8 = vpop.permute.xlu0 %1777 }
 0x204   : > { %v1787_v7 = vsel %vm350_vm6, %v1774_v36, %v1776_v28  ;;  %v1788_v56 = vsel %vm350_vm6, %v1776_v28, %v1778_v8  ;;  %v4084_v28 = vld [vmem:[%s4481_s30 + $0x70] sm:$0xff] }
 0x205   : > { %1959 = vmatprep.subr.bf16.mxu1 %v1788_v56  ;;  %v4083_v56 = vld [vmem:[%s4481_s30 + $0x68] sm:$0xff] }
 0x206   : > { %1960 = vmatpush1.bf16.msra.mxu1 %v1787_v7 }
 0x207   : > { %v1721_v27 = vpop.permute.xlu1 %1720  ;;  %v1719_v2 = vpop.permute.xlu0 %1718 }
 0x208   : > { %v1727_v18 = vsel %vm350_vm6, %v1719_v2, %v1721_v27 }
 0x209   : > { %1898 = vmatprep.subr.bf16.mxu0 %v1727_v18 }
 0x20b   : > { %v1782_v24 = vpop.permute.xlu1 %1781  ;;  %v1717_v57 = vpop.permute.xlu0 %1716 }
 0x20c   : > { %v1726_v39 = vsel %vm350_vm6, %v1717_v57, %v1719_v2  ;;  %v4085_v2 = vld [vmem:[%s4481_s30 + $0x78] sm:$0xff] }
 0x20d   : > { %1899 = vmatpush1.bf16.msra.mxu0 %v1726_v39 }
 0x20f   : > { %v1780_v6 = vpop.permute.xlu1 %1779  ;;  %v1784_v38 = vpop.permute.xlu0 %1783 }
 0x210   : > { %v1789_v47 = vsel %vm350_vm6, %v1780_v6, %v1782_v24  ;;  %1915 = vmatmul.mubr.bf16.vlgmr.msra.gmra.mrb[0].mxu0 %v4363_v3  ;;  %v1790_v48 = vsel %vm350_vm6, %v1782_v24, %v1784_v38 }
 0x211   : > { %1961 = vmatprep.subr.bf16.mxu1 %v1790_v48  ;;  %4077 = vmatprep.mubr.msk.bf16.mxu0 %vm509_vm7, %v4366_v26 }
 0x212   : > { %1962 = vmatpush1.bf16.msra.mxu1 %v1789_v47  ;;  %v2108_v47 = vld [vmem:[%s4481_s30 + $0x20] sm:$0xff] }
 0x215   : > { %1978 = vmatmul.mubr.bf16.vlgmr.msra.gmra.mrb[0].mxu1 %v4363_v3 }
 0x216   : > { %4080 = vmatprep.mubr.msk.bf16.mxu1 %vm509_vm7, %v4366_v26 }
 0x218   : > { %1925 = vmatmul.mubr.bf16.gmra.mrb[4].mxu0 %v4368_v61 }
 0x219   : > { %4078 = vmatprep.mubr.msk.bf16.mxu0 %vm509_vm7, %v4369_v60 }
 0x21d   : > { %1988 = vmatmul.mubr.bf16.gmra.mrb[4].mxu1 %v4368_v61  ;;  %v2110_v61 = vld [vmem:[%s4481_s30 + $0x30] sm:$0xff] }
 0x21e   : > { %4081 = vmatprep.mubr.msk.bf16.mxu1 %vm509_vm7, %v4369_v60 }
 0x220   : > { %1935 = vmatmul.mubr.bf16.gmra.mrb[8].mxu0 %v4371_v1  ;;  %v2041_v19 = vpop.permute.xlu0 %2040  ;;  %v2046_v12 = vpop.permute.xlu1 %2045 }
 0x224   : > { %v2051_v62 = vpop.permute.xlu1 %2050  ;;  %v2056_v8 = vpop.permute.xlu0 %2055 }
 0x225   : > { %1998 = vmatmul.mubr.bf16.gmra.mrb[8].mxu1 %v4371_v1 }
 0x2e3   : > { %v1916_v44 = vpop.f32.mrb[0].mxu0 }
 0x2e4   : > { %v2068_v32 = vadd.f32 %v2041_v19, %v1916_v44  ;;  %v1918_v54 = vpop.f32.mrb[1].mxu0  ;;  %v2109_v44 = vld [vmem:[%s4481_s30 + $0x28] sm:$0xff] }
 0x2e5   : > { %v2069_v4 = vadd.f32 %v2041_v19, %v1918_v54  ;;  %v1920_v5 = vpop.f32.mrb[2].mxu0 }
 0x2e6   : > { %v2092_v49 = vmax.f32 %v2068_v32, 0.0  ;;  %v2072_v37 = vadd.f32 %v2046_v12, %v1920_v5  ;;  %v1922_v40 = vpop.f32.mrb[3].mxu0  ;;  %v2111_v32 = vld [vmem:[%s4481_s30 + $0x38] sm:$0xff] }
 0x2e7   : > { %v2093_v35 = vmax.f32 %v2069_v4, 0.0  ;;  %v2073_v50 = vadd.f32 %v2046_v12, %v1922_v40  ;;  %v2061_v40 = vpop.permute.xlu1 %2060 }
 0x2e8   : > { %v2094_v22 = vmax.f32 %v2072_v37, 0.0  ;;  %v1979_v10 = vpop.f32.mrb[0].mxu1  ;;  %v2116_v41 = vadd.f32 %v2104_v34, %v2092_v49 }
 0x2e9   : > { %v2095_v15 = vmax.f32 %v2073_v50, 0.0  ;;  %v2070_v63 = vadd.f32 %v2041_v19, %v1979_v10  ;;  %v1981_v21 = vpop.f32.mrb[1].mxu1  ;;  %v2117_v58 = vadd.f32 %v2105_v14, %v2093_v35 }
 0x2ea   : > { %v2118_v13 = vadd.f32 %v2106_v52, %v2094_v22  ;;  %v2071_v17 = vadd.f32 %v2041_v19, %v1981_v21  ;;  %v1983_v16 = vpop.f32.mrb[2].mxu1 }
 0x2eb   : > { %v2119_v45 = vadd.f32 %v2107_v9, %v2095_v15  ;;  %v2140_v51 = vmax.f32 %v2070_v63, 0.0  ;;  %v2074_v42 = vadd.f32 %v2046_v12, %v1983_v16  ;;  %v1926_v46 = vpop.f32.mrb[4].mxu0  ;;  %v1985_v23 = vpop.f32.mrb[3].mxu1  ;;  %v4088_v16 = vld [vmem:[%s4481_s30 + $0x90] sm:$0xff] }
 0x2ec   : > { %v5309_v31 = vpack.c.bf16 %v2118_v13, %v2116_v41  ;;  %v2141_v20 = vmax.f32 %v2071_v17, 0.0  ;;  %v2076_v30 = vadd.f32 %v2051_v62, %v1926_v46  ;;  %v2075_v29 = vadd.f32 %v2046_v12, %v1985_v23  ;;  %v1928_v36 = vpop.f32.mrb[5].mxu0  ;;  %v4086_v13 = vld [vmem:[%s4481_s30 + $0x80] sm:$0xff]  ;;  %v4087_v46 = vld [vmem:[%s4481_s30 + $0x88] sm:$0xff] }
 0x2ed   : > { %v5313_v7 = vpack.c.bf16 %v2119_v45, %v2117_v58  ;;  %v2142_v27 = vmax.f32 %v2074_v42, 0.0  ;;  %v2077_v18 = vadd.f32 %v2051_v62, %v1928_v36  ;;  %v1930_v24 = vpop.f32.mrb[6].mxu0  ;;  %v2164_v6 = vadd.f32 %v4082_v59, %v2140_v51  ;;  %v2066_v51 = vpop.permute.xlu0 %2065  ;;  %v4089_v59 = vld [vmem:[%s4481_s30 + $0x98] sm:$0xff] }
 0x2ee   : > { %v2096_v57 = vmax.f32 %v2076_v30, 0.0  ;;  %v2143_v39 = vmax.f32 %v2075_v29, 0.0  ;;  %v2080_v3 = vadd.f32 %v2056_v8, %v1930_v24  ;;  %2334 = vrot.lane.b32.xlu1 %v5309_v31, %s4415_s8  ;;  %v1932_v26 = vpop.f32.mrb[7].mxu0  ;;  %v2165_v1 = vadd.f32 %v4083_v56, %v2141_v20  ;;  %v6312_v56 = vld [vmem:[#allocation8_spill] sm:$0xff] }
 0x2ef   : > { %v2166_v38 = vadd.f32 %v4084_v28, %v2142_v27  ;;  %v2097_v48 = vmax.f32 %v2077_v18, 0.0  ;;  %v2081_v60 = vadd.f32 %v2056_v8, %v1932_v26  ;;  %v2600_v27 = vmul.bf16 %v5309_v31, %v6312_v56  ;;  %v2112_v24 = vld [vmem:[%s4481_s30 + $0x40] sm:$0xff] }
 0x2f0   : > { %v2167_v19 = vadd.f32 %v4085_v2, %v2143_v39  ;;  %v2098_v12 = vmax.f32 %v2080_v3, 0.0  ;;  %v1989_v54 = vpop.f32.mrb[4].mxu1  ;;  %v2120_v34 = vadd.f32 %v2108_v47, %v2096_v57  ;;  %v2114_v39 = vld [vmem:[%s4481_s30 + $0x50] sm:$0xff] }
 0x2f1   : > { %v5323_v4 = vpack.c.bf16 %v2166_v38, %v2164_v6  ;;  %v2099_v5 = vmax.f32 %v2081_v60, 0.0  ;;  %v2078_v49 = vadd.f32 %v2051_v62, %v1989_v54  ;;  %v1991_v37 = vpop.f32.mrb[5].mxu1  ;;  %v2121_v22 = vadd.f32 %v2109_v44, %v2097_v48  ;;  %v2113_v38 = vld [vmem:[%s4481_s30 + $0x48] sm:$0xff]  ;;  %v2115_v48 = vld [vmem:[%s4481_s30 + $0x58] sm:$0xff]  ;;  %v6313_v60 = vld [vmem:[#allocation4_spill] sm:$0xff] }
 0x2f2   : > { %v5325_v35 = vpack.c.bf16 %v2167_v19, %v2165_v1  ;;  %v2122_v52 = vadd.f32 %v2110_v61, %v2098_v12  ;;  %v2079_v50 = vadd.f32 %v2051_v62, %v1991_v37  ;;  %v1993_v14 = vpop.f32.mrb[6].mxu1  ;;  %v2749_v1 = vmul.bf16 %v5309_v31, %v6313_v60 }
 0x2f3   : > { %v2123_v9 = vadd.f32 %v2111_v32, %v2099_v5  ;;  %v2144_v10 = vmax.f32 %v2078_v49, 0.0  ;;  %v2082_v15 = vadd.f32 %v2056_v8, %v1993_v14  ;;  %2388 = vrot.lane.b32.xlu0 %v5323_v4, %s4415_s8  ;;  %v1936_v63 = vpop.f32.mrb[8].mxu0  ;;  %v1995_v21 = vpop.f32.mrb[7].mxu1  ;;  %v2663_v54 = vmul.bf16 %v5323_v4, %v6312_v56 }
 0x2f4   : > { %v5329_v41 = vpack.c.bf16 %v2122_v52, %v2120_v34  ;;  %v2145_v17 = vmax.f32 %v2079_v50, 0.0  ;;  %v2084_v58 = vadd.f32 %v2061_v40, %v1936_v63  ;;  %v2083_v45 = vadd.f32 %v2056_v8, %v1995_v21  ;;  %2390 = vrot.lane.b32.xlu1 %v5325_v35, %s4415_s8  ;;  %v1938_v62 = vpop.f32.mrb[9].mxu0  ;;  %v4090_v63 = vld [vmem:[%s4481_s30 + $0xa0] sm:$0xff] }
 0x2f5   : > { %v5335_v42 = vpack.c.bf16 %v2123_v9, %v2121_v22  ;;  %v2146_v23 = vmax.f32 %v2082_v15, 0.0  ;;  %v2085_v20 = vadd.f32 %v2061_v40, %v1938_v62  ;;  %v1940_v28 = vpop.f32.mrb[10].mxu0  ;;  %v2168_v2 = vadd.f32 %v4086_v13, %v2144_v10  ;;  %v4092_v13 = vld [vmem:[%s4481_s30 + $0xb0] sm:$0xff] }
 0x2f6   : > { %v2100_v30 = vmax.f32 %v2084_v58, 0.0  ;;  %v2147_v29 = vmax.f32 %v2083_v45, 0.0  ;;  %v2088_v36 = vadd.f32 %v2066_v51, %v1940_v28  ;;  %v1942_v8 = vpop.f32.mrb[11].mxu0  ;;  %v2169_v26 = vadd.f32 %v4087_v46, %v2145_v17  ;;  %v4093_v45 = vld [vmem:[%s4481_s30 + $0xb8] sm:$0xff] }
 0x2f7   : > { %v2170_v18 = vadd.f32 %v4088_v16, %v2146_v23  ;;  %v2101_v57 = vmax.f32 %v2085_v20, 0.0  ;;  %v2089_v3 = vadd.f32 %v2066_v51, %v1942_v8  ;;  %2336 = vrot.lane.b32.xlu0 %v5313_v7, %s4415_s8  ;;  %v2812_v62 = vmul.bf16 %v5323_v4, %v6313_v60  ;;  %v6314_v23 = vld [vmem:[#allocation10_spill] sm:$0xff] }
 0x2f8   : > { %v2171_v6 = vadd.f32 %v4089_v59, %v2147_v29  ;;  %v2102_v47 = vmax.f32 %v2088_v36, 0.0  ;;  %v1999_v61 = vpop.f32.mrb[8].mxu1  ;;  %2619 = vrot.lane.b32.xlu1 %v2600_v27, %s4409_s21  ;;  %v2124_v5 = vadd.f32 %v2112_v24, %v2100_v30  ;;  %v2198_v59 = vmul.bf16 %v5309_v31, %v6314_v23  ;;  %v6315_v27 = vld [vmem:[#allocation12_spill] sm:$0xff] }
 0x2f9   : > { %v5350_v19 = vpack.c.bf16 %v2170_v18, %v2168_v2  ;;  %v2103_v44 = vmax.f32 %v2089_v3, 0.0  ;;  %v2086_v12 = vadd.f32 %v2061_v40, %v1999_v61  ;;  %v2001_v32 = vpop.f32.mrb[9].mxu1  ;;  %v2125_v50 = vadd.f32 %v2113_v38, %v2101_v57  ;;  %v5381_v18 = vpop.permute.xlu1 %2617 }
 0x2fa   : > { %v5354_v49 = vpack.c.bf16 %v2171_v6, %v2169_v26  ;;  %v2126_v37 = vadd.f32 %v2114_v39, %v2102_v47  ;;  %v2087_v34 = vadd.f32 %v2061_v40, %v2001_v32  ;;  %v2003_v52 = vpop.f32.mrb[10].mxu1  ;;  %v4091_v40 = vld [vmem:[%s4481_s30 + $0xa8] sm:$0xff]  ;;  %v2261_v36 = vmul.bf16 %v5323_v4, %v6314_v23  ;;  %v6316_v26 = vld [vmem:[#allocation6_spill] sm:$0xff]  ;;  %v5410_v32 = vpop.permute.xlu0 %2680 }
 0x2fb   : > { %v2127_v14 = vadd.f32 %v2115_v48, %v2103_v44  ;;  %v2148_v22 = vmax.f32 %v2086_v12, 0.0  ;;  %v2090_v9 = vadd.f32 %v2066_v51, %v2003_v52  ;;  %v2005_v10 = vpop.f32.mrb[11].mxu1  ;;  %2682 = vrot.lane.b32.xlu0 %v2663_v54, %s4409_s21  ;;  %v2495_v2 = vmul.bf16 %v5323_v4, %v6315_v27  ;;  %v6317_v47 = vld [vmem:[#allocation9_spill] sm:$0xff]  ;;  %v6318_v44 = vld [vmem:[#allocation7_spill] sm:$0xff] }
 0x2fc   : > { %v5357_v15 = vpack.c.bf16 %v2126_v37, %v2124_v5  ;;  %v2149_v21 = vmax.f32 %v2087_v34, 0.0  ;;  %v2091_v17 = vadd.f32 %v2066_v51, %v2005_v10  ;;  %2767 = vrot.lane.b32.xlu1 %v2749_v1, %s4408_s20  ;;  %v2432_v24 = vmul.bf16 %v5309_v31, %v6315_v27  ;;  %v6319_v37 = vld [vmem:[#allocation11_spill] sm:$0xff] }
 0x2fd   : > { %v5362_v16 = vpack.c.bf16 %v2127_v14, %v2125_v50  ;;  %v2150_v58 = vmax.f32 %v2090_v9, 0.0  ;;  %v2172_v20 = vadd.f32 %v4090_v63, %v2148_v22  ;;  %v3305_v57 = vmul.bf16 %v5323_v4, %v4714_v53  ;;  %v5392_v3 = vpop.permute.xlu1 %2623 }
 0x2fe   : > { %v2151_v46 = vmax.f32 %v2091_v17, 0.0  ;;  %v2173_v30 = vadd.f32 %v4091_v40, %v2149_v21  ;;  %v3242_v39 = vmul.bf16 %v5309_v31, %v4714_v53  ;;  %v2664_v6 = vmul.bf16 %v5325_v35, %v6316_v26  ;;  %v5422_v52 = vpop.permute.xlu0 %2686 }
 0x2ff   : > { %v2174_v28 = vadd.f32 %v4092_v13, %v2150_v58  ;;  %2830 = vrot.lane.b32.xlu0 %v2812_v62, %s4408_s20  ;;  %v2601_v38 = vmul.bf16 %v5313_v7, %v6316_v26  ;;  %v2750_v48 = vmul.bf16 %v5313_v7, %v6317_v47  ;;  %v2813_v1 = vmul.bf16 %v5325_v35, %v6317_v47 }
 0x300   : > { %v2175_v51 = vadd.f32 %v4093_v45, %v2151_v46  ;;  %2217 = vrot.lane.b32.xlu1 %v2198_v59, %s4413_s25  ;;  %v2262_v12 = vmul.bf16 %v5325_v35, %v6318_v44  ;;  %v2199_v54 = vmul.bf16 %v5313_v7, %v6318_v44  ;;  %v2433_v34 = vmul.bf16 %v5313_v7, %v6319_v37 }
 0x301   : > { %v5372_v29 = vpack.c.bf16 %v2174_v28, %v2172_v20  ;;  %v5403_v61 = vpop.permute.xlu1 %2629  ;;  %v2496_v50 = vmul.bf16 %v5325_v35, %v6319_v37  ;;  %v3306_v14 = vmul.bf16 %v5325_v35, %v4859_v33  ;;  %v3243_v9 = vmul.bf16 %v5313_v7, %v4859_v33 }
 0x302   : > { %v5376_v8 = vpack.c.bf16 %v2175_v51, %v2173_v30  ;;  %v5434_v10 = vpop.permute.xlu0 %2692  ;;  %v2603_v13 = vmul.bf16 %v5329_v41, %v6312_v56  ;;  %v2666_v40 = vmul.bf16 %v5350_v19, %v6312_v56  ;;  %v2752_v58 = vmul.bf16 %v5329_v41, %v6313_v60 }
 0x303   : > { %2280 = vrot.lane.b32.xlu0 %v2261_v36, %s4413_s25  ;;  %v2815_v62 = vmul.bf16 %v5350_v19, %v6313_v60  ;;  %v2201_v59 = vmul.bf16 %v5329_v41, %v6314_v23  ;;  %v2264_v28 = vmul.bf16 %v5350_v19, %v6314_v23  ;;  %v2498_v30 = vmul.bf16 %v5350_v19, %v6315_v27 }
 0x304   : > { %2514 = vrot.lane.b32.xlu1 %v2495_v2, %s4412_s24  ;;  %v2435_v36 = vmul.bf16 %v5329_v41, %v6315_v27  ;;  %v2667_v2 = vmul.bf16 %v5354_v49, %v6316_v26 }
 0x305   : > { %v5416_v5 = vpop.permute.xlu1 %2834 }
 0x306   : > { %v5445_v21 = vpop.permute.xlu0 %2771 }
 0x307   : > { %2451 = vrot.lane.b32.xlu0 %v2432_v24, %s4412_s24 }
 0x308   : > { %3323 = vrot.lane.b32.xlu1 %v3305_v57, %s4411_s23  ;;  %v2604_v57 = vmul.bf16 %v5335_v42, %v6316_v26 }
 0x309   : > { %v5429_v22 = vpop.permute.xlu1 %2840 }
 0x30a   : > { %v5458_v45 = vpop.permute.xlu0 %2777 }
 0x30b   : > { %3260 = vrot.lane.b32.xlu0 %v3242_v39, %s4411_s23 }
 0x30c   : > { %2684 = vrot.lane.b32.xlu1 %v2664_v6, %s4409_s21  ;;  %v2753_v6 = vmul.bf16 %v5335_v42, %v6317_v47 }
 0x30d   : > { %v5439_v63 = vpop.permute.xlu1 %2846 }
 0x30e   : > { %v5470_v20 = vpop.permute.xlu0 %2783 }
 0x30f   : > { %2621 = vrot.lane.b32.xlu0 %v2601_v38, %s4409_s21 }
 0x310   : > { %2769 = vrot.lane.b32.xlu1 %v2750_v48, %s4408_s20  ;;  %v2816_v48 = vmul.bf16 %v5354_v49, %v6317_v47 }
 0x311   : > { %v5451_v17 = vpop.permute.xlu1 %2215 }
 0x312   : > { %v5484_v24 = vpop.permute.xlu0 %2278 }
 0x313   : > { %2832 = vrot.lane.b32.xlu0 %v2813_v1, %s4408_s20  ;;  %v2265_v1 = vmul.bf16 %v5354_v49, %v6318_v44 }
 0x314   : > { %2282 = vrot.lane.b32.xlu1 %v2262_v12, %s4413_s25 }
 0x315   : > { %v5464_v46 = vpop.permute.xlu1 %2221 }
 0x316   : > { %v5496_v38 = vpop.permute.xlu0 %2284 }
 0x317   : > { %2219 = vrot.lane.b32.xlu0 %v2199_v54, %s4413_s25  ;;  %v2202_v54 = vmul.bf16 %v5335_v42, %v6318_v44 }
 0x318   : > { %2453 = vrot.lane.b32.xlu1 %v2433_v34, %s4412_s24  ;;  %v2436_v34 = vmul.bf16 %v5335_v42, %v6319_v37 }
 0x319   : > { %v5477_v51 = vpop.permute.xlu1 %2227 }
 0x31b   : > { %2516 = vrot.lane.b32.xlu0 %v2496_v50, %s4412_s24  ;;  %v5510_v50 = vpop.permute.xlu0 %2290 }
 0x31c   : > { %3325 = vrot.lane.b32.xlu1 %v3306_v14, %s4411_s23  ;;  %v2499_v14 = vmul.bf16 %v5354_v49, %v6319_v37 }
 0x31d   : > { %v5490_v39 = vpop.permute.xlu1 %4316 }
 0x31f   : > { %3262 = vrot.lane.b32.xlu0 %v3243_v9, %s4411_s23 }
 0x320   : > { %2394 = vrot.lane.b32.xlu1 %v5350_v19, %s4415_s8 }
 0x321   : > { %v5503_v12 = vpop.permute.xlu1 %4326 }
 0x322   : > { %6320 = vst [vmem:[#allocation5_spill] sm:$0xff] %v5503_v12 }
 0x323   : > { %2340 = vrot.lane.b32.xlu0 %v5329_v41, %s4415_s8 }
 0x324   : > { %2342 = vrot.lane.b32.xlu1 %v5335_v42, %s4415_s8 }
 0x325   : > { %v5516_v9 = vpop.permute.xlu1 %2512 }
 0x326   : > { %6321 = vst [vmem:[#allocation13_spill] sm:$0xff] %v5516_v9 }
 0x327   : > { %2396 = vrot.lane.b32.xlu0 %v5354_v49, %s4415_s8 }
 0x328   : > { %2625 = vrot.lane.b32.xlu1 %v2603_v13, %s4409_s21  ;;  %v5521_v13 = vpop.permute.xlu0 %4321 }
 0x32b   : > { %2688 = vrot.lane.b32.xlu0 %v2666_v40, %s4409_s21  ;;  %v3246_v40 = vmul.bf16 %v5335_v42, %v4859_v33 }
 0x32c   : > { %2773 = vrot.lane.b32.xlu1 %v2752_v58, %s4408_s20  ;;  %v5526_v58 = vpop.permute.xlu1 %2518 }
 0x32d   : > { %6322 = vst [vmem:[#allocation8_spill] sm:$0xff] %v5526_v58 }
 0x32f   : > { %2836 = vrot.lane.b32.xlu0 %v2815_v62, %s4408_s20  ;;  %v2606_v62 = vmul.bf16 %v5357_v15, %v6312_v56 }
 0x330   : > { %2223 = vrot.lane.b32.xlu1 %v2201_v59, %s4413_s25  ;;  %v5532_v59 = vpop.permute.xlu0 %2449 }
 0x331   : > { %6323 = vst [vmem:[#allocation4_spill] sm:$0xff] %v5532_v59 }
 0x333   : > { %2286 = vrot.lane.b32.xlu0 %v2264_v28, %s4413_s25  ;;  %v5537_v28 = vpop.permute.xlu1 %2524 }
 0x334   : > { %2520 = vrot.lane.b32.xlu1 %v2498_v30, %s4412_s24  ;;  %6324 = vst [vmem:[#allocation10_spill] sm:$0xff] %v5537_v28  ;;  %v2755_v30 = vmul.bf16 %v5357_v15, %v6313_v60 }
 0x337   : > { %2457 = vrot.lane.b32.xlu0 %v2435_v36, %s4412_s24  ;;  %v5544_v36 = vpop.permute.xlu0 %2455 }
 0x338   : > { %2690 = vrot.lane.b32.xlu1 %v2667_v2, %s4409_s21  ;;  %6325 = vst [vmem:[#allocation12_spill] sm:$0xff] %v5544_v36  ;;  %v2669_v2 = vmul.bf16 %v5372_v29, %v6312_v56  ;;  %v2267_v56 = vmul.bf16 %v5372_v29, %v6314_v23 }
 0x33b   : > { %2627 = vrot.lane.b32.xlu0 %v2604_v57, %s4409_s21  ;;  %v2204_v57 = vmul.bf16 %v5357_v15, %v6314_v23 }
 0x33c   : > { %2775 = vrot.lane.b32.xlu1 %v2753_v6, %s4408_s20  ;;  %v5551_v6 = vpop.permute.xlu1 %3264 }
 0x33d   : > { %6326 = vst [vmem:[#allocation6_spill] sm:$0xff] %v5551_v6 }
 0x33f   : > { %2838 = vrot.lane.b32.xlu0 %v2816_v48, %s4408_s20  ;;  %v2818_v48 = vmul.bf16 %v5372_v29, %v6313_v60 }
 0x340   : > { %2288 = vrot.lane.b32.xlu1 %v2265_v1, %s4413_s25  ;;  %v2501_v1 = vmul.bf16 %v5372_v29, %v6315_v27 }
 0x343   : > { %2225 = vrot.lane.b32.xlu0 %v2202_v54, %s4413_s25  ;;  %v5558_v54 = vpop.permute.xlu0 %2461 }
 0x344   : > { %2459 = vrot.lane.b32.xlu1 %v2436_v34, %s4412_s24  ;;  %6327 = vst [vmem:[#allocation9_spill] sm:$0xff] %v5558_v54  ;;  %v5564_v34 = vpop.permute.xlu1 %3270 }
 0x345   : > { %6328 = vst [vmem:[#allocation7_spill] sm:$0xff] %v5564_v34 }
 0x347   : > { %2522 = vrot.lane.b32.xlu0 %v2499_v14, %s4412_s24  ;;  %v2670_v14 = vmul.bf16 %v5376_v8, %v6316_v26  ;;  %v5570_v60 = vpop.permute.xlu0 %3327 }
 0x348   : > { %2346 = vrot.lane.b32.xlu1 %v5357_v15, %s4415_s8  ;;  %6329 = vst [vmem:[#allocation11_spill] sm:$0xff] %v5570_v60 }
 0x34b   : > { %3268 = vrot.lane.b32.xlu0 %v3246_v40, %s4411_s23  ;;  %v2438_v40 = vmul.bf16 %v5357_v15, %v6315_v27 }
 0x34c   : > { %2402 = vrot.lane.b32.xlu1 %v5376_v8, %s4415_s8 }
 0x34f   : > { %2400 = vrot.lane.b32.xlu0 %v5372_v29, %s4415_s8 }
 0x350   : > { %2631 = vrot.lane.b32.xlu1 %v2606_v62, %s4409_s21 }
 0x353   : > { %2348 = vrot.lane.b32.xlu0 %v5362_v16, %s4415_s8 }
 0x354   : > { %2779 = vrot.lane.b32.xlu1 %v2755_v30, %s4408_s20  ;;  %v3309_v30 = vmul.bf16 %v5354_v49, %v4859_v33 }
 0x357   : > { %2694 = vrot.lane.b32.xlu0 %v2669_v2, %s4409_s21  ;;  %v2607_v2 = vmul.bf16 %v5362_v16, %v6316_v26 }
 0x358   : > { %2229 = vrot.lane.b32.xlu1 %v2204_v57, %s4413_s25 }
 0x35b   : > { %2842 = vrot.lane.b32.xlu0 %v2818_v48, %s4408_s20  ;;  %v3308_v48 = vmul.bf16 %v5350_v19, %v4714_v53 }
 0x35c   : > { %2526 = vrot.lane.b32.xlu1 %v2501_v1, %s4412_s24  ;;  %v3245_v1 = vmul.bf16 %v5329_v41, %v4714_v53 }
 0x35f   : > { %2292 = vrot.lane.b32.xlu0 %v2267_v56, %s4413_s25 }
 0x360   : > { %2696 = vrot.lane.b32.xlu1 %v2670_v14, %s4409_s21  ;;  %v5574_v62 = vpop.permute.xlu1 %2334 }
 0x363   : > { %2463 = vrot.lane.b32.xlu0 %v2438_v40, %s4412_s24  ;;  %v3311_v40 = vmul.bf16 %v5372_v29, %v4714_v53 }
 0x364   : > { %3331 = vrot.lane.b32.xlu1 %v3309_v30, %s4411_s23 }
 0x365   : > { %v5580_v23 = vpop.permute.xlu0 %2388 }
 0x366   : > { %v5584_v57 = vpop.permute.xlu1 %2390 }
 0x367   : > { %2633 = vrot.lane.b32.xlu0 %v2607_v2, %s4409_s21  ;;  %v3248_v2 = vmul.bf16 %v5357_v15, %v4714_v53 }
 0x368   : > { %3329 = vrot.lane.b32.xlu1 %v3308_v48, %s4411_s23 }
 0x369   : > { %v5590_v27 = vpop.permute.xlu0 %2336 }
 0x36a   : > { %v2620_v56 = vpop.permute.xlu1 %2619 }
 0x36b   : > { %3266 = vrot.lane.b32.xlu0 %v3245_v1, %s4411_s23  ;;  %v2756_v1 = vmul.bf16 %v5362_v16, %v6317_v47 }
 0x36c   : > { %3276 = vrot.lane.b32.xlu1 %v4873_v11, %s4411_s23 }
 0x36d   : > { %v2683_v26 = vpop.permute.xlu0 %2682 }
 0x36e   : > { %v5597_v14 = vpop.permute.xlu1 %2767 }
 0x36f   : > { %3333 = vrot.lane.b32.xlu0 %v4873_v11, %s4411_s23 }
 0x370   : > { %3335 = vrot.lane.b32.xlu1 %v3311_v40, %s4411_s23  ;;  %v4374_v40 = vld [vmem:[%s6262_s3 + $0x34] ss:$8 sps:$4 sm:$0xff]  }
 0x371   : > { %v5604_v30 = vpop.permute.xlu0 %2830  ;;  %4106 = vmatprep.mubr.msk.bf16.mxu0 %vm509_vm7, %v4374_v40  ;;  %4109 = vmatprep.mubr.msk.bf16.mxu1 %vm509_vm7, %v4374_v40  ;;  %v2698_v40 = vsel %vm816_vm5, %v5410_v32, %v2683_v26 }
 0x372   : > { %v5608_v48 = vpop.permute.xlu1 %2217 }
 0x373   : > { %3272 = vrot.lane.b32.xlu0 %v3248_v2, %s4411_s23 }
 0x374   : > { %2781 = vrot.lane.b32.xlu1 %v2756_v1, %s4408_s20 }
 0x375   : > { %v5614_v34 = vpop.permute.xlu0 %2280 }
 0x376   : > { %v5616_v60 = vpop.permute.xlu1 %2514 }
 0x377   : > { %6330 = vst [vmem:[#allocation14_spill] sm:$0xff] %v5616_v60  ;;  %3339 = vrot.lane.b32.xlu0 %v4873_v11, %s4411_s23  ;;  %v2819_v11 = vmul.bf16 %v5376_v8, %v6317_v47  ;;  %v2268_v47 = vmul.bf16 %v5376_v8, %v6318_v44 }
 0x378   : > { %4331 = vrot.lane.b32.xlu1 %v6309_v43, %s4416_s9 }
 0x379   : > { %v5626_v53 = vpop.permute.xlu0 %2451 }
 0x37a   : > { %6331 = vst [vmem:[#allocation15_spill] sm:$0xff] %v5626_v53  ;;  %v5629_v2 = vpop.permute.xlu1 %3323  ;;  %v3480_v53 = vmul.bf16 %v5335_v42, %v5059_v25 }
 0x37b   : > { %6332 = vst [vmem:[#allocation16_spill] sm:$0xff] %v5629_v2  ;;  %3379 = vrot.lane.b32.xlu0 %v5313_v7, %s4416_s9 }
 0x37c   : > { %3433 = vrot.lane.b32.xlu1 %v5325_v35, %s4416_s9 }
 0x37d   : > { %v5635_v1 = vpop.permute.xlu0 %3260 }
 0x37e   : > { %6333 = vst [vmem:[#allocation17_spill] sm:$0xff] %v5635_v1  ;;  %v2685_v6 = vpop.permute.xlu1 %2684 }
 0x37f   : > { %2844 = vrot.lane.b32.xlu0 %v2819_v11, %s4408_s20  ;;  %v2699_v54 = vsel %vm816_vm5, %v2683_v26, %v2685_v6  ;;  %v2635_v6 = vsel %vm816_vm5, %v5381_v18, %v2620_v56 }
 0x380   : > { %3008 = vmatprep.subr.bf16.mxu1 %v2699_v54  ;;  %3385 = vrot.lane.b32.xlu1 %v5335_v42, %s4416_s9 }
 0x381   : > { %3009 = vmatpush1.bf16.msra.mxu1 %v2698_v40  ;;  %v2622_v2 = vpop.permute.xlu0 %2621 }
 0x382   : > { %v5645_v28 = vpop.permute.xlu1 %2769  ;;  %v2636_v1 = vsel %vm816_vm5, %v2620_v56, %v2622_v2  ;;  %v2205_v2 = vmul.bf16 %v5362_v16, %v6318_v44 }
 0x383   : > { %2945 = vmatprep.subr.bf16.mxu0 %v2636_v1  ;;  %3377 = vrot.lane.b32.xlu0 %v5309_v31, %s4416_s9 }
 0x384   : > { %2946 = vmatpush1.bf16.msra.mxu0 %v2635_v6  ;;  %2294 = vrot.lane.b32.xlu1 %v2268_v47, %s4413_s25  ;;  %v2439_v6 = vmul.bf16 %v5362_v16, %v6319_v37 }
 0x385   : > { %v5655_v32 = vpop.permute.xlu0 %2832 }
 0x386   : > { %v5657_v54 = vpop.permute.xlu1 %2282 }
 0x387   : > { %3431 = vrot.lane.b32.xlu0 %v5323_v4, %s4416_s9 }
 0x388   : > { %3383 = vrot.lane.b32.xlu1 %v5329_v41, %s4416_s9 }
 0x389   : > { %v5663_v26 = vpop.permute.xlu0 %2219 }
 0x38a   : > { %v5667_v1 = vpop.permute.xlu1 %2453 }
 0x38b   : > { %6334 = vst [vmem:[#allocation18_spill] sm:$0xff] %v5667_v1  ;;  %2231 = vrot.lane.b32.xlu0 %v2205_v2, %s4413_s25 }
 0x38c   : > { %3437 = vrot.lane.b32.xlu1 %v5350_v19, %s4416_s9 }
 0x38d   : > { %v5672_v18 = vpop.permute.xlu0 %2516 }
 0x38e   : > { %6335 = vst [vmem:[#allocation19_spill] sm:$0xff] %v5672_v18  ;;  %v5674_v56 = vpop.permute.xlu1 %3325  ;;  %v3312_v18 = vmul.bf16 %v5376_v8, %v4859_v33 }
 0x38f   : > { %6336 = vst [vmem:[#allocation20_spill] sm:$0xff] %v5674_v56  ;;  %4336 = vrot.lane.b32.xlu0 %v6309_v43, %s4416_s9 }
 0x390   : > { %4341 = vrot.lane.b32.xlu1 %v6309_v43, %s4416_s9 }
 0x391   : > { %v5680_v11 = vpop.permute.xlu0 %3262 }
 0x392   : > { %6337 = vst [vmem:[#allocation21_spill] sm:$0xff] %v5680_v11  ;;  %v5682_v44 = vpop.permute.xlu1 %2394  ;;  %v3477_v11 = vmul.bf16 %v5313_v7, %v5059_v25 }
 0x393   : > { %6338 = vst [vmem:[#allocation22_spill] sm:$0xff] %v5682_v44  ;;  %3439 = vrot.lane.b32.xlu0 %v5354_v49, %s4416_s9 }
 0x394   : > { %3445 = vrot.lane.b32.xlu1 %v5376_v8, %s4416_s9 }
 0x395   : > { %v5688_v40 = vpop.permute.xlu0 %2340 }
 0x396   : > { %6339 = vst [vmem:[#allocation23_spill] sm:$0xff] %v5688_v40  ;;  %v2343_v47 = vpop.permute.xlu1 %2342 }
 0x397   : > { %3391 = vrot.lane.b32.xlu0 %v5362_v16, %s4416_s9  ;;  %v5696_v43 = vsel %vm509_vm7, %v5688_v40, %v2343_v47  ;;  %v3476_v47 = vmul.bf16 %v5309_v31, %v4724_v55  ;;  %v3249_v40 = vmul.bf16 %v5362_v16, %v4859_v33 }
 0x398   : > { %2465 = vrot.lane.b32.xlu1 %v2439_v6, %s4412_s24 }
 0x399   : > { %v2397_v2 = vpop.permute.xlu0 %2396 }
 0x39a   : > { %v2626_v56 = vpop.permute.xlu1 %2625  ;;  %v5703_v36 = vsel %vm509_vm7, %v5682_v44, %v2397_v2  ;;  %v2502_v2 = vmul.bf16 %v5376_v8, %v6319_v37 }
 0x39b   : > { %6340 = vst [vmem:[#allocation24_spill] sm:$0xff] %v5703_v36  ;;  %3389 = vrot.lane.b32.xlu0 %v5357_v15, %s4416_s9 }
 0x39c   : > { %3496 = vrot.lane.b32.xlu1 %v3477_v11, %s4410_s22 }
 0x39d   : > { %v2689_v58 = vpop.permute.xlu0 %2688 }
 0x39e   : > { %v2774_v9 = vpop.permute.xlu1 %2773  ;;  %v2700_v12 = vsel %vm816_vm5, %v5422_v52, %v2689_v58 }
 0x39f   : > { %3443 = vrot.lane.b32.xlu0 %v5372_v29, %s4416_s9 }
 0x3a0   : > { %3494 = vrot.lane.b32.xlu1 %v3476_v47, %s4410_s22  ;;  %v3540_v47 = vmul.bf16 %v5325_v35, %v5059_v25 }
 0x3a1   : > { %v5713_v6 = vpop.permute.xlu0 %2836 }
 0x3a2   : > { %v5717_v59 = vpop.permute.xlu1 %2223 }
 0x3a3   : > { %2528 = vrot.lane.b32.xlu0 %v2502_v2, %s4412_s24 }
 0x3a4   : > { %3561 = vrot.lane.b32.xlu1 %v5073_v0, %s4410_s22 }
 0x3a5   : > { %v5722_v11 = vpop.permute.xlu0 %2286 }
 0x3a6   : > { %v5724_v60 = vpop.permute.xlu1 %2520 }
 0x3a7   : > { %6341 = vst [vmem:[#allocation25_spill] sm:$0xff] %v5724_v60  ;;  %3498 = vrot.lane.b32.xlu0 %v5073_v0, %s4410_s22 }
 0x3a8   : > { %3337 = vrot.lane.b32.xlu1 %v3312_v18, %s4411_s23 }
 0x3a9   : > { %v5731_v37 = vpop.permute.xlu0 %2457 }
 0x3aa   : > { %6342 = vst [vmem:[#allocation26_spill] sm:$0xff] %v5731_v37  ;;  %v2691_v2 = vpop.permute.xlu1 %2690 }
 0x3ab   : > { %3559 = vrot.lane.b32.xlu0 %v3540_v47, %s4410_s22  ;;  %v2701_v1 = vsel %vm816_vm5, %v2689_v58, %v2691_v2  ;;  %v3479_v47 = vmul.bf16 %v5329_v41, %v4724_v55  ;;  %v2637_v2 = vsel %vm816_vm5, %v5392_v3, %v2626_v56 }
 0x3ac   : > { %3010 = vmatprep.subr.bf16.mxu1 %v2701_v1  ;;  %3502 = vrot.lane.b32.xlu1 %v3480_v53, %s4410_s22  ;;  %v3482_v53 = vmul.bf16 %v5357_v15, %v4724_v55 }
 0x3ad   : > { %3011 = vmatpush1.bf16.msra.mxu1 %v2700_v12  ;;  %v2628_v18 = vpop.permute.xlu0 %2627  ;;  %v3539_v12 = vmul.bf16 %v5323_v4, %v4724_v55 }
 0x3ae   : > { %v5744_v44 = vpop.permute.xlu1 %2775  ;;  %v2638_v36 = vsel %vm816_vm5, %v2626_v56, %v2628_v18  ;;  %v3543_v18 = vmul.bf16 %v5354_v49, %v5059_v25 }
 0x3af   : > { %v5753_v52 = vsel %vm775_vm4, %v2774_v9, %v5744_v44  ;;  %2947 = vmatprep.subr.bf16.mxu0 %v2638_v36  ;;  %3274 = vrot.lane.b32.xlu0 %v3249_v40, %s4411_s23 }
 0x3b0   : > { %2948 = vmatpush1.bf16.msra.mxu0 %v2637_v2  ;;  %3500 = vrot.lane.b32.xlu1 %v3479_v47, %s4410_s22  ;;  %v3483_v2 = vmul.bf16 %v5362_v16, %v5059_v25 }
 0x3b1   : > { %v5757_v33 = vpop.permute.xlu0 %2838 }
 0x3b2   : > { %v2289_v58 = vpop.permute.xlu1 %2288 }
 0x3b3   : > { %3557 = vrot.lane.b32.xlu0 %v3539_v12, %s4410_s22  ;;  %v5764_v3 = vsel %vm391_vm10, %v5722_v11, %v2289_v58 }
 0x3b4   : > { %3567 = vrot.lane.b32.xlu1 %v5073_v0, %s4410_s22 }
 0x3b5   : > { %v2226_v9 = vpop.permute.xlu0 %2225 }
 0x3b6   : > { %v2460_v36 = vpop.permute.xlu1 %2459  ;;  %v5772_v1 = vsel %vm391_vm10, %v5717_v59, %v2226_v9  ;;  %v3542_v9 = vmul.bf16 %v5350_v19, %v4724_v55 }
 0x3b7   : > { %3504 = vrot.lane.b32.xlu0 %v5073_v0, %s4410_s22  ;;  %v5778_v56 = vsel %vm638_vm9, %v5731_v37, %v2460_v36 }
 0x3b8   : > { %6343 = vst [vmem:[#allocation27_spill] sm:$0xff] %v5778_v56  ;;  %3506 = vrot.lane.b32.xlu1 %v3482_v53, %s4410_s22 }
 0x3b9   : > { %v2523_v40 = vpop.permute.xlu0 %2522 }
 0x3ba   : > { %v5783_v47 = vpop.permute.xlu1 %2346  ;;  %v5789_v12 = vsel %vm638_vm9, %v5724_v60, %v2523_v40  ;;  %v3822_v40 = vld [vmem:[%s6263_s4] sm:$0xff]  ;;  %v3824_v60 = vld [vmem:[%s6263_s4 + $0x10] sm:$0xff] }
 0x3bb   : > { %6344 = vst [vmem:[#allocation28_spill] sm:$0xff] %v5783_v47  ;;  %6345 = vst [vmem:[#allocation29_spill] sm:$0xff] %v5789_v12  ;;  %3565 = vrot.lane.b32.xlu0 %v3543_v18, %s4410_s22 }
 0x3bc   : > { %3508 = vrot.lane.b32.xlu1 %v3483_v2, %s4410_s22 }
 0x3bd   : > { %v5793_v58 = vpop.permute.xlu0 %3268 }
 0x3be   : > { %v2403_v36 = vpop.permute.xlu1 %2402 }
 0x3bf   : > { %3563 = vrot.lane.b32.xlu0 %v3542_v9, %s4410_s22  ;;  %v3546_v9 = vmul.bf16 %v5376_v8, %v5059_v25  ;;  %v3826_v25 = vld [vmem:[%s6263_s4 + $0x20] sm:$0xff] }
 0x3c0   : > { %3573 = vrot.lane.b32.xlu1 %v5073_v0, %s4410_s22 }
 0x3c1   : > { %v5800_v53 = vpop.permute.xlu0 %2400 }
 0x3c2   : > { %6346 = vst [vmem:[#allocation30_spill] sm:$0xff] %v5800_v53  ;;  %v2632_v18 = vpop.permute.xlu1 %2631  ;;  %v5807_v2 = vsel %vm509_vm7, %v5800_v53, %v2403_v36 }
 0x3c3   : > { %6347 = vst [vmem:[#allocation31_spill] sm:$0xff] %v5807_v2  ;;  %3510 = vrot.lane.b32.xlu0 %v5073_v0, %s4410_s22  ;;  %v3545_v0 = vmul.bf16 %v5372_v29, %v4724_v55  ;;  %v3825_v55 = vld [vmem:[%s6263_s4 + $0x18] sm:$0xff]  ;;  %v3827_v2 = vld [vmem:[%s6263_s4 + $0x28] sm:$0xff] }
 0x3c4   : > { %3830 = vperm.xlu1 %4314, %v3822_v40  }
 0x3c5   : > { %v2349_v37 = vpop.permute.xlu0 %2348 }
 0x3c6   : > { %v5816_v12 = vpop.permute.xlu1 %2779  ;;  %v5820_v56 = vsel %vm509_vm7, %v5783_v47, %v2349_v37  ;;  %v3823_v37 = vld [vmem:[%s6263_s4 + $0x8] sm:$0xff] }
 0x3c7   : > { %3571 = vrot.lane.b32.xlu0 %v3546_v9, %s4410_s22 }
 0x3c8   : > { %3840 = vperm.xlu1 %4314, %v3824_v60  }
 0x3c9   : > { %v2695_v36 = vpop.permute.xlu0 %2694 }
 0x3ca   : > { %v5828_v40 = vpop.permute.xlu1 %2229 }
 0x3cb   : > { %3569 = vrot.lane.b32.xlu0 %v3545_v0, %s4410_s22 }
 0x3cc   : > { %3850 = vperm.xlu1 %4314, %v3826_v25   ;;  %v2702_v25 = vsel %vm816_vm5, %v5434_v10, %v2695_v36 }
 0x3cd   : > { %v5834_v53 = vpop.permute.xlu0 %2842 }
 0x3ce   : > { %v5836_v60 = vpop.permute.xlu1 %2526 }
 0x3cf   : > { %6348 = vst [vmem:[#allocation32_spill] sm:$0xff] %v5836_v60  ;;  %3835 = vperm.xlu0 %4313, %v3823_v37  }
 0x3d1   : > { %v5841_v9 = vpop.permute.xlu0 %2292 }
 0x3d2   : > { %v2697_v47 = vpop.permute.xlu1 %2696 }
 0x3d3   : > { %3845 = vperm.xlu0 %4313, %v3825_v55   ;;  %v2703_v0 = vsel %vm816_vm5, %v2695_v36, %v2697_v47  ;;  %v2639_v36 = vsel %vm816_vm5, %v5403_v61, %v2632_v18  ;;  %v2850_v61 = vsel %vm775_vm4, %v5713_v6, %v5757_v33 }
 0x3d4   : > { %3012 = vmatprep.subr.bf16.mxu1 %v2703_v0 }
 0x3d5   : > { %3013 = vmatpush1.bf16.msra.mxu1 %v2702_v25  ;;  %v5849_v37 = vpop.permute.xlu0 %2463  ;;  %v2351_v25 = vsel %vm509_vm7, %v5574_v62, %v5590_v27 }
 0x3d6   : > { %v5851_v60 = vpop.permute.xlu1 %3331  ;;  %3014 = vmatprep.subr.bf16.mxu1 %v5325_v35 }
 0x3d7   : > { %3855 = vperm.xlu0 %4313, %v3827_v2  }
 0x3d9   : > { %3015 = vmatpush1.bf16.msra.mxu1 %v5323_v4  ;;  %v2634_v55 = vpop.permute.xlu0 %2633 }
 0x3da   : > { %v5855_v47 = vpop.permute.xlu1 %3329  ;;  %3016 = vmatprep.subr.bf16.mxu1 %v5354_v49  ;;  %v2640_v10 = vsel %vm816_vm5, %v2632_v18, %v2634_v55  ;;  %v2233_v18 = vsel %vm391_vm10, %v5451_v17, %v5608_v48  ;;  %v2235_v17 = vsel %vm391_vm10, %v5464_v46, %v5717_v59  ;;  %v2237_v59 = vsel %vm391_vm10, %v5477_v51, %v5828_v40 }
 0x3db   : > { %2949 = vmatprep.subr.bf16.mxu0 %v2640_v10  ;;  %v2405_v55 = vsel %vm509_vm7, %v5580_v23, %v5584_v57  ;;  %v4319_v10 = vunpack.i.h.bf16 %v5490_v39  ;;  %v4318_v51 = vunpack.i.l.bf16 %v5490_v39  ;;  %v4380_v39 = vld [vmem:[%s6262_s3 + $0x50] ss:$8 sps:$4 sm:$0xff]   ;;  %v4324_v57 = vunpack.i.h.bf16 %v5521_v13 }
 0x3dc   : > { %2950 = vmatpush1.bf16.msra.mxu0 %v2639_v36  ;;  %v4323_v36 = vunpack.i.l.bf16 %v5521_v13  ;;  %v6352_v13 = vld [vmem:[#allocation5_spill] sm:$0xff] }
 0x3dd   : > { %2951 = vmatprep.subr.bf16.mxu0 %v5313_v7  ;;  %3017 = vmatpush1.bf16.msra.mxu1 %v5350_v19  ;;  %v3267_v35 = vpop.permute.xlu0 %3266  ;;  %v2849_v7 = vsel %vm775_vm4, %v5655_v32, %v5416_v5  ;;  %v2350_v27 = vsel %vm509_vm7, %v4318_v51, %v5574_v62  ;;  %v6367_v51 = vld [vmem:[#allocation12_spill] sm:$0xff] }
 0x3de   : > { %v5865_v4 = vsel %vm597_vm8, %v3267_v35, %v5793_v58  ;;  %v5867_v2 = vpop.permute.xlu1 %3276  ;;  %3018 = vmatprep.subr.bf16.mxu1 %v5376_v8  ;;  %v2848_v8 = vsel %vm775_vm4, %v5604_v30, %v5655_v32  ;;  %v2788_v30 = vsel %vm775_vm4, %v5744_v44, %v5458_v45  ;;  %v6349_v35 = vld [vmem:[#allocation24_spill] sm:$0xff] }
 0x3e0   : > { %2952 = vmatpush1.bf16.msra.mxu0 %v5309_v31 }
 0x3e1   : > { %2953 = vmatprep.subr.bf16.mxu0 %v5335_v42  ;;  %3019 = vmatpush1.bf16.msra.mxu1 %v5372_v29  ;;  %v5873_v49 = vpop.permute.xlu0 %3333  ;;  %v2851_v42 = vsel %vm775_vm4, %v5757_v33, %v5429_v22  ;;  %v2785_v22 = vsel %vm775_vm4, %v5597_v14, %v5645_v28  ;;  %v2297_v33 = vsel %vm391_vm10, %v5614_v34, %v5657_v54 }
 0x3e2   : > { %v5878_v19 = vpop.permute.xlu1 %3335  ;;  %3020 = vmatprep.subr.bf16.mxu1 %v2849_v7 }
 0x3e4   : > { %2954 = vmatpush1.bf16.msra.mxu0 %v5329_v41  ;;  %v2786_v41 = vsel %vm775_vm4, %v5645_v28, %v5445_v21 }
 0x3e5   : > { %2955 = vmatprep.subr.bf16.mxu0 %v5362_v16  ;;  %3021 = vmatpush1.bf16.msra.mxu1 %v2848_v8  ;;  %v5885_v31 = vpop.permute.xlu0 %3272  ;;  %v6350_v8 = vld [vmem:[#allocation22_spill] sm:$0xff] }
 0x3e6   : > { %3022 = vmatprep.subr.bf16.mxu1 %v2851_v42  ;;  %v2782_v29 = vpop.permute.xlu1 %2781  ;;  %v2406_v42 = vsel %vm509_vm7, %v4324_v57, %v6350_v8 }
 0x3e7   : > { %v2790_v21 = vsel %vm775_vm4, %v2782_v29, %v5470_v20  ;;  %v2789_v44 = vsel %vm775_vm4, %v5816_v12, %v2782_v29  ;;  %v2234_v20 = vsel %vm391_vm10, %v5608_v48, %v5663_v26  ;;  %v2296_v26 = vsel %vm391_vm10, %v5484_v24, %v5614_v34  ;;  %v4377_v34 = vld [vmem:[%s6262_s3 + $0x40] ss:$8 sps:$4 sm:$0xff]   ;;  %v6351_v29 = vld [vmem:[#allocation23_spill] sm:$0xff] }
 0x3e8   : > { %2956 = vmatpush1.bf16.msra.mxu0 %v5357_v15  ;;  %v2298_v24 = vsel %vm391_vm10, %v5496_v38, %v5722_v11  ;;  %v4378_v38 = vld [vmem:[%s6262_s3 + $0x54] ss:$8 sps:$4 sm:$0xff]   ;;  %v2300_v11 = vsel %vm391_vm10, %v5510_v50, %v5841_v9 }
 0x3e9   : > { %2957 = vmatprep.subr.bf16.mxu0 %v2786_v41  ;;  %3023 = vmatpush1.bf16.msra.mxu1 %v2850_v61  ;;  %v5897_v16 = vpop.permute.xlu0 %3339  ;;  %v2352_v61 = vsel %vm509_vm7, %v4323_v36, %v6351_v29  ;;  %v4328_v41 = vunpack.i.l.bf16 %v6352_v13  ;;  %v6368_v36 = vld [vmem:[#allocation32_spill] sm:$0xff] }
 0x3ea   : > { %v5899_v5 = vpop.permute.xlu1 %4331 }
 0x3ec   : > { %2958 = vmatpush1.bf16.msra.mxu0 %v2785_v22  ;;  %v6353_v22 = vld [vmem:[#allocation31_spill] sm:$0xff] }
 0x3ed   : > { %2959 = vmatprep.subr.bf16.mxu0 %v2788_v30  ;;  %v5907_v15 = vpop.permute.xlu0 %3379 }
 0x3ee   : > { %v5909_v32 = vpop.permute.xlu1 %3433 }
 0x3f0   : > { %2960 = vmatpush1.bf16.msra.mxu0 %v5753_v52  ;;  %v4372_v52 = vld [vmem:[%s6262_s3 + $0x30] ss:$8 sps:$4 sm:$0xff]  }
 0x3f1   : > { %2961 = vmatprep.subr.bf16.mxu0 %v2790_v21  ;;  %v2845_v6 = vpop.permute.xlu0 %2844 }
 0x3f2   : > { %v2852_v28 = vsel %vm775_vm4, %v5834_v53, %v2845_v6  ;;  %v5916_v14 = vpop.permute.xlu1 %3385  ;;  %v2853_v45 = vsel %vm775_vm4, %v2845_v6, %v5439_v63  ;;  %v4375_v53 = vld [vmem:[%s6262_s3 + $0x44] ss:$8 sps:$4 sm:$0xff]  }
 0x3f3   : > { %3024 = vmatprep.subr.bf16.mxu1 %v2853_v45  ;;  %v6354_v6 = vld [vmem:[#allocation28_spill] sm:$0xff]  ;;  %v6355_v45 = vld [vmem:[#allocation30_spill] sm:$0xff] }
 0x3f4   : > { %2962 = vmatpush1.bf16.msra.mxu0 %v2789_v44  ;;  %3025 = vmatpush1.bf16.msra.mxu1 %v2852_v28  ;;  %v2354_v28 = vsel %vm509_vm7, %v4328_v41, %v6354_v6 }
 0x3f5   : > { %3107 = vmatprep.subr.bf16.mxu0 %v2234_v20  ;;  %3170 = vmatprep.subr.bf16.mxu1 %v2297_v33  ;;  %v5931_v63 = vpop.permute.xlu0 %3377  ;;  %v6358_v33 = vld [vmem:[#allocation19_spill] sm:$0xff] }
 0x3f6   : > { %v2295_v12 = vpop.permute.xlu1 %2294 }
 0x3f7   : > { %2978 = vmatmul.mubr.bf16.vlgmr.msra.gmra.mrb[12].mxu0 %v4372_v52  ;;  %3041 = vmatmul.mubr.bf16.vlgmr.msra.gmra.mrb[12].mxu1 %v4372_v52  ;;  %v2301_v48 = vsel %vm391_vm10, %v5841_v9, %v2295_v12  ;;  %v2404_v9 = vsel %vm509_vm7, %v4319_v10, %v5580_v23  ;;  %v4383_v23 = vld [vmem:[%s6262_s3 + $0x4] ss:$8 sps:$4 sm:$0xff]   ;;  %v6356_v52 = vld [vmem:[#allocation18_spill] sm:$0xff] }
 0x3f8   : > { %3108 = vmatpush1.bf16.msra.mxu0 %v2233_v18  ;;  %3171 = vmatpush1.bf16.msra.mxu1 %v2296_v26  ;;  %v6359_v12 = vld [vmem:[#allocation14_spill] sm:$0xff] }
 0x3f9   : > { %3109 = vmatprep.subr.bf16.mxu0 %v5772_v1  ;;  %3172 = vmatprep.subr.bf16.mxu1 %v5764_v3  ;;  %v5944_v54 = vpop.permute.xlu0 %3431  ;;  %v6366_v10 = vld [vmem:[#allocation26_spill] sm:$0xff] }
 0x3fa   : > { %v5946_v0 = vpop.permute.xlu1 %3383  ;;  %4107 = vmatprep.mubr.msk.bf16.mxu0 %vm509_vm7, %v4375_v53  ;;  %4110 = vmatprep.mubr.msk.bf16.mxu1 %vm509_vm7, %v4375_v53  ;;  %v2531_v53 = vsel %vm638_vm9, %v6359_v12, %v6358_v33  ;;  %v6377_v33 = vld [vmem:[#allocation7_spill] sm:$0xff] }
 0x3fc   : > { %3110 = vmatpush1.bf16.msra.mxu0 %v2235_v17  ;;  %3173 = vmatpush1.bf16.msra.mxu1 %v2298_v24  ;;  %v6360_v17 = vld [vmem:[#allocation4_spill] sm:$0xff] }
 0x3fd   : > { %3174 = vmatprep.subr.bf16.mxu1 %v2301_v48  ;;  %v2232_v3 = vpop.permute.xlu0 %2231 }
 0x3fe   : > { %v5961_v1 = vpop.permute.xlu1 %3437  ;;  %v2238_v46 = vsel %vm391_vm10, %v5828_v40, %v2232_v3  ;;  %v6362_v3 = vld [vmem:[#allocation27_spill] sm:$0xff] }
 0x3ff   : > { %3111 = vmatprep.subr.bf16.mxu0 %v2238_v46  ;;  %2988 = vmatmul.mubr.bf16.gmra.mrb[16].mxu0 %v4377_v34  ;;  %v6363_v46 = vld [vmem:[#allocation29_spill] sm:$0xff] }
 0x400   : > { %3112 = vmatpush1.bf16.msra.mxu0 %v2237_v59  ;;  %3175 = vmatpush1.bf16.msra.mxu1 %v2300_v11  ;;  %v6364_v11 = vld [vmem:[#allocation25_spill] sm:$0xff] }
 0x401   : > { %3113 = vmatprep.subr.bf16.mxu0 %v2351_v25  ;;  %3176 = vmatprep.subr.bf16.mxu1 %v2405_v55  ;;  %v5982_v40 = vpop.permute.xlu0 %4336  ;;  %v6365_v25 = vld [vmem:[#allocation8_spill] sm:$0xff] }
 0x402   : > { %v5984_v50 = vpop.permute.xlu1 %4341  ;;  %3051 = vmatmul.mubr.bf16.gmra.mrb[16].mxu1 %v4377_v34  ;;  %4108 = vmatprep.mubr.msk.bf16.mxu0 %vm509_vm7, %v4378_v38  ;;  %v6361_v34 = vld [vmem:[#allocation13_spill] sm:$0xff]  ;;  %v2532_v55 = vsel %vm638_vm9, %v6365_v25, %v6364_v11 }
 0x403   : > { %4111 = vmatprep.mubr.msk.bf16.mxu1 %vm509_vm7, %v4378_v38  ;;  %v2530_v48 = vsel %vm638_vm9, %v6361_v34, %v6359_v12  ;;  %v3281_v12 = vsel %vm597_vm8, %v5793_v58, %v6377_v33  ;;  %v3343_v34 = vsel %vm597_vm8, %v5855_v47, %v5851_v60  ;;  %v4386_v58 = vld [vmem:[%s6262_s3 + $0x10] ss:$8 sps:$4 sm:$0xff]   ;;  %v3882_v33 = vld [vmem:[%s4481_s30] sm:$0xff] }
 0x404   : > { %3114 = vmatpush1.bf16.msra.mxu0 %v2350_v27  ;;  %3177 = vmatpush1.bf16.msra.mxu1 %v2404_v9  ;;  %v2469_v27 = vsel %vm638_vm9, %v6367_v51, %v6366_v10  ;;  %v3449_v10 = vsel %vm1596_vm11, %v5944_v54, %v5909_v32  ;;  %v4392_v54 = vld [vmem:[%s6262_s3 + $0x64] ss:$8 sps:$4 sm:$0xff]  }
 0x405   : > { %3115 = vmatprep.subr.bf16.mxu0 %v5696_v43  ;;  %3178 = vmatprep.subr.bf16.mxu1 %v6349_v35  ;;  %v5999_v62 = vpop.permute.xlu0 %3439  ;;  %v4329_v43 = vunpack.i.h.bf16 %v6352_v13  ;;  %v6371_v13 = vld [vmem:[#allocation6_spill] sm:$0xff] }
 0x406   : > { %v6001_v7 = vpop.permute.xlu1 %3445 }
 0x407   : > { %2998 = vmatmul.mubr.bf16.gmra.mrb[20].mxu0 %v4380_v39  ;;  %v2408_v44 = vsel %vm509_vm7, %v4329_v43, %v6355_v45  ;;  %v6372_v43 = vld [vmem:[#allocation21_spill] sm:$0xff]  ;;  %v4384_v45 = vld [vmem:[%s6262_s3 + $0x14] ss:$8 sps:$4 sm:$0xff]  }
 0x408   : > { %3116 = vmatpush1.bf16.msra.mxu0 %v2352_v61  ;;  %3179 = vmatpush1.bf16.msra.mxu1 %v2406_v42  ;;  %v6370_v42 = vld [vmem:[#allocation9_spill] sm:$0xff]  ;;  %v3279_v41 = vsel %vm597_vm8, %v6372_v43, %v6371_v13 }
 0x409   : > { %3117 = vmatprep.subr.bf16.mxu0 %v5820_v56  ;;  %3180 = vmatprep.subr.bf16.mxu1 %v6353_v22  ;;  %v6014_v30 = vpop.permute.xlu0 %3391  ;;  %v6357_v56 = vld [vmem:[#allocation15_spill] sm:$0xff]  ;;  %v2471_v29 = vsel %vm638_vm9, %v6370_v42, %v5849_v37  ;;  %v4381_v61 = vld [vmem:[%s6262_s3] ss:$8 sps:$4 sm:$0xff]  }
 0x40a   : > { %v2466_v21 = vpop.permute.xlu1 %2465  ;;  %3061 = vmatmul.mubr.bf16.gmra.mrb[20].mxu1 %v4380_v39  ;;  %4118 = vmatprep.mubr.msk.bf16.mxu0 %vm509_vm7, %v4383_v23  ;;  %v2468_v20 = vsel %vm638_vm9, %v6357_v56, %v6356_v52  ;;  %v2467_v24 = vsel %vm638_vm9, %v6360_v17, %v6357_v56  ;;  %v6373_v22 = vld [vmem:[#allocation11_spill] sm:$0xff]  ;;  %v6376_v56 = vld [vmem:[#allocation17_spill] sm:$0xff] }
 0x40b   : > { %4121 = vmatprep.mubr.msk.bf16.mxu1 %vm509_vm7, %v4383_v23  ;;  %v2472_v9 = vsel %vm638_vm9, %v5849_v37, %v2466_v21  ;;  %v6369_v23 = vld [vmem:[#allocation10_spill] sm:$0xff]  ;;  %v6374_v21 = vld [vmem:[#allocation20_spill] sm:$0xff] }
 0x40c   : > { %3118 = vmatpush1.bf16.msra.mxu0 %v2354_v28  ;;  %3181 = vmatpush1.bf16.msra.mxu1 %v2408_v44  ;;  %v2534_v8 = vsel %vm638_vm9, %v6369_v23, %v6368_v36  ;;  %v3342_v6 = vsel %vm597_vm8, %v6374_v21, %v6373_v22  ;;  %v6375_v44 = vld [vmem:[#allocation16_spill] sm:$0xff] }
 0x40d   : > { %3119 = vmatprep.subr.bf16.mxu0 %v2468_v20  ;;  %3182 = vmatprep.subr.bf16.mxu1 %v2531_v53  ;;  %v6028_v18 = vpop.permute.xlu0 %3389  ;;  %v3341_v52 = vsel %vm597_vm8, %v6375_v44, %v6374_v21  ;;  %v3278_v20 = vsel %vm597_vm8, %v6376_v56, %v6372_v43  ;;  %v3344_v53 = vsel %vm597_vm8, %v5851_v60, %v5873_v49  ;;  %v4334_v49 = vunpack.i.h.bf16 %v5899_v5  ;;  %v4390_v21 = vld [vmem:[%s6262_s3 + $0x60] ss:$8 sps:$4 sm:$0xff]   ;;  %v4396_v44 = vld [vmem:[%s6262_s3 + $0x84] ss:$8 sps:$4 sm:$0xff]  }
 0x40e   : > { %v6030_v26 = vpop.permute.xlu1 %3496 }
 0x40f   : > { %v3450_v25 = vsel %vm1596_vm11, %v5909_v32, %v4334_v49  ;;  %v3884_v49 = vld [vmem:[%s4481_s30 + $0x10] sm:$0xff] }
 0x410   : > { %3120 = vmatpush1.bf16.msra.mxu0 %v2467_v24  ;;  %3183 = vmatpush1.bf16.msra.mxu1 %v2530_v48  ;;  %v4333_v48 = vunpack.i.l.bf16 %v5899_v5  ;;  %v4387_v5 = vld [vmem:[%s6262_s3 + $0x24] ss:$8 sps:$4 sm:$0xff]  }
 0x411   : > { %3121 = vmatprep.subr.bf16.mxu0 %v6362_v3  ;;  %3184 = vmatprep.subr.bf16.mxu1 %v6363_v46  ;;  %v6040_v38 = vpop.permute.xlu0 %3443 }
 0x412   : > { %v6042_v59 = vpop.permute.xlu1 %3494 }
 0x414   : > { %3122 = vmatpush1.bf16.msra.mxu0 %v2469_v27  ;;  %3185 = vmatpush1.bf16.msra.mxu1 %v2532_v55  ;;  %v4339_v55 = vunpack.i.h.bf16 %v5982_v40  ;;  %v4389_v27 = vld [vmem:[%s6262_s3 + $0x20] ss:$8 sps:$4 sm:$0xff]  }
 0x415   : > { %3123 = vmatprep.subr.bf16.mxu0 %v2472_v9  ;;  %v2529_v39 = vpop.permute.xlu0 %2528  ;;  %v4343_v9 = vunpack.i.l.bf16 %v5984_v50 }
 0x416   : > { %v6052_v57 = vpop.permute.xlu1 %3561  ;;  %v2535_v35 = vsel %vm638_vm9, %v6368_v36, %v2529_v39  ;;  %v3397_v39 = vsel %vm1596_vm11, %v5946_v0, %v5916_v14  ;;  %v3453_v0 = vsel %vm1596_vm11, %v6040_v38, %v6001_v7 }
 0x417   : > { %3186 = vmatprep.subr.bf16.mxu1 %v2535_v35  ;;  %v3400_v36 = vsel %vm1596_vm11, %v6014_v30, %v4343_v9 }
 0x418   : > { %3124 = vmatpush1.bf16.msra.mxu0 %v2471_v29  ;;  %3187 = vmatpush1.bf16.msra.mxu1 %v2534_v8 }
 0x419   : > { %3672 = vmatprep.subr.bf16.mxu0 %v3279_v41  ;;  %3735 = vmatprep.subr.bf16.mxu1 %v3342_v6  ;;  %v6071_v28 = vpop.permute.xlu0 %3498  ;;  %v4393_v6 = vld [vmem:[%s6262_s3 + $0x74] ss:$8 sps:$4 sm:$0xff]  }
 0x41a   : > { %v3338_v37 = vpop.permute.xlu1 %3337 }
 0x41b   : > { %3140 = vmatmul.mubr.bf16.vlgmr.msra.gmra.mrb[12].mxu0 %v4381_v61  ;;  %3203 = vmatmul.mubr.bf16.vlgmr.msra.gmra.mrb[12].mxu1 %v4381_v61  ;;  %v3346_v3 = vsel %vm597_vm8, %v3338_v37, %v5897_v16  ;;  %v4338_v16 = vunpack.i.l.bf16 %v5982_v40  ;;  %v4344_v40 = vunpack.i.h.bf16 %v5984_v50  ;;  %v3451_v50 = vsel %vm1596_vm11, %v5961_v1, %v5999_v62 }
 0x41c   : > { %3673 = vmatpush1.bf16.msra.mxu0 %v3278_v20  ;;  %3736 = vmatpush1.bf16.msra.mxu1 %v3341_v52  ;;  %v3513_v1 = vsel %vm350_vm6, %v6030_v26, %v6071_v28  ;;  %v4398_v52 = vld [vmem:[%s6262_s3 + $0x80] ss:$8 sps:$4 sm:$0xff]  }
 0x41d   : > { %3674 = vmatprep.subr.bf16.mxu0 %v3281_v12  ;;  %3737 = vmatprep.subr.bf16.mxu1 %v3344_v53  ;;  %v6088_v17 = vpop.permute.xlu0 %3559  ;;  %v3454_v35 = vsel %vm1596_vm11, %v6001_v7, %v4344_v40 }
 0x41e   : > { %v6090_v24 = vpop.permute.xlu1 %3502  ;;  %4119 = vmatprep.mubr.msk.bf16.mxu0 %vm509_vm7, %v4384_v45  ;;  %4122 = vmatprep.mubr.msk.bf16.mxu1 %vm509_vm7, %v4384_v45  ;;  %v4395_v45 = vld [vmem:[%s6262_s3 + $0x70] ss:$8 sps:$4 sm:$0xff]  }
 0x420   : > { %3675 = vmatpush1.bf16.msra.mxu0 %v5865_v4  ;;  %3738 = vmatpush1.bf16.msra.mxu1 %v3343_v34  ;;  %v3345_v4 = vsel %vm597_vm8, %v5878_v19, %v3338_v37  ;;  %v3395_v19 = vsel %vm1596_vm11, %v5931_v63, %v5907_v15  ;;  %v3452_v63 = vsel %vm1596_vm11, %v5999_v62, %v4339_v55 }
 0x421   : > { %3739 = vmatprep.subr.bf16.mxu1 %v3346_v3  ;;  %v3275_v46 = vpop.permute.xlu0 %3274  ;;  %v3576_v62 = vsel %vm350_vm6, %v6088_v17, %v6052_v57 }
 0x422   : > { %v3282_v11 = vsel %vm597_vm8, %v5885_v31, %v3275_v46  ;;  %v6107_v60 = vpop.permute.xlu1 %3500  ;;  %v3283_v47 = vsel %vm597_vm8, %v3275_v46, %v5867_v2  ;;  %v3396_v31 = vsel %vm1596_vm11, %v5907_v15, %v4333_v48  ;;  %v3398_v15 = vsel %vm1596_vm11, %v5916_v14, %v4338_v16 }
 0x423   : > { %3676 = vmatprep.subr.bf16.mxu0 %v3283_v47  ;;  %3150 = vmatmul.mubr.bf16.gmra.mrb[16].mxu0 %v4386_v58  ;;  %v3399_v14 = vsel %vm1596_vm11, %v6028_v18, %v6014_v30  ;;  %v3512_v30 = vsel %vm350_vm6, %v6042_v59, %v6030_v26  ;;  %v3514_v57 = vsel %vm350_vm6, %v6107_v60, %v6090_v24  ;;  %v4142_v47 = vld [vmem:[%s4481_s30 + $0x60] sm:$0xff] }
 0x424   : > { %3677 = vmatpush1.bf16.msra.mxu0 %v3282_v11  ;;  %3740 = vmatpush1.bf16.msra.mxu1 %v3345_v4  ;;  %v3885_v11 = vld [vmem:[%s4481_s30 + $0x18] sm:$0xff] }
 0x425   : > { %3678 = vmatprep.subr.bf16.mxu0 %v3396_v31  ;;  %3741 = vmatprep.subr.bf16.mxu1 %v3450_v25  ;;  %v3558_v2 = vpop.permute.xlu0 %3557  ;;  %v4143_v25 = vld [vmem:[%s4481_s30 + $0x68] sm:$0xff] }
 0x426   : > { %3213 = vmatmul.mubr.bf16.gmra.mrb[16].mxu1 %v4386_v58  ;;  %4120 = vmatprep.mubr.msk.bf16.mxu0 %vm509_vm7, %v4387_v5  ;;  %v3568_v51 = vpop.permute.xlu1 %3567  ;;  %v3575_v7 = vsel %vm350_vm6, %v3558_v2, %v6088_v17  ;;  %v3883_v17 = vld [vmem:[%s4481_s30 + $0x8] sm:$0xff] }
 0x427   : > { %4123 = vmatprep.mubr.msk.bf16.mxu1 %vm509_vm7, %v4387_v5 }
 0x428   : > { %3679 = vmatpush1.bf16.msra.mxu0 %v3395_v19  ;;  %3742 = vmatpush1.bf16.msra.mxu1 %v3449_v10  ;;  %v4144_v10 = vld [vmem:[%s4481_s30 + $0x70] sm:$0xff] }
 0x429   : > { %v3505_v32 = vpop.permute.xlu0 %3504  ;;  %3680 = vmatprep.subr.bf16.mxu0 %v3398_v15  ;;  %3743 = vmatprep.subr.bf16.mxu1 %v3452_v63  ;;  %v4145_v15 = vld [vmem:[%s4481_s30 + $0x78] sm:$0xff] }
 0x42a   : > { %v3507_v23 = vpop.permute.xlu1 %3506  ;;  %v3515_v38 = vsel %vm350_vm6, %v6090_v24, %v3505_v32 }
 0x42b   : > { %3160 = vmatmul.mubr.bf16.gmra.mrb[20].mxu0 %v4389_v27 }
 0x42c   : > { %3681 = vmatpush1.bf16.msra.mxu0 %v3397_v39  ;;  %3744 = vmatpush1.bf16.msra.mxu1 %v3451_v50 }
 0x42d   : > { %v3566_v8 = vpop.permute.xlu0 %3565  ;;  %3682 = vmatprep.subr.bf16.mxu0 %v3400_v36  ;;  %3745 = vmatprep.subr.bf16.mxu1 %v3454_v35  ;;  %v3886_v36 = vld [vmem:[%s4481_s30 + $0x20] sm:$0xff] }
 0x42e   : > { %3223 = vmatmul.mubr.bf16.gmra.mrb[20].mxu1 %v4389_v27  ;;  %4136 = vmatprep.mubr.msk.bf16.mxu0 %vm509_vm7, %v4392_v54  ;;  %v3509_v18 = vpop.permute.xlu1 %3508  ;;  %v3578_v29 = vsel %vm350_vm6, %v3566_v8, %v3568_v51 }
 0x42f   : > { %4139 = vmatprep.mubr.msk.bf16.mxu1 %vm509_vm7, %v4392_v54  ;;  %v3516_v22 = vsel %vm350_vm6, %v3507_v23, %v3509_v18 }
 0x430   : > { %3683 = vmatpush1.bf16.msra.mxu0 %v3399_v14  ;;  %3746 = vmatpush1.bf16.msra.mxu1 %v3453_v0  ;;  %v3887_v14 = vld [vmem:[%s4481_s30 + $0x28] sm:$0xff] }
 0x431   : > { %v3564_v42 = vpop.permute.xlu0 %3563  ;;  %3684 = vmatprep.subr.bf16.mxu0 %v3513_v1  ;;  %3747 = vmatprep.subr.bf16.mxu1 %v3576_v62 }
 0x432   : > { %v3577_v26 = vsel %vm350_vm6, %v3564_v42, %v3566_v8  ;;  %v3574_v13 = vpop.permute.xlu1 %3573  ;;  %v3888_v42 = vld [vmem:[%s4481_s30 + $0x30] sm:$0xff] }
 0x434   : > { %3685 = vmatpush1.bf16.msra.mxu0 %v3512_v30  ;;  %3748 = vmatpush1.bf16.msra.mxu1 %v3575_v7 }
 0x435   : > { %v3511_v61 = vpop.permute.xlu0 %3510  ;;  %3686 = vmatprep.subr.bf16.mxu0 %v3515_v38  ;;  %3749 = vmatprep.subr.bf16.mxu1 %v3578_v29  ;;  %v3889_v38 = vld [vmem:[%s4481_s30 + $0x38] sm:$0xff] }
 0x436   : > { %v3517_v59 = vsel %vm350_vm6, %v3509_v18, %v3511_v61  ;;  %v4146_v61 = vld [vmem:[%s4481_s30 + $0x80] sm:$0xff] }
 0x438   : > { %3687 = vmatpush1.bf16.msra.mxu0 %v3514_v57  ;;  %3750 = vmatpush1.bf16.msra.mxu1 %v3577_v26 }
 0x439   : > { %v3572_v43 = vpop.permute.xlu0 %3571  ;;  %3688 = vmatprep.subr.bf16.mxu0 %v3517_v59 }
 0x43a   : > { %v3580_v41 = vsel %vm350_vm6, %v3572_v43, %v3574_v13 }
 0x43b   : > { %3751 = vmatprep.subr.bf16.mxu1 %v3580_v41 }
 0x43c   : > { %3689 = vmatpush1.bf16.msra.mxu0 %v3516_v22 }
 0x43d   : > { %v3570_v28 = vpop.permute.xlu0 %3569 }
 0x43e   : > { %v3579_v37 = vsel %vm350_vm6, %v3570_v28, %v3572_v43  ;;  %v4147_v43 = vld [vmem:[%s4481_s30 + $0x88] sm:$0xff] }
 0x43f   : > { %3705 = vmatmul.mubr.bf16.vlgmr.msra.gmra.mrb[12].mxu0 %v4390_v21  ;;  %3752 = vmatpush1.bf16.msra.mxu1 %v3579_v37 }
 0x440   : > { %4137 = vmatprep.mubr.msk.bf16.mxu0 %vm509_vm7, %v4393_v6 }
 0x442   : > { %3768 = vmatmul.mubr.bf16.vlgmr.msra.gmra.mrb[12].mxu1 %v4390_v21 }
 0x443   : > { %4140 = vmatprep.mubr.msk.bf16.mxu1 %vm509_vm7, %v4393_v6  ;;  %v3831_v56 = vpop.permute.xlu1 %3830  ;;  %v4148_v6 = vld [vmem:[%s4481_s30 + $0x90] sm:$0xff] }
 0x447   : > { %3715 = vmatmul.mubr.bf16.gmra.mrb[16].mxu0 %v4395_v45  ;;  %v3841_v54 = vpop.permute.xlu1 %3840 }
 0x448   : > { %4138 = vmatprep.mubr.msk.bf16.mxu0 %vm509_vm7, %v4396_v44 }
 0x44a   : > { %3778 = vmatmul.mubr.bf16.gmra.mrb[16].mxu1 %v4395_v45 }
 0x44b   : > { %4141 = vmatprep.mubr.msk.bf16.mxu1 %vm509_vm7, %v4396_v44 }
 0x44e   : > { %v3836_v24 = vpop.permute.xlu0 %3835 }
 0x44f   : > { %3725 = vmatmul.mubr.bf16.gmra.mrb[20].mxu0 %v4398_v52 }
 0x452   : > { %3788 = vmatmul.mubr.bf16.gmra.mrb[20].mxu1 %v4398_v52  ;;  %v3846_v0 = vpop.permute.xlu0 %3845  ;;  %v4149_v52 = vld [vmem:[%s4481_s30 + $0x98] sm:$0xff] }
 0x512   : > { %v3706_v20 = vpop.f32.mrb[12].mxu0 }
 0x513   : > { %v3858_v12 = vadd.f32 %v3831_v56, %v3706_v20  ;;  %v3708_v53 = vpop.f32.mrb[13].mxu0 }
 0x514   : > { %v3859_v34 = vadd.f32 %v3831_v56, %v3708_v53  ;;  %v3710_v58 = vpop.f32.mrb[14].mxu0 }
 0x515   : > { %v3894_v48 = vadd.f32 %v3882_v33, %v3858_v12  ;;  %v3862_v3 = vadd.f32 %v3836_v24, %v3710_v58  ;;  %v3712_v46 = vpop.f32.mrb[15].mxu0  ;;  %v3769_v60 = vpop.f32.mrb[12].mxu1 }
 0x516   : > { %v3895_v5 = vadd.f32 %v3883_v17, %v3859_v34  ;;  %v3863_v4 = vadd.f32 %v3836_v24, %v3712_v46  ;;  %v3860_v16 = vadd.f32 %v3831_v56, %v3769_v60  ;;  %v3771_v31 = vpop.f32.mrb[13].mxu1  ;;  %v3851_v33 = vpop.permute.xlu1 %3850  ;;  %v3890_v17 = vld [vmem:[%s4481_s30 + $0x40] sm:$0xff] }
 0x517   : > { %3906 = vst [vmem:[%s6208_s19] sm:$0xff] %v3894_v48  ;;  %v3896_v2 = vadd.f32 %v3884_v49, %v3862_v3  ;;  %v3861_v55 = vadd.f32 %v3831_v56, %v3771_v31  ;;  %v3773_v19 = vpop.f32.mrb[14].mxu1  ;;  %v3891_v49 = vld [vmem:[%s4481_s30 + $0x48] sm:$0xff]  ;;  %v3856_v48 = vpop.permute.xlu0 %3855  ;;  %v4150_v31 = vld [vmem:[%s4481_s30 + $0xa0] sm:$0xff] }
 0x518   : > { %3907 = vst [vmem:[%s6208_s19 + $0x8] sm:$0xff] %v3895_v5  ;;  %v3897_v51 = vadd.f32 %v3885_v11, %v3863_v4  ;;  %v3930_v27 = vadd.f32 %v4142_v47, %v3860_v16  ;;  %v3864_v40 = vadd.f32 %v3836_v24, %v3773_v19  ;;  %v3775_v9 = vpop.f32.mrb[15].mxu1  ;;  %v3892_v11 = vld [vmem:[%s4481_s30 + $0x50] sm:$0xff]  ;;  %v3893_v4 = vld [vmem:[%s4481_s30 + $0x58] sm:$0xff] }
 0x519   : > { %3908 = vst [vmem:[%s6208_s19 + $0x10] sm:$0xff] %v3896_v2  ;;  %v3931_v63 = vadd.f32 %v4143_v25, %v3861_v55  ;;  %v3865_v32 = vadd.f32 %v3836_v24, %v3775_v9  ;;  %v4152_v9 = vld [vmem:[%s4481_s30 + $0xb0] sm:$0xff] }
 0x51a   : > { %3909 = vst [vmem:[%s6208_s19 + $0x18] sm:$0xff] %v3897_v51  ;;  %4154 = vst [vmem:[%s6208_s19 + $0x60] sm:$0xff] %v3930_v27  ;;  %v3932_v39 = vadd.f32 %v4144_v10, %v3864_v40  ;;  %v3716_v50 = vpop.f32.mrb[16].mxu0  ;;  %v4151_v10 = vld [vmem:[%s4481_s30 + $0xa8] sm:$0xff] }
 0x51b   : > { %4155 = vst [vmem:[%s6208_s19 + $0x68] sm:$0xff] %v3931_v63  ;;  %v3933_v35 = vadd.f32 %v4145_v15, %v3865_v32  ;;  %v3866_v23 = vadd.f32 %v3841_v54, %v3716_v50  ;;  %v3718_v8 = vpop.f32.mrb[17].mxu0 }
 0x51c   : > { %4156 = vst [vmem:[%s6208_s19 + $0x70] sm:$0xff] %v3932_v39  ;;  %v3867_v1 = vadd.f32 %v3841_v54, %v3718_v8  ;;  %v3720_v62 = vpop.f32.mrb[18].mxu0  ;;  %v4153_v39 = vld [vmem:[%s4481_s30 + $0xb8] sm:$0xff] }
 0x51d   : > { %4157 = vst [vmem:[%s6208_s19 + $0x78] sm:$0xff] %v3933_v35  ;;  %v3898_v30 = vadd.f32 %v3886_v36, %v3866_v23  ;;  %v3870_v7 = vadd.f32 %v3846_v0, %v3720_v62  ;;  %v3722_v18 = vpop.f32.mrb[19].mxu0  ;;  %v3779_v29 = vpop.f32.mrb[16].mxu1 }
 0x51e   : > { %v3899_v57 = vadd.f32 %v3887_v14, %v3867_v1  ;;  %v3871_v26 = vadd.f32 %v3846_v0, %v3722_v18  ;;  %v3868_v59 = vadd.f32 %v3841_v54, %v3779_v29  ;;  %v3781_v13 = vpop.f32.mrb[17].mxu1 }
 0x51f   : > { %3910 = vst [vmem:[%s6208_s19 + $0x20] sm:$0xff] %v3898_v30  ;;  %v3900_v41 = vadd.f32 %v3888_v42, %v3870_v7  ;;  %v3869_v22 = vadd.f32 %v3841_v54, %v3781_v13  ;;  %v3783_v21 = vpop.f32.mrb[18].mxu1 }
 0x520   : > { %3911 = vst [vmem:[%s6208_s19 + $0x28] sm:$0xff] %v3899_v57  ;;  %v3901_v28 = vadd.f32 %v3889_v38, %v3871_v26  ;;  %v3934_v37 = vadd.f32 %v4146_v61, %v3868_v59  ;;  %v3872_v45 = vadd.f32 %v3846_v0, %v3783_v21  ;;  %v3785_v44 = vpop.f32.mrb[19].mxu1 }
 0x521   : > { %3912 = vst [vmem:[%s6208_s19 + $0x30] sm:$0xff] %v3900_v41  ;;  %v3935_v56 = vadd.f32 %v4147_v43, %v3869_v22  ;;  %v3873_v20 = vadd.f32 %v3846_v0, %v3785_v44 }
 0x522   : > { %3913 = vst [vmem:[%s6208_s19 + $0x38] sm:$0xff] %v3901_v28  ;;  %4158 = vst [vmem:[%s6208_s19 + $0x80] sm:$0xff] %v3934_v37  ;;  %v3936_v12 = vadd.f32 %v4148_v6, %v3872_v45  ;;  %v3726_v53 = vpop.f32.mrb[20].mxu0 }
 0x523   : > { %4159 = vst [vmem:[%s6208_s19 + $0x88] sm:$0xff] %v3935_v56  ;;  %v3937_v24 = vadd.f32 %v4149_v52, %v3873_v20  ;;  %v3874_v34 = vadd.f32 %v3851_v33, %v3726_v53  ;;  %v3728_v58 = vpop.f32.mrb[21].mxu0 }
 0x524   : > { %4160 = vst [vmem:[%s6208_s19 + $0x90] sm:$0xff] %v3936_v12  ;;  %v3875_v3 = vadd.f32 %v3851_v33, %v3728_v58  ;;  %v3730_v46 = vpop.f32.mrb[22].mxu0 }
 0x525   : > { %4161 = vst [vmem:[%s6208_s19 + $0x98] sm:$0xff] %v3937_v24  ;;  %v3902_v60 = vadd.f32 %v3890_v17, %v3874_v34  ;;  %v3878_v47 = vadd.f32 %v3856_v48, %v3730_v46  ;;  %v3732_v5 = vpop.f32.mrb[23].mxu0  ;;  %v3789_v16 = vpop.f32.mrb[20].mxu1 }
 0x526   : > { %v3903_v25 = vadd.f32 %v3891_v49, %v3875_v3  ;;  %v3879_v2 = vadd.f32 %v3856_v48, %v3732_v5  ;;  %v3876_v55 = vadd.f32 %v3851_v33, %v3789_v16  ;;  %v3791_v19 = vpop.f32.mrb[21].mxu1 }
 0x527   : > { %3914 = vst [vmem:[%s6208_s19 + $0x40] sm:$0xff] %v3902_v60  ;;  %v3904_v51 = vadd.f32 %v3892_v11, %v3878_v47  ;;  %v3877_v27 = vadd.f32 %v3851_v33, %v3791_v19  ;;  %v3793_v40 = vpop.f32.mrb[22].mxu1 }
 0x528   : > { %3915 = vst [vmem:[%s6208_s19 + $0x48] sm:$0xff] %v3903_v25  ;;  %v3905_v15 = vadd.f32 %v3893_v4, %v3879_v2  ;;  %v3938_v63 = vadd.f32 %v4150_v31, %v3876_v55  ;;  %v3880_v32 = vadd.f32 %v3856_v48, %v3793_v40  ;;  %v3795_v54 = vpop.f32.mrb[23].mxu1 }
 0x529   : > { %3916 = vst [vmem:[%s6208_s19 + $0x50] sm:$0xff] %v3904_v51  ;;  %v3939_v50 = vadd.f32 %v4151_v10, %v3877_v27  ;;  %v3881_v36 = vadd.f32 %v3856_v48, %v3795_v54 }
 0x52a   : > { %3917 = vst [vmem:[%s6208_s19 + $0x58] sm:$0xff] %v3905_v15  ;;  %4162 = vst [vmem:[%s6208_s19 + $0xa0] sm:$0xff] %v3938_v63  ;;  %v3940_v35 = vadd.f32 %v4152_v9, %v3880_v32 }
 0x52b   : > { %4163 = vst [vmem:[%s6208_s19 + $0xa8] sm:$0xff] %v3939_v50  ;;  %v3941_v23 = vadd.f32 %v4153_v39, %v3881_v36 }
 0x52c   : > { %4164 = vst [vmem:[%s6208_s19 + $0xb0] sm:$0xff] %v3940_v35 }
 0x52d   : > { %4165 = vst [vmem:[%s6208_s19 + $0xb8] sm:$0xff] %v3941_v23 }
 0x52e PF: > { %s15_s18 = sadd.s32 1, %s4405_s18  }
 0x52f   : > { %p12_p4 = scmp.ge.s32.totalorder %s15_s18, 4  }
 0x531   :  { %14 = sbr.rel (!%p12_p4) target bundleno = 1 (0x1), region = 79 }

</bundles_post_ra>
